<compile_context>
chip_gen: v7x
topology: tpu7x:2x2x1
jax: 0.10.0
libtpu: 0.0.40
codegen_flags: <defaults>
</compile_context>

<pallas_src>
import functools

import numpy as np
import jax
import jax.numpy as jnp
from jax.experimental import pallas as pl
from jax.experimental.pallas import tpu as pltpu


def _fda_delta_kernel(src_ref, trg_ref, fwm_ref, fhm_ref, ihm_ref, iwm_ref,
                      out_ref, *, imgs, h, cb, w_prec, c_prec):
    """out = src + irfft2(delta); delta supported on the 2b x 2b spectral corners."""
    f32 = jnp.float32
    pk = 2 * cb                     # packed re||im width of the corner band
    blk = imgs * h

    def mm(a, m, prec):             # big stacked 2-D matmul on the MXU
        return jnp.dot(a, m, precision=prec, preferred_element_type=f32)

    def bmm(a, m, prec):            # small per-image corner-stage matmul
        return jnp.einsum("bij,bjk->bik", a, m, precision=prec,
                          preferred_element_type=f32)

    # ---- forward rfft along W at the 2b corner frequencies (packed re|im) --
    fwm = fwm_ref[...]                                    # (w, pk) = [cos | -sin]
    a_s = mm(src_ref[...], fwm, w_prec).reshape(imgs, h, pk)
    a_t = mm(trg_ref[...], fwm, w_prec).reshape(imgs, h, pk)

    # ---- forward fft along H at the 2b corner rows (packed [re; im] lhs) ---
    fh = jnp.broadcast_to(fhm_ref[...], (imgs, pk, h))    # [FH_re ; FH_im]
    rs = bmm(fh, a_s, c_prec)                             # (imgs, pk, pk)
    rt = bmm(fh, a_t, c_prec)
    xs_re = rs[:, :cb, :cb] - rs[:, cb:, cb:]
    xs_im = rs[:, :cb, cb:] + rs[:, cb:, :cb]
    xt_re = rt[:, :cb, :cb] - rt[:, cb:, cb:]
    xt_im = rt[:, :cb, cb:] + rt[:, cb:, :cb]

    # ---- corner amplitude swap expressed as a spectral delta ---------------
    mag2_s = xs_re * xs_re + xs_im * xs_im
    amp_t = jnp.sqrt(xt_re * xt_re + xt_im * xt_im)
    safe = mag2_s > 0.0
    inv_s = jnp.where(safe, jax.lax.rsqrt(mag2_s), 0.0)   # EUP; masked -> no inf*0 NaN
    scale = amp_t * inv_s - 1.0                           # amp_t / amp_s - 1
    # amp_s == 0  =>  atan2(0, 0) = 0 phase  =>  new value = amp_t + 0j.
    d_re = jnp.where(safe, scale * xs_re, amp_t)
    d_im = jnp.where(safe, scale * xs_im, 0.0)

    # Block matrix [[d_re, d_im], [-d_im, d_re]]: a single packed inverse-H
    # matmul then yields [b_re | b_im] directly (no split of big arrays).
    top = jnp.concatenate([d_re, d_im], axis=-1)
    bot = jnp.concatenate([-d_im, d_re], axis=-1)
    d_big = jnp.concatenate([top, bot], axis=-2)          # (imgs, pk, pk)

    # ---- inverse fft along H (corner rows -> all rows), packed -------------
    ih = jnp.broadcast_to(ihm_ref[...], (imgs, h, pk))    # [IH_re | IH_im]
    b_pk = bmm(ih, d_big, c_prec).reshape(blk, pk)        # [b_re | b_im]

    # ---- Hermitian irfft along W (corner freqs -> all cols), add to src ----
    delta = mm(b_pk, iwm_ref[...], w_prec)                # (blk, w)
    out_ref[...] = (src_ref[...].astype(f32) + delta).astype(out_ref.dtype)


def _packed_corner_dft(h, w, b):
    """Packed corner-restricted DFT matrices for rfft2 / irfft2 of real images."""
    wf = w // 2 + 1
    rows = np.concatenate([np.arange(b), np.arange(h - b, h)])          # (2b,)
    cols = np.concatenate([np.arange(b), np.arange(wf - b, wf)])        # (2b,)
    r = np.arange(h)
    c = np.arange(w)

    # forward rfft along W at corner freqs; packed [re | im] along columns
    ang = 2.0 * np.pi * np.outer(c, cols) / w                           # (w, 2b)
    fwm = np.concatenate([np.cos(ang), -np.sin(ang)], axis=1)           # (w, 4b)

    # forward fft along H at corner rows; packed [re ; im] along rows
    ang = 2.0 * np.pi * np.outer(rows, r) / h                           # (2b, h)
    fhm = np.concatenate([np.cos(ang), -np.sin(ang)], axis=0)           # (4b, h)

    # inverse fft along H (1/H folded); packed [re | im] along columns
    ang = 2.0 * np.pi * np.outer(r, rows) / h                           # (h, 2b)
    ihm = np.concatenate([np.cos(ang), np.sin(ang)], axis=1) / h        # (h, 4b)

    # Hermitian irfft along W (1/W and double-count weights folded); DC and
    # Nyquist columns counted once with only their real part used, matching
    # numpy / torch c2r semantics.  Packed [cos ; -sin] along rows so that
    # [b_re | b_im] @ iwm == delta.
    wgt = np.where((cols == 0) | (cols == w // 2), 1.0, 2.0)[:, None]   # (2b, 1)
    ang = 2.0 * np.pi * np.outer(cols, c) / w                           # (2b, w)
    iwm = np.concatenate([wgt * np.cos(ang), -wgt * np.sin(ang)], axis=0) / w

    f = lambda a: jnp.asarray(a, dtype=jnp.float32)
    return f(fwm), f(fhm), f(ihm), f(iwm)


def _device_kind():
    try:
        return jax.devices()[0].device_kind.lower()
    except Exception:
        return ""


def _tpu_vmem_bytes(kind):
    try:
        info = pltpu.get_tpu_info()
        for attr in ("vmem_capacity_bytes", "vmem_size_bytes", "vmem_bytes"):
            v = getattr(info, attr, None)
            if v:
                return int(v)
    except Exception:
        pass
    if "v2" in kind or "v3" in kind:
        return 16 * 1024 * 1024
    if "7" in kind:
        return 64 * 1024 * 1024      # v7x: 64 MiB per TensorCore
    return 128 * 1024 * 1024         # v4 / v5e / v5p / v6e


def fda_forward(src, trg, l=0.1, precision=None, max_images_per_block=None):
    """Pallas implementation of FDA.forward(src_img, trg_img) for NCHW inputs."""
    assert src.shape == trg.shape and src.ndim == 4
    n, c, h, w = src.shape
    assert w % 2 == 0, "irfft reconstruction below assumes even width"
    assert h % 8 == 0, "H must be a multiple of the TPU sublane tile (8)"
    # TODO(synk): generalize to odd W / H not divisible by 8 (padded path).

    if not jnp.issubdtype(src.dtype, jnp.floating):
        src = src.astype(jnp.float32)
    if not jnp.issubdtype(trg.dtype, jnp.floating):
        trg = trg.astype(jnp.float32)

    wf = w // 2 + 1
    # torch: b = floor(min(amp_trg.shape[-2:]) * L); amplitude shape is (H, W//2+1).
    b = int(np.floor(min(h, wf) * l))
    if b == 0:
        # Empty low-frequency band: the module is an exact FFT round trip.
        return src.astype(jnp.float32)
    cb = 2 * b                        # corner band size per axis
    pk = 2 * cb                       # packed re||im width
    assert cb <= h and cb <= wf, "corner bands overlap (L too large)"

    fwm, fhm, ihm, iwm = _packed_corner_dft(h, w, b)

    kind = _device_kind()
    two_tc = ("v4" in kind) or ("v5p" in kind) or ("7" in kind)
    if precision is None:
        # v6e stays HBM-bound even with 6-pass (HIGHEST) f32 matmuls; on v5e /
        # v7x the big W-stage matmuls flip the kernel MXU-bound, so prefer the
        # 3-pass bf16 path there.  The corner stage stays HIGHEST below.
        w_prec_default = (jax.lax.Precision.HIGHEST if "v6" in kind
                          else jax.lax.Precision.HIGH)
    else:
        w_prec_default = precision
    c_prec = jax.lax.Precision.HIGHEST   # tiny; feeds the amp_t/amp_s - 1 cancellation

    nc = n * c
    src2 = src.reshape(nc * h, w)        # free reshape; native dtype, cast in-kernel
    trg2 = trg.reshape(nc * h, w)
    isz = src2.dtype.itemsize

    # ---- images per grid step from a generation-aware VMEM budget ----------
    lp = lambda x: -(-x // 128) * 128    # lane padding
    sp = lambda x: -(-x // 8) * 8        # sublane padding
    wl, hl, pkl = lp(w), lp(h), lp(pk)
    # Constants (counted double-buffered to stay safe if Buffered(1) is dropped).
    fixed = 2 * 4 * (sp(w) * pkl + sp(pk) * hl + sp(h) * pkl + sp(pk) * wl)
    per_img = (4 * h * wl * isz          # src + trg blocks, double-buffered
               + 2 * h * wl * 4          # out block, double-buffered
               + 2 * h * wl * 4          # delta + final add temporaries
               + 4 * h * pkl * 4         # a_s, a_t, ih broadcast, b_pk
               + sp(pk) * hl * 4         # fh broadcast
               + 12 * sp(pk) * pkl * 4)  # corner-stage temporaries (generous)
    phys = _tpu_vmem_bytes(kind)
    vmem_limit = (phys * 3) // 4
    headroom = 2 * 1024 * 1024
    if fixed + per_img + headroom > vmem_limit:
        vmem_limit = min(phys - 4 * 1024 * 1024, fixed + per_img + headroom)
    budget = vmem_limit - fixed - headroom
    imgs = int(max(1, min(nc, budget // per_img)))

    # 2-TensorCore chips (v7x / megacore): keep an even step count >= 2 so the
    # "parallel" grid axis splits into balanced, pipelined halves.
    steps = pl.cdiv(nc, imgs)
    if two_tc and nc > 1:
        if steps < 2:
            steps = 2
        elif steps % 2:
            steps += 1
        imgs = pl.cdiv(nc, steps)
    if max_images_per_block is not None:
        imgs = max(1, min(imgs, int(max_images_per_block)))
    steps = pl.cdiv(nc, imgs)            # padded/masked tail block if imgs !| nc
    blk = imgs * h                       # multiple of 8 since h % 8 == 0

    data_spec = pl.BlockSpec((blk, w), lambda i: (i, 0))
    # TODO(synk): if xprof shows exposed DMA on v7x, bump data_spec to
    # pipeline_mode=pl.Buffered(3) using the VMEM freed below.

    def run(single_buffer_consts, w_prec):
        if single_buffer_consts:
            # Constant index_map => double buffering buys nothing; free the VMEM.
            cspec = lambda m: pl.BlockSpec(m.shape, lambda i: (0, 0),
                                           pipeline_mode=pl.Buffered(1))
        else:
            cspec = lambda m: pl.BlockSpec(m.shape, lambda i: (0, 0))
        kernel = functools.partial(_fda_delta_kernel, imgs=imgs, h=h, cb=cb,
                                   w_prec=w_prec, c_prec=c_prec)
        return pl.pallas_call(
            kernel,
            out_shape=jax.ShapeDtypeStruct((nc * h, w), jnp.float32),
            grid=(steps,),
            in_specs=[data_spec, data_spec,
                      cspec(fwm), cspec(fhm), cspec(ihm), cspec(iwm)],
            out_specs=data_spec,
            compiler_params=pltpu.CompilerParams(
                dimension_semantics=("parallel",),
                vmem_limit_bytes=int(vmem_limit)),
        )(src2, trg2, fwm, fhm, ihm, iwm)

    # Preferred config first; fall back if pl.Buffered(1) or 3-pass precision
    # is not supported by the installed jax/Mosaic build.
    attempts = [(True, w_prec_default), (False, w_prec_default)]
    if w_prec_default != jax.lax.Precision.HIGHEST:
        attempts.append((False, jax.lax.Precision.HIGHEST))
    last_err = None
    out = None
    for single_buf, prec in attempts:
        try:
            out = run(single_buf, prec)
            jax.block_until_ready(out)
            break
        except Exception as e:           # noqa: BLE001 - surface the last error below
            last_err = e
            out = None
    if out is None:
        raise last_err
    return out.reshape(n, c, h, w)


def fda_reference(src, trg, l=0.1):
    """Pure-JAX mirror of the PyTorch forward (for verification)."""
    fs = jnp.fft.rfft2(src)
    ft = jnp.fft.rfft2(trg)
    amp_s, pha_s = jnp.abs(fs), jnp.angle(fs)
    amp_t = jnp.abs(ft)
    h, wf = amp_t.shape[-2], amp_t.shape[-1]
    b = int(np.floor(min(h, wf) * l))
    amp = amp_s
    if b > 0:
        amp = amp.at[..., 0:b, 0:b].set(amp_t[..., 0:b, 0:b])
        amp = amp.at[..., 0:b, wf - b:wf].set(amp_t[..., 0:b, wf - b:wf])
        amp = amp.at[..., h - b:h, 0:b].set(amp_t[..., h - b:h, 0:b])
        amp = amp.at[..., h - b:h, wf - b:wf].set(amp_t[..., h - b:h, wf - b:wf])
    recon = jnp.cos(pha_s) * amp + 1j * (jnp.sin(pha_s) * amp)
    return jnp.fft.irfft2(recon)


if __name__ == "__main__":
    key = jax.random.PRNGKey(0)
    k1, k2 = jax.random.split(key)
    src = jax.random.uniform(k1, (2, 4, 16, 16), dtype=jnp.float32)
    trg = jax.random.uniform(k2, (2, 4, 16, 16), dtype=jnp.float32)

    # l=0.3 so the low-frequency band b = floor(min(16, 9)*0.3) = 2 > 0 and the
    # kernel path is exercised at this small spatial size.
    out = jax.block_until_ready(fda_forward(src, trg, l=0.3))
    ref = fda_reference(src, trg, l=0.3)
    assert out.shape == ref.shape == (2, 4, 16, 16)
    err = float(jnp.max(jnp.abs(out - ref)))
    assert err < 5e-3, f"default-precision error vs jnp.fft reference: {err}"

    # Full 6-pass precision on every MXU stage should be tight.
    out_hi = jax.block_until_ready(
        fda_forward(src, trg, l=0.3, precision=jax.lax.Precision.HIGHEST))
    err_hi = float(jnp.max(jnp.abs(out_hi - ref)))
    assert err_hi < 1e-3, f"HIGHEST-precision error vs reference: {err_hi}"

    # Non-divisible N*C: nc=3 with 2 images per block -> padded tail block.
    s3 = jax.random.uniform(k1, (3, 1, 16, 16), dtype=jnp.float32)
    t3 = jax.random.uniform(k2, (3, 1, 16, 16), dtype=jnp.float32)
    out3 = jax.block_until_ready(
        fda_forward(s3, t3, l=0.3, precision=jax.lax.Precision.HIGHEST,
                    max_images_per_block=2))
    ref3 = fda_reference(s3, t3, l=0.3)
    err3 = float(jnp.max(jnp.abs(out3 - ref3)))
    assert err3 < 1e-3, f"padded-tail error vs reference: {err3}"

    # Module default l=0.1 gives b=0 at 16x16: exact early-exit path.
    out0 = jax.block_until_ready(fda_forward(src, trg, l=0.1))
    ref0 = fda_reference(src, trg, l=0.1)
    err0 = float(jnp.max(jnp.abs(out0 - ref0)))
    assert err0 < 1e-3, f"b==0 early-exit error vs reference: {err0}"

    print("KERNEL_OK")
</pallas_src>

<mosaic_0001>
module attributes {stable_mosaic.version = 11 : i64} {
  func.func @_fda_delta_kernel(%arg0: i32, %arg1: memref<128x16xf32, #tpu.memory_space<vmem>>, %arg2: memref<128x16xf32, #tpu.memory_space<vmem>>, %arg3: memref<16x8xf32, #tpu.memory_space<vmem>>, %arg4: memref<8x16xf32, #tpu.memory_space<vmem>>, %arg5: memref<16x8xf32, #tpu.memory_space<vmem>>, %arg6: memref<8x16xf32, #tpu.memory_space<vmem>>, %arg7: memref<128x16xf32, #tpu.memory_space<vmem>>) attributes {dimension_semantics = [#tpu.dimension_semantics<parallel>], iteration_bounds = array<i64: 1>, scalar_prefetch = 0 : i64, scratch_operands = 0 : i64, tpu.core_type = #tpu.core_type<tc>, window_params = [{transform_indices = @transform_0, window_bounds = array<i64: 128, 16>}, {transform_indices = @transform_1, window_bounds = array<i64: 128, 16>}, {pipeline_mode = #tpu.pipeline_mode<synchronous>, transform_indices = @transform_2, window_bounds = array<i64: 16, 8>}, {pipeline_mode = #tpu.pipeline_mode<synchronous>, transform_indices = @transform_3, window_bounds = array<i64: 8, 16>}, {pipeline_mode = #tpu.pipeline_mode<synchronous>, transform_indices = @transform_4, window_bounds = array<i64: 16, 8>}, {pipeline_mode = #tpu.pipeline_mode<synchronous>, transform_indices = @transform_5, window_bounds = array<i64: 8, 16>}, {transform_indices = @transform_6, window_bounds = array<i64: 128, 16>}]} {
    %c0 = arith.constant 0 : index
    %c0_0 = arith.constant 0 : index
    %0 = vector.load %arg3[%c0, %c0_0] : memref<16x8xf32, #tpu.memory_space<vmem>>, vector<16x8xf32>
    %c0_1 = arith.constant 0 : index
    %c0_2 = arith.constant 0 : index
    %1 = vector.load %arg1[%c0_1, %c0_2] : memref<128x16xf32, #tpu.memory_space<vmem>>, vector<128x16xf32>
    %cst = arith.constant dense<0.000000e+00> : vector<128x8xf32>
    %2 = tpu.matmul %1, %0, %cst {dimension_numbers = #tpu.dot_dimension_numbers<[1], [0], [0], [1], [0, 0, 1, 1], [], []>, precision = #tpu.contract_precision<fp32>} : vector<128x16xf32>, vector<16x8xf32>, vector<128x8xf32> -> vector<128x8xf32>
    %3 = vector.shape_cast %2 : vector<128x8xf32> to vector<8x16x8xf32>
    %c0_3 = arith.constant 0 : index
    %c0_4 = arith.constant 0 : index
    %4 = vector.load %arg2[%c0_3, %c0_4] : memref<128x16xf32, #tpu.memory_space<vmem>>, vector<128x16xf32>
    %cst_5 = arith.constant dense<0.000000e+00> : vector<128x8xf32>
    %5 = tpu.matmul %4, %0, %cst_5 {dimension_numbers = #tpu.dot_dimension_numbers<[1], [0], [0], [1], [0, 0, 1, 1], [], []>, precision = #tpu.contract_precision<fp32>} : vector<128x16xf32>, vector<16x8xf32>, vector<128x8xf32> -> vector<128x8xf32>
    %6 = vector.shape_cast %5 : vector<128x8xf32> to vector<8x16x8xf32>
    %c0_6 = arith.constant 0 : index
    %c0_7 = arith.constant 0 : index
    %7 = vector.load %arg4[%c0_6, %c0_7] : memref<8x16xf32, #tpu.memory_space<vmem>>, vector<8x16xf32>
    %8 = vector.shape_cast %7 : vector<8x16xf32> to vector<1x8x16xf32>
    %9 = vector.broadcast %8 : vector<1x8x16xf32> to vector<8x8x16xf32>
    "tpu.trace_start"() <{level = 10 : i32, message = "bij,bjk->bik"}> : () -> ()
    %cst_8 = arith.constant dense<0.000000e+00> : vector<8x8x8xf32>
    %10 = tpu.matmul %9, %3, %cst_8 {dimension_numbers = #tpu.dot_dimension_numbers<[2], [1], [1], [2], [0, 0, 0, 1, 1, 2], [0], [0]>, precision = #tpu.contract_precision<fp32>} : vector<8x8x16xf32>, vector<8x16x8xf32>, vector<8x8x8xf32> -> vector<8x8x8xf32>
    %cst_9 = arith.constant dense<0.000000e+00> : vector<8x8x8xf32>
    %11 = tpu.matmul %9, %6, %cst_9 {dimension_numbers = #tpu.dot_dimension_numbers<[2], [1], [1], [2], [0, 0, 0, 1, 1, 2], [0], [0]>, precision = #tpu.contract_precision<fp32>} : vector<8x8x16xf32>, vector<8x16x8xf32>, vector<8x8x8xf32> -> vector<8x8x8xf32>
    "tpu.trace_stop"() : () -> ()
    %12 = vector.extract_strided_slice %10 {offsets = [0, 0, 0], sizes = [8, 4, 4], strides = [1, 1, 1]} : vector<8x8x8xf32> to vector<8x4x4xf32>
    %13 = vector.extract_strided_slice %10 {offsets = [0, 4, 4], sizes = [8, 4, 4], strides = [1, 1, 1]} : vector<8x8x8xf32> to vector<8x4x4xf32>
    %14 = arith.subf %12, %13 : vector<8x4x4xf32>
    %15 = vector.extract_strided_slice %10 {offsets = [0, 0, 4], sizes = [8, 4, 4], strides = [1, 1, 1]} : vector<8x8x8xf32> to vector<8x4x4xf32>
    %16 = vector.extract_strided_slice %10 {offsets = [0, 4, 0], sizes = [8, 4, 4], strides = [1, 1, 1]} : vector<8x8x8xf32> to vector<8x4x4xf32>
    %17 = arith.addf %15, %16 : vector<8x4x4xf32>
    %18 = vector.extract_strided_slice %11 {offsets = [0, 0, 0], sizes = [8, 4, 4], strides = [1, 1, 1]} : vector<8x8x8xf32> to vector<8x4x4xf32>
    %19 = vector.extract_strided_slice %11 {offsets = [0, 4, 4], sizes = [8, 4, 4], strides = [1, 1, 1]} : vector<8x8x8xf32> to vector<8x4x4xf32>
    %20 = arith.subf %18, %19 : vector<8x4x4xf32>
    %21 = vector.extract_strided_slice %11 {offsets = [0, 0, 4], sizes = [8, 4, 4], strides = [1, 1, 1]} : vector<8x8x8xf32> to vector<8x4x4xf32>
    %22 = vector.extract_strided_slice %11 {offsets = [0, 4, 0], sizes = [8, 4, 4], strides = [1, 1, 1]} : vector<8x8x8xf32> to vector<8x4x4xf32>
    %23 = arith.addf %21, %22 : vector<8x4x4xf32>
    %24 = arith.mulf %14, %14 : vector<8x4x4xf32>
    %25 = arith.mulf %17, %17 : vector<8x4x4xf32>
    %26 = arith.addf %24, %25 : vector<8x4x4xf32>
    %27 = arith.mulf %20, %20 : vector<8x4x4xf32>
    %28 = arith.mulf %23, %23 : vector<8x4x4xf32>
    %29 = arith.addf %27, %28 : vector<8x4x4xf32>
    %30 = math.sqrt %29 : vector<8x4x4xf32>
    %cst_10 = arith.constant 0.000000e+00 : f32
    %31 = vector.broadcast %cst_10 : f32 to vector<8x4x4xf32>
    %32 = arith.cmpf ogt, %26, %31 : vector<8x4x4xf32>
    %33 = math.rsqrt %26 : vector<8x4x4xf32>
    %cst_11 = arith.constant 0.000000e+00 : f32
    %34 = vector.broadcast %cst_11 : f32 to vector<8x4x4xf32>
    %35 = arith.select %32, %33, %34 : vector<8x4x4xi1>, vector<8x4x4xf32>
    %36 = arith.mulf %30, %35 : vector<8x4x4xf32>
    %cst_12 = arith.constant 1.000000e+00 : f32
    %37 = vector.broadcast %cst_12 : f32 to vector<8x4x4xf32>
    %38 = arith.subf %36, %37 : vector<8x4x4xf32>
    %39 = arith.mulf %38, %14 : vector<8x4x4xf32>
    %40 = arith.select %32, %39, %30 : vector<8x4x4xi1>, vector<8x4x4xf32>
    %41 = arith.mulf %38, %17 : vector<8x4x4xf32>
    %cst_13 = arith.constant 0.000000e+00 : f32
    %42 = vector.broadcast %cst_13 : f32 to vector<8x4x4xf32>
    %43 = arith.select %32, %41, %42 : vector<8x4x4xi1>, vector<8x4x4xf32>
    %44 = tpu.concatenate %40, %43 in 2 : vector<8x4x4xf32>, vector<8x4x4xf32> -> vector<8x4x8xf32>
    %cst_14 = arith.constant 0.000000e+00 : f32
    %45 = vector.broadcast %cst_14 : f32 to vector<8x4x4xf32>
    %46 = arith.subf %45, %43 : vector<8x4x4xf32>
    %47 = tpu.concatenate %46, %40 in 2 : vector<8x4x4xf32>, vector<8x4x4xf32> -> vector<8x4x8xf32>
    %48 = tpu.concatenate %44, %47 in 1 : vector<8x4x8xf32>, vector<8x4x8xf32> -> vector<8x8x8xf32>
    %c0_15 = arith.constant 0 : index
    %c0_16 = arith.constant 0 : index
    %49 = vector.load %arg5[%c0_15, %c0_16] : memref<16x8xf32, #tpu.memory_space<vmem>>, vector<16x8xf32>
    %50 = vector.shape_cast %49 : vector<16x8xf32> to vector<1x16x8xf32>
    %51 = vector.broadcast %50 : vector<1x16x8xf32> to vector<8x16x8xf32>
    "tpu.trace_start"() <{level = 10 : i32, message = "bij,bjk->bik"}> : () -> ()
    %cst_17 = arith.constant dense<0.000000e+00> : vector<8x16x8xf32>
    %52 = tpu.matmul %51, %48, %cst_17 {dimension_numbers = #tpu.dot_dimension_numbers<[2], [1], [1], [2], [0, 0, 0, 1, 1, 2], [0], [0]>, precision = #tpu.contract_precision<fp32>} : vector<8x16x8xf32>, vector<8x8x8xf32>, vector<8x16x8xf32> -> vector<8x16x8xf32>
    "tpu.trace_stop"() : () -> ()
    %53 = vector.shape_cast %52 : vector<8x16x8xf32> to vector<128x8xf32>
    %c0_18 = arith.constant 0 : index
    %c0_19 = arith.constant 0 : index
    %54 = vector.load %arg6[%c0_18, %c0_19] : memref<8x16xf32, #tpu.memory_space<vmem>>, vector<8x16xf32>
    %cst_20 = arith.constant dense<0.000000e+00> : vector<128x16xf32>
    %55 = tpu.matmul %53, %54, %cst_20 {dimension_numbers = #tpu.dot_dimension_numbers<[1], [0], [0], [1], [0, 0, 1, 1], [], []>, precision = #tpu.contract_precision<fp32>} : vector<128x8xf32>, vector<8x16xf32>, vector<128x16xf32> -> vector<128x16xf32>
    %c0_21 = arith.constant 0 : index
    %c0_22 = arith.constant 0 : index
    %56 = vector.load %arg1[%c0_21, %c0_22] : memref<128x16xf32, #tpu.memory_space<vmem>>, vector<128x16xf32>
    %57 = arith.addf %56, %55 : vector<128x16xf32>
    %c0_23 = arith.constant 0 : index
    %c0_24 = arith.constant 0 : index
    %58 = vector.load %arg7[%c0_23, %c0_24] : memref<128x16xf32, #tpu.memory_space<vmem>>, vector<128x16xf32>
    tpu.vector_store %arg7[%c0_23, %c0_24], %57 {strides = array<i32>} : memref<128x16xf32, #tpu.memory_space<vmem>>, vector<128x16xf32>,
    return
  }
  func.func @transform_0(%arg0: i32) -> (i32, i32) {
    %c0_i32 = arith.constant 0 : i32
    %c0_i32_0 = arith.constant 0 : i32
    return %arg0, %c0_i32 : i32, i32
  }
  func.func @transform_1(%arg0: i32) -> (i32, i32) {
    %c0_i32 = arith.constant 0 : i32
    %c0_i32_0 = arith.constant 0 : i32
    return %arg0, %c0_i32 : i32, i32
  }
  func.func @transform_2(%arg0: i32) -> (i32, i32) {
    %c0_i32 = arith.constant 0 : i32
    %c0_i32_0 = arith.constant 0 : i32
    %c0_i32_1 = arith.constant 0 : i32
    return %c0_i32, %c0_i32_0 : i32, i32
  }
  func.func @transform_3(%arg0: i32) -> (i32, i32) {
    %c0_i32 = arith.constant 0 : i32
    %c0_i32_0 = arith.constant 0 : i32
    %c0_i32_1 = arith.constant 0 : i32
    return %c0_i32, %c0_i32_0 : i32, i32
  }
  func.func @transform_4(%arg0: i32) -> (i32, i32) {
    %c0_i32 = arith.constant 0 : i32
    %c0_i32_0 = arith.constant 0 : i32
    %c0_i32_1 = arith.constant 0 : i32
    return %c0_i32, %c0_i32_0 : i32, i32
  }
  func.func @transform_5(%arg0: i32) -> (i32, i32) {
    %c0_i32 = arith.constant 0 : i32
    %c0_i32_0 = arith.constant 0 : i32
    %c0_i32_1 = arith.constant 0 : i32
    return %c0_i32, %c0_i32_0 : i32, i32
  }
  func.func @transform_6(%arg0: i32) -> (i32, i32) {
    %c0_i32 = arith.constant 0 : i32
    %c0_i32_0 = arith.constant 0 : i32
    return %arg0, %c0_i32 : i32, i32
  }
}

</mosaic_0001>

<bundles_post_ra>
// kernel: tpu_custom_call.1
= control target key start
LH: loop header
LB: loop body
LE: loop exit
PB: predicated region body
PF: predicated region fallthrough
CT: control target
= control target key end

     0   :  { %11 = vsyncpa [#allocation3], 0  ;;  %s20920_s0 = inlined_call_operand.hbm [shape: f32[128,16], index: 0, kind: input, shape index: {}]   ;;  %s20921_s1 = inlined_call_operand.hbm [shape: f32[128,16], index: 1, kind: input, shape index: {}]   ;;  %s20922_s2 = inlined_call_operand.hbm [shape: f32[16,8], index: 2, kind: input, shape index: {}]   ;;  %s20923_s3 = inlined_call_operand.hbm [shape: f32[8,16], index: 3, kind: input, shape index: {}]   ;;  %s20924_s4 = inlined_call_operand.hbm [shape: f32[16,8], index: 4, kind: input, shape index: {}]   ;;  %s20925_s5 = inlined_call_operand.hbm [shape: f32[8,16], index: 5, kind: input, shape index: {}]   ;;  %s20926_s6 = inlined_call_operand.hbm [shape: f32[128,16], index: 6, kind: output, shape index: {}]  }
   0x1   :  { %12 = vsyncpa [#allocation6], 0 }
   0x2   :  { %13 = vsyncpa [#allocation9], 0 }
   0x3   :  { %14 = vsyncpa [#allocation12], 0 }
   0x4   :  { %15 = vsyncpa [#allocation4], 0  ;;  %s18660_s21 = smov [#allocation5]   ;;  %s18661_s23 = smov [#allocation8]  }
   0x5   :  { %s33_s22 = sshll.u32 %s18660_s21, 4  ;;  %s58_s24 = sshll.u32 %s18661_s23, 4  ;;  %s34_s22 = int_to_ptr.vmem [resolvable:$true] %s33_s22  ;;  %s59_s24 = int_to_ptr.vmem [resolvable:$true] %s58_s24 }
   0x6   :  { %s18496_s27 = scalar_lea.hbm %s20921_s1, 2048 }
   0x7   :  { %p18497_p0 = scmp.ne.s32.totalorder %s20921_s1, %s18496_s27  ;;  %p18500_p1 = scmp.lt.u32.totalorder %s18496_s27, %s20921_s1 }
   0x9   :  { %p18502_p2 = pnand %p18500_p1, %p18497_p0 }
   0xb   :  { %18505 = shalt.err (!%p18502_p2)
}
   0xc   :  { %s18506_s8 = scalar_lea.vmem %s34_s22, 2048  ;;  %p18511_p4 = scmp.lt.s32.totalorder %s34_s22, %s34_s22 }
   0xd   :  { %p18507_p3 = scmp.ne.s32.totalorder %s34_s22, %s18506_s8  ;;  %p18512_p5 = scmp.lt.s32.totalorder %s18506_s8, %s18506_s8 }
   0xf   :  { %p18513_p6 = por %p18512_p5, %p18511_p4 }
  0x11   :  { %p18514_p7 = pnand %p18513_p6, %p18507_p3 }
  0x13   :  { %18517 = shalt.err (!%p18514_p7)
}
  0x14   :  { %s18662_s9 = smov 128   ;;  %s18663_s10 = smov 8  }
  0x15   :  { %39 = dma.hbm_to_vmem [thread:$0]  %s20921_s1, 2048, %s34_s22, [#allocation6], %s18662_s9, %s18662_s9, %s18663_s10  }
  0x16   :  { %s18518_s15 = scalar_lea.hbm %s20923_s3, 128 }
  0x17   :  { %p18519_p8 = scmp.ne.s32.totalorder %s20923_s3, %s18518_s15  ;;  %p18522_p9 = scmp.lt.u32.totalorder %s18518_s15, %s20923_s3 }
  0x19   :  { %p18524_p10 = pnand %p18522_p9, %p18519_p8 }
  0x1b   :  { %18527 = shalt.err (!%p18524_p10)
}
  0x1c   :  { %s18528_s20 = scalar_lea.vmem %s59_s24, 128  ;;  %p18533_p12 = scmp.lt.s32.totalorder %s59_s24, %s59_s24 }
  0x1d   :  { %p18529_p11 = scmp.ne.s32.totalorder %s59_s24, %s18528_s20  ;;  %p18534_p13 = scmp.lt.s32.totalorder %s18528_s20, %s18528_s20 }
  0x1f   :  { %p18535_p0 = por %p18534_p13, %p18533_p12 }
  0x21   :  { %p18536_p1 = pnand %p18535_p0, %p18529_p11 }
  0x23   :  { %18539 = shalt.err (!%p18536_p1)
}
  0x24   :  { %61 = dma.hbm_to_vmem [thread:$0]  %s20923_s3, 128, %s59_s24, [#allocation9]  }
  0x25   :  { %s18664_s22 = smov [#allocation2]   ;;  %s18665_s25 = smov [#allocation7]  }
  0x26   :  { %s21_s23 = sshll.u32 %s18664_s22, 4  ;;  %s45_s26 = sshll.u32 %s18665_s25, 4  ;;  %s22_s23 = int_to_ptr.vmem [resolvable:$true] %s21_s23  ;;  %s18736_s26 = int_to_ptr.vmem [resolvable:$true] %s45_s26 }
  0x27   :  { %s18540_s29 = scalar_lea.hbm %s20920_s0, 2048 }
  0x28   :  { %p18541_p2 = scmp.ne.s32.totalorder %s20920_s0, %s18540_s29  ;;  %p18544_p3 = scmp.lt.u32.totalorder %s18540_s29, %s20920_s0 }
  0x2a   :  { %p18546_p4 = pnand %p18544_p3, %p18541_p2 }
  0x2c   :  { %18549 = shalt.err (!%p18546_p4)
}
  0x2d   :  { %s18550_s3 = scalar_lea.vmem %s22_s23, 2048  ;;  %p18555_p6 = scmp.lt.s32.totalorder %s22_s23, %s22_s23 }
  0x2e   :  { %p18551_p5 = scmp.ne.s32.totalorder %s22_s23, %s18550_s3  ;;  %p18556_p7 = scmp.lt.s32.totalorder %s18550_s3, %s18550_s3 }
  0x30   :  { %p18557_p8 = por %p18556_p7, %p18555_p6 }
  0x32   :  { %p18558_p9 = pnand %p18557_p8, %p18551_p5 }
  0x34   :  { %18561 = shalt.err (!%p18558_p9)
}
  0x35   :  { %27 = dma.hbm_to_vmem [thread:$0]  %s20920_s0, 2048, %s22_s23, [#allocation3], %s18662_s9, %s18662_s9, %s18663_s10  }
  0x36   :  { %s18562_s15 = scalar_lea.hbm %s20922_s2, 256 }
  0x37   :  { %p18563_p10 = scmp.ne.s32.totalorder %s20922_s2, %s18562_s15  ;;  %p18566_p11 = scmp.lt.u32.totalorder %s18562_s15, %s20922_s2 }
  0x39   :  { %p18568_p12 = pnand %p18566_p11, %p18563_p10 }
  0x3b   :  { %18571 = shalt.err (!%p18568_p12)
}
  0x3c   :  { %s18572_s20 = scalar_lea.vmem %s18736_s26, 256  ;;  %p18577_p0 = scmp.lt.s32.totalorder %s18736_s26, %s18736_s26 }
  0x3d   :  { %p18573_p13 = scmp.ne.s32.totalorder %s18736_s26, %s18572_s20  ;;  %p18578_p1 = scmp.lt.s32.totalorder %s18572_s20, %s18572_s20 }
  0x3f   :  { %p18579_p2 = por %p18578_p1, %p18577_p0 }
  0x41   :  { %p18580_p3 = pnand %p18579_p2, %p18573_p13 }
  0x43   :  { %18583 = shalt.err (!%p18580_p3)
}
  0x44   :  { %51 = dma.hbm_to_vmem [thread:$0]  %s20922_s2, 256, %s18736_s26, [#allocation6], %s18662_s9, %s18662_s9, %s18663_s10  }
  0x45   :  { %s18666_s21 = smov [#allocation10]   ;;  %s18667_s23 = smov [#allocation11]  }
  0x46   :  { %s67_s22 = sshll.u32 %s18666_s21, 4  ;;  %s80_s25 = sshll.u32 %s18667_s23, 4  ;;  %s68_s22 = int_to_ptr.vmem [resolvable:$true] %s67_s22  ;;  %s81_s25 = int_to_ptr.vmem [resolvable:$true] %s80_s25 }
  0x47   :  { %s18584_s29 = scalar_lea.hbm %s20924_s4, 256 }
  0x48   :  { %p18585_p4 = scmp.ne.s32.totalorder %s20924_s4, %s18584_s29  ;;  %p18588_p5 = scmp.lt.u32.totalorder %s18584_s29, %s20924_s4 }
  0x4a   :  { %p18590_p6 = pnand %p18588_p5, %p18585_p4 }
  0x4c   :  { %18593 = shalt.err (!%p18590_p6)
}
  0x4d   :  { %s18594_s2 = scalar_lea.vmem %s68_s22, 256  ;;  %p18599_p8 = scmp.lt.s32.totalorder %s68_s22, %s68_s22 }
  0x4e   :  { %p18595_p7 = scmp.ne.s32.totalorder %s68_s22, %s18594_s2  ;;  %p18600_p9 = scmp.lt.s32.totalorder %s18594_s2, %s18594_s2 }
  0x50   :  { %p18601_p10 = por %p18600_p9, %p18599_p8 }
  0x52   :  { %p18602_p11 = pnand %p18601_p10, %p18595_p7 }
  0x54   :  { %18605 = shalt.err (!%p18602_p11)
}
  0x55   :  { %73 = dma.hbm_to_vmem [thread:$0]  %s20924_s4, 256, %s68_s22, [#allocation9], %s18662_s9, %s18662_s9, %s18663_s10  }
  0x56   :  { %s18606_s13 = scalar_lea.hbm %s20925_s5, 128 }
  0x57   :  { %p18607_p12 = scmp.ne.s32.totalorder %s20925_s5, %s18606_s13  ;;  %p18610_p13 = scmp.lt.u32.totalorder %s18606_s13, %s20925_s5 }
  0x59   :  { %p18612_p0 = pnand %p18610_p13, %p18607_p12 }
  0x5b   :  { %18615 = shalt.err (!%p18612_p0)
}
  0x5c   :  { %s18616_s18 = scalar_lea.vmem %s81_s25, 128  ;;  %p18621_p2 = scmp.lt.s32.totalorder %s81_s25, %s81_s25 }
  0x5d   :  { %p18617_p1 = scmp.ne.s32.totalorder %s81_s25, %s18616_s18  ;;  %p18622_p3 = scmp.lt.s32.totalorder %s18616_s18, %s18616_s18 }
  0x5f   :  { %p18623_p4 = por %p18622_p3, %p18621_p2 }
  0x61   :  { %p18624_p5 = pnand %p18623_p4, %p18617_p1 }
  0x63   :  { %18627 = shalt.err (!%p18624_p5)
}
  0x64   :  { %83 = dma.hbm_to_vmem [thread:$0]  %s20925_s5, 128, %s81_s25, [#allocation12]  }
  0x65   :  { %18650 = dma.done.wait [#allocation3], 2048  }
  0x66   :  { %18651 = vsyncadd [#allocation3], 4294965248 }
  0x67   :  { %18652 = dma.done.wait [#allocation6], 2304  }
  0x68   :  { %18653 = vsyncadd [#allocation6], 4294964992 }
  0x69   :  { %18654 = dma.done.wait [#allocation9], 384  }
  0x6a   :  { %18655 = vsyncadd [#allocation9], 4294966912 }
  0x6b   :  { %18656 = dma.done.wait [#allocation12], 128  }
  0x6c   :  { %18657 = vsyncadd [#allocation12], 4294967168  ;;  %vm120_vm0 = vcmask 130048   ;;  %v18800_v0 = vld [vmem:[#allocation7] sm:$0xff]  ;;  %v18802_v1 = vld [vmem:[#allocation7 + $0x8] sm:$0xff]  ;;  %vm18669_vm1 = vmmov 0  }
  0x6d   :  { %v104_v2 = vld [vmem:[#allocation2] sm:$0xff]  ;;  %v170_v3 = vand.u32 4294901760, %v18800_v0  ;;  %v173_v4 = vand.u32 4294901760, %v18802_v1  ;;  %v105_v6 = vld [vmem:[#allocation2 + $0x8] sm:$0xff]  ;;  %v106_v7 = vld [vmem:[#allocation2 + $0x10] sm:$0xff]  ;;  %s18671_s5 = smov 4  }
  0x6e   :  { %v122_v5 = vsel %vm120_vm0, %v104_v2, 0  ;;  %v107_v8 = vld [vmem:[#allocation2 + $0x18] sm:$0xff]  ;;  %v125_v10 = vsel %vm120_vm0, %v105_v6, 0  ;;  %v128_v11 = vsel %vm120_vm0, %v106_v7, 0  ;;  %v108_v13 = vld [vmem:[#allocation2 + $0x20] sm:$0xff]  ;;  %v109_v14 = vld [vmem:[#allocation2 + $0x28] sm:$0xff] }
  0x6f   :  { %v18807_v9 = vand.u32 4294901760, %v122_v5  ;;  %v131_v12 = vsel %vm120_vm0, %v107_v8, 0  ;;  %v18816_v15 = vpack.c.bf16 %v173_v4, %v170_v3  ;;  %v18818_v16 = vand.u32 4294901760, %v125_v10  ;;  %v110_v19 = vld [vmem:[#allocation2 + $0x30] sm:$0xff]  ;;  %v111_v20 = vld [vmem:[#allocation2 + $0x38] sm:$0xff]  ;;  %v112_v45 = vld [vmem:[#allocation2 + $0x40] sm:$0xff] }
  0x70   :  { %v18820_v17 = vand.u32 4294901760, %v128_v11  ;;  %v18822_v18 = vand.u32 4294901760, %v131_v12  ;;  %v134_v22 = vsel %vm120_vm0, %v108_v13, 0  ;;  %v137_v23 = vsel %vm120_vm0, %v109_v14, 0  ;;  %v113_v50 = vld [vmem:[#allocation2 + $0x48] sm:$0xff]  ;;  %v114_v58 = vld [vmem:[#allocation2 + $0x50] sm:$0xff] }
  0x71   :  { %v18825_v21 = vsub.f32 %v122_v5, %v18807_v9  ;;  %v140_v24 = vsel %vm120_vm0, %v110_v19, 0  ;;  %17647 = vmatprep.subr.bf16.mxu0 %v18816_v15  ;;  %17635 = vmatprep.subr.bf16.mxu1 %v18816_v15  ;;  %v18833_v25 = vsub.f32 %v125_v10, %v18818_v16  ;;  %v18841_v28 = vand.u32 4294901760, %v134_v22  ;;  %v115_v63 = vld [vmem:[#allocation2 + $0x58] sm:$0xff]  ;;  %s18672_s20 = smov 124   ;;  %s18673_s0 = smov [#allocation13]  }
  0x72   :  { %v18836_v26 = vsub.f32 %v128_v11, %v18820_v17  ;;  %v18839_v27 = vsub.f32 %v131_v12, %v18822_v18  ;;  %17649 = vmatpush3.bf16.msra.mxu0 %v18816_v15  ;;  %17637 = vmatpush3.bf16.msra.mxu1 %v18816_v15  ;;  %v18846_v30 = vand.u32 4294901760, %v137_v23  ;;  %v18848_v31 = vand.u32 4294901760, %v140_v24  ;;  %v117_v12 = vld [vmem:[#allocation2 + $0x68] sm:$0xff]  ;;  %s15457_s1 = sshll.u32 %s18673_s0, 4  ;;  %s15458_s1 = int_to_ptr.vmem [resolvable:$true] %s15457_s1 }
  0x73   :  { %v238_v29 = vand.u32 4294901760, %v18825_v21  ;;  %v143_v32 = vsel %vm120_vm0, %v111_v20, 0  ;;  %v248_v33 = vand.u32 4294901760, %v18833_v25  ;;  %v18855_v36 = vsub.f32 %v134_v22, %v18841_v28  ;;  %s18628_s21 = scalar_lea.vmem %s15458_s1, 2048  ;;  %p18633_p7 = scmp.lt.s32.totalorder %s15458_s1, %s15458_s1 }
  0x74   :  { %v258_v34 = vand.u32 4294901760, %v18836_v26  ;;  %v268_v35 = vand.u32 4294901760, %v18839_v27  ;;  %v18859_v38 = vsub.f32 %v137_v23, %v18846_v30  ;;  %v18862_v39 = vsub.f32 %v140_v24, %v18848_v31  ;;  %p18629_p6 = scmp.ne.s32.totalorder %s15458_s1, %s18628_s21  ;;  %p18634_p8 = scmp.lt.s32.totalorder %s18628_s21, %s18628_s21 }
  0x75   :  { %16318 = vmatprep.mubr.f32.mxu0 %v238_v29  ;;  %v239_v37 = vsub.f32 %v18825_v21, %v238_v29  ;;  %v18864_v40 = vand.u32 4294901760, %v143_v32  ;;  %v249_v41 = vsub.f32 %v18833_v25, %v248_v33  ;;  %v278_v43 = vand.u32 4294901760, %v18855_v36 }
  0x76   :  { %16319 = vmatmul.mubr.f32.vlgmr.msra.gmra.mrb[0].mxu0 %v248_v33  ;;  %v259_v42 = vsub.f32 %v18836_v26, %v258_v34  ;;  %v269_v44 = vsub.f32 %v18839_v27, %v268_v35  ;;  %v288_v47 = vand.u32 4294901760, %v18859_v38  ;;  %v298_v48 = vand.u32 4294901760, %v18862_v39  ;;  %p18635_p9 = por %p18634_p8, %p18633_p7 }
  0x77   :  { %v240_v46 = vand.u32 4294901760, %v239_v37  ;;  %16321 = vmatprep.mubr.f32.mxu0 %v258_v34  ;;  %v18873_v49 = vsub.f32 %v143_v32, %v18864_v40  ;;  %v250_v51 = vand.u32 4294901760, %v249_v41  ;;  %v279_v53 = vsub.f32 %v18855_v36, %v278_v43  ;;  %v118_v34 = vld [vmem:[#allocation2 + $0x70] sm:$0xff] }
  0x78   :  { %v260_v52 = vand.u32 4294901760, %v259_v42  ;;  %v289_v54 = vsub.f32 %v18859_v38, %v288_v47  ;;  %v299_v56 = vsub.f32 %v18862_v39, %v298_v48  ;;  %v146_v57 = vsel %vm120_vm0, %v112_v45, 0  ;;  %p18636_p10 = pnand %p18635_p9, %p18629_p6 }
  0x79   :  { %16234 = vmatprep.mubr.f32.mxu1 %v240_v46  ;;  %v308_v55 = vand.u32 4294901760, %v18873_v49  ;;  %v270_v59 = vand.u32 4294901760, %v269_v44  ;;  %v18880_v60 = vand.u32 4294901760, %v146_v57  ;;  %v149_v61 = vsel %vm120_vm0, %v113_v50, 0 }
  0x7a   :  { %16235 = vmatmul.mubr.f32.vlgmr.msra.gmra.mrb[0].mxu1 %v250_v51  ;;  %16322 = vmatmul.mubr.f32.gmra.mrb[2].mxu0 %v268_v35  ;;  %v18886_v62 = vsub.f32 %v18800_v0, %v170_v3  ;;  %v280_v2 = vand.u32 4294901760, %v279_v53  ;;  %v290_v5 = vand.u32 4294901760, %v289_v54  ;;  %v300_v6 = vand.u32 4294901760, %v299_v56  ;;  %v116_v3 = vld [vmem:[#allocation2 + $0x60] sm:$0xff] }
  0x7b   :  { %16237 = vmatprep.mubr.f32.mxu1 %v260_v52  ;;  %16324 = vmatprep.mubr.f32.mxu0 %v278_v43  ;;  %v18888_v7 = vand.u32 4294901760, %v149_v61  ;;  %v18891_v8 = vsub.f32 %v146_v57, %v18880_v60  ;;  %v405_v11 = vsub.f32 %v18802_v1, %v173_v4  ;;  %v152_v0 = vsel %vm120_vm0, %v114_v58, 0 }
  0x7c   :  { %v399_v10 = vand.u32 4294901760, %v18886_v62  ;;  %v309_v13 = vsub.f32 %v18873_v49, %v308_v55  ;;  %v18902_v19 = vand.u32 4294901760, %v152_v0  ;;  %v155_v20 = vsel %vm120_vm0, %v115_v63, 0 }
  0x7d   :  { %v18900_v14 = vsub.f32 %v149_v61, %v18888_v7  ;;  %v318_v22 = vand.u32 4294901760, %v18891_v8  ;;  %v406_v1 = vand.u32 4294901760, %v405_v11  ;;  %v18907_v4 = vand.u32 4294901760, %v155_v20 }
  0x7e   :  { %16238 = vmatmul.mubr.f32.gmra.mrb[2].mxu1 %v270_v59  ;;  %16325 = vmatmul.mubr.f32.gmra.mrb[4].mxu0 %v288_v47  ;;  %v400_v23 = vsub.f32 %v18886_v62, %v399_v10  ;;  %v18911_v29 = vsub.f32 %v152_v0, %v18902_v19  ;;  %v158_v32 = vsel %vm120_vm0, %v116_v3, 0  ;;  %v161_v33 = vsel %vm120_vm0, %v117_v12, 0  ;;  %v119_v47 = vld [vmem:[#allocation2 + $0x78] sm:$0xff] }
  0x7f   :  { %16240 = vmatprep.mubr.f32.mxu1 %v280_v2  ;;  %16327 = vmatprep.mubr.f32.mxu0 %v298_v48  ;;  %v328_v24 = vand.u32 4294901760, %v18900_v14  ;;  %v407_v37 = vsub.f32 %v405_v11, %v406_v1  ;;  %v319_v41 = vsub.f32 %v18891_v8, %v318_v22  ;;  %v18917_v42 = vsub.f32 %v155_v20, %v18907_v4 }
  0x80   :  { %v401_v35 = vand.u32 4294901760, %v400_v23  ;;  %v338_v43 = vand.u32 4294901760, %v18911_v29  ;;  %v18921_v45 = vand.u32 4294901760, %v158_v32  ;;  %v18923_v46 = vand.u32 4294901760, %v161_v33 }
  0x81   :  { %v329_v44 = vsub.f32 %v18900_v14, %v328_v24  ;;  %v310_v48 = vand.u32 4294901760, %v309_v13  ;;  %v408_v50 = vand.u32 4294901760, %v407_v37  ;;  %v348_v51 = vand.u32 4294901760, %v18917_v42  ;;  %v1273_v37 = vld [vmem:[#allocation5] sm:$0xff] }
  0x82   :  { %16241 = vmatmul.mubr.f32.gmra.mrb[4].mxu1 %v290_v5  ;;  %16328 = vmatmul.mubr.f32.gmra.mrb[6].mxu0 %v308_v55  ;;  %v164_v52 = vsel %vm120_vm0, %v118_v34, 0  ;;  %v320_v53 = vand.u32 4294901760, %v319_v41  ;;  %v339_v54 = vsub.f32 %v18911_v29, %v338_v43  ;;  %v18929_v56 = vsub.f32 %v158_v32, %v18921_v45 }
  0x83   :  { %16243 = vmatprep.mubr.f32.mxu1 %v300_v6  ;;  %16330 = vmatprep.mubr.f32.mxu0 %v318_v22  ;;  %v18932_v57 = vsub.f32 %v161_v33, %v18923_v46  ;;  %v18934_v58 = vpack.c.bf16 %v408_v50, %v401_v35  ;;  %v18936_v55 = vand.u32 4294901760, %v164_v52  ;;  %v167_v59 = vsel %vm120_vm0, %v119_v47, 0 }
  0x84   :  { %v330_v61 = vand.u32 4294901760, %v329_v44  ;;  %v358_v63 = vand.u32 4294901760, %v18929_v56  ;;  %v349_v2 = vsub.f32 %v18917_v42, %v348_v51  ;;  %v18941_v5 = vand.u32 4294901760, %v167_v59 }
  0x85   :  { %v368_v6 = vand.u32 4294901760, %v18932_v57  ;;  %v18945_v0 = vsub.f32 %v164_v52, %v18936_v55  ;;  %v18947_v3 = vpack.c.bf16 %v406_v1, %v399_v10  ;;  %v18950_v12 = vpack.c.bf16 %v405_v11, %v18886_v62  ;;  %17639 = vmatprep.subr.bf16.mxu1 %v18934_v58  ;;  %v1282_v52 = vld [vmem:[#allocation5 + $0x48] sm:$0xff] }
  0x86   :  { %16244 = vmatmul.mubr.f32.gmra.mrb[6].mxu1 %v310_v48  ;;  %16331 = vmatmul.mubr.f32.gmra.mrb[8].mxu0 %v328_v24  ;;  %v340_v13 = vand.u32 4294901760, %v339_v54  ;;  %v359_v20 = vsub.f32 %v18929_v56, %v358_v63  ;;  %v18955_v22 = vsub.f32 %v167_v59, %v18941_v5  ;;  %v350_v62 = vand.u32 4294901760, %v349_v2 }
  0x87   :  { %16246 = vmatprep.mubr.f32.mxu1 %v320_v53  ;;  %17641 = vmatpush3.bf16.msra.mxu1 %v18934_v58  ;;  %v378_v23 = vand.u32 4294901760, %v18945_v0  ;;  %v369_v10 = vsub.f32 %v18932_v57, %v368_v6  ;;  %vm10345_vm8 = vcmask 64512   ;;  %vm10253_vm15 = vcmask 31744  }
  0x88   :  { %16333 = vmatprep.mubr.f32.mxu0 %v338_v43  ;;  %17651 = vmatprep.subr.bf16.mxu0 %v18947_v3  ;;  %v388_v11 = vand.u32 4294901760, %v18955_v22  ;;  %v360_v1 = vand.u32 4294901760, %v359_v20  ;;  %v1281_v43 = vld [vmem:[#allocation5 + $0x40] sm:$0xff]  ;;  %v1284_v20 = vld [vmem:[#allocation5 + $0x58] sm:$0xff] }
  0x89   :  { %17643 = vmatprep.subr.bf16.mxu1 %v18950_v12  ;;  %v379_v24 = vsub.f32 %v18945_v0, %v378_v23  ;;  %17653 = vmatpush3.bf16.msra.mxu0 %v18947_v3  ;;  %v370_v32 = vand.u32 4294901760, %v369_v10 }
  0x8a   :  { %16247 = vmatmul.mubr.f32.gmra.mrb[8].mxu1 %v330_v61  ;;  %16334 = vmatmul.mubr.f32.gmra.mrb[10].mxu0 %v348_v51  ;;  %v389_v33 = vsub.f32 %v18955_v22, %v388_v11 }
  0x8b   :  { %16249 = vmatprep.mubr.f32.mxu1 %v340_v13  ;;  %16336 = vmatprep.mubr.f32.mxu0 %v358_v63  ;;  %v380_v34 = vand.u32 4294901760, %v379_v24 }
  0x8c   :  { %17655 = vmatprep.subr.bf16.mxu0 %v18816_v15  ;;  %v390_v35 = vand.u32 4294901760, %v389_v33 }
  0x8e   :  { %16250 = vmatmul.mubr.f32.gmra.mrb[10].mxu1 %v350_v62  ;;  %16337 = vmatmul.mubr.f32.gmra.mrb[12].mxu0 %v368_v6 }
  0x8f   :  { %16252 = vmatprep.mubr.f32.mxu1 %v360_v1  ;;  %16339 = vmatprep.mubr.f32.mxu0 %v378_v23 }
  0x92   :  { %16253 = vmatmul.mubr.f32.gmra.mrb[12].mxu1 %v370_v32  ;;  %16340 = vmatmul.mubr.f32.gmra.mrb[14].mxu0 %v388_v11 }
  0x93   :  { %16255 = vmatprep.mubr.f32.mxu1 %v380_v34  ;;  %16346 = vmatprep.mubr.f32.mxu0 %v18807_v9 }
  0x96   :  { %16256 = vmatmul.mubr.f32.gmra.mrb[14].mxu1 %v390_v35  ;;  %16347 = vmatmul.mubr.f32.vlgmr.msra.gmra.mrb[0].mxu0 %v18818_v16 }
  0x97   :  { %16262 = vmatprep.mubr.f32.mxu1 %v18807_v9  ;;  %16349 = vmatprep.mubr.f32.mxu0 %v18820_v17 }
  0x98   :  { %17657 = vmatpush3.bf16.msra.mxu0 %v18816_v15 }
  0x9a   :  { %16263 = vmatmul.mubr.f32.vlgmr.msra.gmra.mrb[0].mxu1 %v18818_v16  ;;  %16350 = vmatmul.mubr.f32.gmra.mrb[2].mxu0 %v18822_v18 }
  0x9b   :  { %16265 = vmatprep.mubr.f32.mxu1 %v18820_v17  ;;  %16352 = vmatprep.mubr.f32.mxu0 %v18841_v28 }
  0x9c   :  { %17645 = vmatpush3.bf16.msra.mxu1 %v18950_v12 }
  0x9d   :  { %17659 = vmatprep.subr.bf16.mxu1 %v18816_v15 }
  0x9e   :  { %16266 = vmatmul.mubr.f32.gmra.mrb[2].mxu1 %v18822_v18  ;;  %16353 = vmatmul.mubr.f32.gmra.mrb[4].mxu0 %v18846_v30 }
  0x9f   :  { %16268 = vmatprep.mubr.f32.mxu1 %v18841_v28  ;;  %16355 = vmatprep.mubr.f32.mxu0 %v18848_v31 }
  0xa2   :  { %16269 = vmatmul.mubr.f32.gmra.mrb[4].mxu1 %v18846_v30  ;;  %16356 = vmatmul.mubr.f32.gmra.mrb[6].mxu0 %v18864_v40 }
  0xa3   :  { %16271 = vmatprep.mubr.f32.mxu1 %v18848_v31  ;;  %16358 = vmatprep.mubr.f32.mxu0 %v18880_v60 }
  0xa6   :  { %16272 = vmatmul.mubr.f32.gmra.mrb[6].mxu1 %v18864_v40  ;;  %16359 = vmatmul.mubr.f32.gmra.mrb[8].mxu0 %v18888_v7 }
  0xa7   :  { %16274 = vmatprep.mubr.f32.mxu1 %v18880_v60  ;;  %16361 = vmatprep.mubr.f32.mxu0 %v18902_v19 }
  0xaa   :  { %16275 = vmatmul.mubr.f32.gmra.mrb[8].mxu1 %v18888_v7  ;;  %16362 = vmatmul.mubr.f32.gmra.mrb[10].mxu0 %v18907_v4 }
  0xab   :  { %16277 = vmatprep.mubr.f32.mxu1 %v18902_v19  ;;  %16364 = vmatprep.mubr.f32.mxu0 %v18921_v45 }
  0xae   :  { %16278 = vmatmul.mubr.f32.gmra.mrb[10].mxu1 %v18907_v4  ;;  %16365 = vmatmul.mubr.f32.gmra.mrb[12].mxu0 %v18923_v46 }
  0xaf   :  { %16280 = vmatprep.mubr.f32.mxu1 %v18921_v45  ;;  %16367 = vmatprep.mubr.f32.mxu0 %v18936_v55 }
  0xb2   :  { %16281 = vmatmul.mubr.f32.gmra.mrb[12].mxu1 %v18923_v46  ;;  %16368 = vmatmul.mubr.f32.gmra.mrb[14].mxu0 %v18941_v5 }
  0xb3   :  { %16283 = vmatprep.mubr.f32.mxu1 %v18936_v55  ;;  %16374 = vmatprep.mubr.f32.mxu0 %v18807_v9  ;;  %v1290_v9 = vsel %vm120_vm0, %v1273_v37, 0 }
  0xb6   :  { %16284 = vmatmul.mubr.f32.gmra.mrb[14].mxu1 %v18941_v5  ;;  %16375 = vmatmul.mubr.f32.vlgmr.msra.gmra.mrb[0].mxu0 %v18818_v16  ;;  %v1274_v16 = vld [vmem:[#allocation5 + $0x8] sm:$0xff] }
  0xb7   :  { %16290 = vmatprep.mubr.f32.mxu1 %v18825_v21  ;;  %16377 = vmatprep.mubr.f32.mxu0 %v18820_v17  ;;  %v1275_v17 = vld [vmem:[#allocation5 + $0x10] sm:$0xff]  ;;  %v1293_v21 = vsel %vm120_vm0, %v1274_v16, 0 }
  0xba   :  { %16291 = vmatmul.mubr.f32.vlgmr.msra.gmra.mrb[0].mxu1 %v18833_v25  ;;  %16378 = vmatmul.mubr.f32.gmra.mrb[2].mxu0 %v18822_v18  ;;  %v19021_v18 = vand.u32 4294901760, %v1290_v9  ;;  %v1296_v25 = vsel %vm120_vm0, %v1275_v17, 0 }
  0xbb   :  { %16293 = vmatprep.mubr.f32.mxu1 %v18836_v26  ;;  %16380 = vmatprep.mubr.f32.mxu0 %v18841_v28  ;;  %v1276_v26 = vld [vmem:[#allocation5 + $0x18] sm:$0xff]  ;;  %v19027_v28 = vand.u32 4294901760, %v1293_v21 }
  0xbc   :  { %17661 = vmatpush3.bf16.msra.mxu1 %v18816_v15 }
  0xbd   :  { %17663 = vmatprep.subr.bf16.mxu1 %v18934_v58 }
  0xbe   :  { %16294 = vmatmul.mubr.f32.gmra.mrb[2].mxu1 %v18839_v27  ;;  %16381 = vmatmul.mubr.f32.gmra.mrb[4].mxu0 %v18846_v30  ;;  %v1277_v27 = vld [vmem:[#allocation5 + $0x20] sm:$0xff]  ;;  %v19032_v30 = vsub.f32 %v1290_v9, %v19021_v18  ;;  %v1286_v9 = vld [vmem:[#allocation5 + $0x68] sm:$0xff] }
  0xbf   :  { %16296 = vmatprep.mubr.f32.mxu1 %v18855_v36  ;;  %16383 = vmatprep.mubr.f32.mxu0 %v18848_v31  ;;  %v19034_v31 = vand.u32 4294901760, %v1296_v25  ;;  %v1299_v36 = vsel %vm120_vm0, %v1276_v26, 0 }
  0xc1   :  { %v19051_v41 = vsub.f32 %v1296_v25, %v19034_v31  ;;  %v1287_v25 = vld [vmem:[#allocation5 + $0x70] sm:$0xff] }
  0xc2   :  { %16297 = vmatmul.mubr.f32.gmra.mrb[4].mxu1 %v18859_v38  ;;  %16384 = vmatmul.mubr.f32.gmra.mrb[6].mxu0 %v18864_v40  ;;  %v1278_v38 = vld [vmem:[#allocation5 + $0x28] sm:$0xff]  ;;  %v1302_v40 = vsel %vm120_vm0, %v1277_v27, 0 }
  0xc3   :  { %16299 = vmatprep.mubr.f32.mxu1 %v18862_v39  ;;  %16386 = vmatprep.mubr.f32.mxu0 %v18880_v60  ;;  %v1279_v39 = vld [vmem:[#allocation5 + $0x30] sm:$0xff]  ;;  %v19043_v60 = vand.u32 4294901760, %v1299_v36  ;;  %v1426_v51 = vand.u32 4294901760, %v19051_v41 }
  0xc5   :  { %v1427_v6 = vsub.f32 %v19051_v41, %v1426_v51 }
  0xc6   :  { %16300 = vmatmul.mubr.f32.gmra.mrb[6].mxu1 %v18873_v49  ;;  %16387 = vmatmul.mubr.f32.gmra.mrb[8].mxu0 %v18888_v7  ;;  %v19041_v49 = vsub.f32 %v1293_v21, %v19027_v28  ;;  %v1305_v7 = vsel %vm120_vm0, %v1278_v38, 0 }
  0xc7   :  { %16302 = vmatprep.mubr.f32.mxu1 %v18891_v8  ;;  %16389 = vmatprep.mubr.f32.mxu0 %v18902_v19  ;;  %v1308_v8 = vsel %vm120_vm0, %v1279_v39, 0  ;;  %v1406_v19 = vand.u32 4294901760, %v19032_v30  ;;  %v19055_v44 = vand.u32 4294901760, %v1305_v7  ;;  %v1428_v33 = vand.u32 4294901760, %v1427_v6 }
  0xc8   :  { %v19057_v47 = vand.u32 4294901760, %v1308_v8 }
  0xc9   :  { %v1407_v50 = vsub.f32 %v19032_v30, %v1406_v19  ;;  %v19077_v53 = vsub.f32 %v1305_v7, %v19055_v44 }
  0xca   :  { %16303 = vmatmul.mubr.f32.gmra.mrb[8].mxu1 %v18900_v14  ;;  %16390 = vmatmul.mubr.f32.gmra.mrb[10].mxu0 %v18907_v4  ;;  %v19053_v14 = vand.u32 4294901760, %v1302_v40  ;;  %v1280_v4 = vld [vmem:[#allocation5 + $0x38] sm:$0xff]  ;;  %v19080_v54 = vsub.f32 %v1308_v8, %v19057_v47  ;;  %v1329_v8 = vsel %vm120_vm0, %v1286_v9, 0 }
  0xcb   :  { %16305 = vmatprep.mubr.f32.mxu1 %v18911_v29  ;;  %16392 = vmatprep.mubr.f32.mxu0 %v18921_v45  ;;  %v1416_v29 = vand.u32 4294901760, %v19041_v49  ;;  %v19063_v45 = vsub.f32 %v1299_v36, %v19043_v60  ;;  %v1311_v48 = vsel %vm120_vm0, %v1280_v4, 0  ;;  %v1408_v2 = vand.u32 4294901760, %v1407_v50 }
  0xcc   :  { %v1456_v23 = vand.u32 4294901760, %v19077_v53  ;;  %v1466_v62 = vand.u32 4294901760, %v19080_v54  ;;  %v1332_v4 = vsel %vm120_vm0, %v1287_v25, 0 }
  0xcd   :  { %v1417_v59 = vsub.f32 %v19041_v49, %v1416_v29  ;;  %v1436_v61 = vand.u32 4294901760, %v19063_v45 }
  0xce   :  { %16306 = vmatmul.mubr.f32.gmra.mrb[10].mxu1 %v18917_v42  ;;  %16393 = vmatmul.mubr.f32.gmra.mrb[12].mxu0 %v18923_v46  ;;  %v19073_v42 = vsub.f32 %v1302_v40, %v19053_v14  ;;  %v1314_v46 = vsel %vm120_vm0, %v1281_v43, 0  ;;  %v1457_v16 = vsub.f32 %v19077_v53, %v1456_v23  ;;  %v1467_v17 = vsub.f32 %v19080_v54, %v1466_v62  ;;  %v1288_v43 = vld [vmem:[#allocation5 + $0x78] sm:$0xff] }
  0xcf   :  { %16308 = vmatprep.mubr.f32.mxu1 %v18929_v56  ;;  %16395 = vmatprep.mubr.f32.mxu0 %v18936_v55  ;;  %v19082_v56 = vand.u32 4294901760, %v1311_v48  ;;  %v1283_v55 = vld [vmem:[#allocation5 + $0x50] sm:$0xff]  ;;  %v19090_v63 = vand.u32 4294901760, %v1314_v46  ;;  %v1418_v11 = vand.u32 4294901760, %v1417_v59  ;;  %v1437_v1 = vsub.f32 %v19063_v45, %v1436_v61 }
  0xd0   :  { %v1446_v13 = vand.u32 4294901760, %v19073_v42  ;;  %v1468_v50 = vand.u32 4294901760, %v1467_v17  ;;  %v19152_v59 = vand.u32 4294901760, %v1329_v8 }
  0xd1   :  { %v19102_v10 = vsub.f32 %v1311_v48, %v19082_v56  ;;  %v19109_v24 = vsub.f32 %v1314_v46, %v19090_v63  ;;  %v1438_v26 = vand.u32 4294901760, %v1437_v1  ;;  %v1458_v48 = vand.u32 4294901760, %v1457_v16 }
  0xd2   :  { %16309 = vmatmul.mubr.f32.gmra.mrb[12].mxu1 %v18932_v57  ;;  %16396 = vmatmul.mubr.f32.gmra.mrb[14].mxu0 %v18941_v5  ;;  %v1317_v57 = vsel %vm120_vm0, %v1282_v52, 0  ;;  %v1320_v5 = vsel %vm120_vm0, %v1283_v55, 0  ;;  %v1447_v34 = vsub.f32 %v19073_v42, %v1446_v13  ;;  %v19166_v1 = vsub.f32 %v1329_v8, %v19152_v59 }
  0xd3   :  { %16311 = vmatprep.mubr.f32.mxu1 %v18945_v0  ;;  %v1285_v0 = vld [vmem:[#allocation5 + $0x60] sm:$0xff]  ;;  %v19111_v32 = vand.u32 4294901760, %v1317_v57  ;;  %v19116_v35 = vand.u32 4294901760, %v1320_v5  ;;  %v1476_v21 = vand.u32 4294901760, %v19102_v10  ;;  %v1486_v27 = vand.u32 4294901760, %v19109_v24 }
  0xd4   :  { %v1326_v37 = vsel %vm120_vm0, %v1285_v0, 0  ;;  %v1448_v39 = vand.u32 4294901760, %v1447_v34  ;;  %v1536_v25 = vand.u32 4294901760, %v19166_v1 }
  0xd5   :  { %v19129_v36 = vsub.f32 %v1317_v57, %v19111_v32  ;;  %v19135_v40 = vsub.f32 %v1320_v5, %v19116_v35  ;;  %v19137_v7 = vand.u32 4294901760, %v1326_v37  ;;  %v1477_v46 = vsub.f32 %v19102_v10, %v1476_v21 }
  0xd6   :  { %16312 = vmatmul.mubr.f32.gmra.mrb[14].mxu1 %v18955_v22  ;;  %v1323_v22 = vsel %vm120_vm0, %v1284_v20, 0  ;;  %v19158_v57 = vand.u32 4294901760, %v1332_v4  ;;  %v1335_v5 = vsel %vm120_vm0, %v1288_v43, 0 }
  0xd7   :  { %16402 = vmatprep.mubr.f32.mxu1 %v1408_v2  ;;  %v19131_v38 = vand.u32 4294901760, %v1323_v22  ;;  %v1496_v52 = vand.u32 4294901760, %v19129_v36  ;;  %v1506_v2 = vand.u32 4294901760, %v19135_v40  ;;  %v19156_v6 = vsub.f32 %v1326_v37, %v19137_v7 }
  0xd8   :  { %v1478_v20 = vand.u32 4294901760, %v1477_v46  ;;  %v19175_v9 = vsub.f32 %v1332_v4, %v19158_v57 }
  0xd9   :  { %v19150_v55 = vsub.f32 %v1323_v22, %v19131_v38  ;;  %v1497_v0 = vsub.f32 %v19129_v36, %v1496_v52  ;;  %v1507_v22 = vsub.f32 %v19135_v40, %v1506_v2  ;;  %v1526_v37 = vand.u32 4294901760, %v19156_v6 }
  0xda   :  { %16403 = vmatmul.mubr.f32.vlgmr.msra.gmra.mrb[16].mxu1 %v1418_v11  ;;  %v1546_v4 = vand.u32 4294901760, %v19175_v9 }
  0xdb   :  { %16405 = vmatprep.mubr.f32.mxu1 %v1428_v33  ;;  %17665 = vmatpush3.bf16.msra.mxu1 %v18934_v58  ;;  %v1487_v58 = vsub.f32 %v19109_v24, %v1486_v27  ;;  %v1516_v11 = vand.u32 4294901760, %v19150_v55  ;;  %v19168_v33 = vand.u32 4294901760, %v1335_v5  ;;  %v1498_v16 = vand.u32 4294901760, %v1497_v0 }
  0xdc   :  { %17667 = vmatprep.subr.bf16.mxu1 %v18950_v12  ;;  %v1527_v8 = vsub.f32 %v19156_v6, %v1526_v37 }
  0xdd   :  { %v1488_v34 = vand.u32 4294901760, %v1487_v58  ;;  %v1517_v17 = vsub.f32 %v19150_v55, %v1516_v11  ;;  %v1547_v58 = vsub.f32 %v19175_v9, %v1546_v4 }
  0xde   :  { %16406 = vmatmul.mubr.f32.gmra.mrb[18].mxu1 %v1438_v26  ;;  %v19182_v26 = vsub.f32 %v1335_v5, %v19168_v33  ;;  %v1528_v46 = vand.u32 4294901760, %v1527_v8 }
  0xdf   :  { %16408 = vmatprep.mubr.f32.mxu1 %v1448_v39  ;;  %v1508_v39 = vand.u32 4294901760, %v1507_v22  ;;  %v1518_v43 = vand.u32 4294901760, %v1517_v17  ;;  %v1548_v0 = vand.u32 4294901760, %v1547_v58  ;;  %v18670_v22 = vmov 0.0  }
  0xe0   :  { %16570 = vmatprep.mubr.msk.f32.mxu0 %vm18669_vm1, %v18670_v22 }
  0xe2   :  { %16409 = vmatmul.mubr.f32.gmra.mrb[20].mxu1 %v1458_v48  ;;  %v1537_v48 = vsub.f32 %v19166_v1, %v1536_v25 }
  0xe3   :  { %16411 = vmatprep.mubr.f32.mxu1 %v1468_v50  ;;  %v1556_v50 = vand.u32 4294901760, %v19182_v26 }
  0xe4   :  { %v1538_v5 = vand.u32 4294901760, %v1537_v48 }
  0xe6   :  { %16412 = vmatmul.mubr.f32.gmra.mrb[22].mxu1 %v1478_v20  ;;  %v1557_v20 = vsub.f32 %v19182_v26, %v1556_v50 }
  0xe7   :  { %16414 = vmatprep.mubr.f32.mxu1 %v1488_v34 }
  0xe8   :  { %v1558_v34 = vand.u32 4294901760, %v1557_v20 }
  0xea   :  { %16415 = vmatmul.mubr.f32.gmra.mrb[24].mxu1 %v1498_v16 }
  0xeb   :  { %16417 = vmatprep.mubr.f32.mxu1 %v1508_v39 }
  0xee   :  { %16418 = vmatmul.mubr.f32.gmra.mrb[26].mxu1 %v1518_v43 }
  0xef   :  { %16420 = vmatprep.mubr.f32.mxu1 %v1528_v46 }
  0xf2   :  { %16421 = vmatmul.mubr.f32.gmra.mrb[28].mxu1 %v1538_v5 }
  0xf3   :  { %16423 = vmatprep.mubr.f32.mxu1 %v1548_v0 }
  0xf6   :  { %16424 = vmatmul.mubr.f32.gmra.mrb[30].mxu1 %v1558_v34 }
  0xf7   :  { %16430 = vmatprep.mubr.f32.mxu1 %v19021_v18 }
  0xfa   :  { %16431 = vmatmul.mubr.f32.vlgmr.msra.gmra.mrb[16].mxu1 %v19027_v28 }
  0xfb   :  { %16433 = vmatprep.mubr.f32.mxu1 %v19034_v31  ;;  %17669 = vmatpush3.bf16.msra.mxu1 %v18950_v12  ;;  %v18668_v12 = vmov 0.0|0.0  }
  0xfc   :  { %17671 = vmatprep.subr.bf16.mxu1 %v18816_v15  ;;  %17682 = vmatprep.subr.bf16.mxu0 %v18668_v12 }
  0xfe   :  { %16434 = vmatmul.mubr.f32.gmra.mrb[18].mxu1 %v19043_v60 }
  0xff   :  { %16436 = vmatprep.mubr.f32.mxu1 %v19053_v14 }
 0x102   :  { %16437 = vmatmul.mubr.f32.gmra.mrb[20].mxu1 %v19055_v44 }
 0x103   :  { %16439 = vmatprep.mubr.f32.mxu1 %v19057_v47 }
 0x106   :  { %16440 = vmatmul.mubr.f32.gmra.mrb[22].mxu1 %v19082_v56 }
 0x107   :  { %16442 = vmatprep.mubr.f32.mxu1 %v19090_v63 }
 0x10a   :  { %16443 = vmatmul.mubr.f32.gmra.mrb[24].mxu1 %v19111_v32 }
 0x10b   :  { %16445 = vmatprep.mubr.f32.mxu1 %v19116_v35 }
 0x10e   :  { %16446 = vmatmul.mubr.f32.gmra.mrb[26].mxu1 %v19131_v38 }
 0x10f   :  { %16448 = vmatprep.mubr.f32.mxu1 %v19137_v7 }
 0x112   :  { %16449 = vmatmul.mubr.f32.gmra.mrb[28].mxu1 %v19152_v59 }
 0x113   :  { %16451 = vmatprep.mubr.f32.mxu1 %v19158_v57 }
 0x116   :  { %16452 = vmatmul.mubr.f32.gmra.mrb[30].mxu1 %v19168_v33 }
 0x117   :  { %16458 = vmatprep.mubr.f32.mxu1 %v19032_v30 }
 0x11a   :  { %16459 = vmatmul.mubr.f32.vlgmr.msra.gmra.mrb[16].mxu1 %v19041_v49 }
 0x11b   :  { %16461 = vmatprep.mubr.f32.mxu1 %v19051_v41  ;;  %17673 = vmatpush3.bf16.msra.mxu1 %v18816_v15 }
 0x11c   :  { %17675 = vmatprep.subr.bf16.mxu1 %v18947_v3 }
 0x11e   :  { %16462 = vmatmul.mubr.f32.gmra.mrb[18].mxu1 %v19063_v45 }
 0x11f   :  { %16464 = vmatprep.mubr.f32.mxu1 %v19073_v42 }
 0x122   :  { %16465 = vmatmul.mubr.f32.gmra.mrb[20].mxu1 %v19077_v53 }
 0x123   :  { %16467 = vmatprep.mubr.f32.mxu1 %v19080_v54 }
 0x126   :  { %16468 = vmatmul.mubr.f32.gmra.mrb[22].mxu1 %v19102_v10 }
 0x127   :  { %16470 = vmatprep.mubr.f32.mxu1 %v19109_v24 }
 0x12a   :  { %16471 = vmatmul.mubr.f32.gmra.mrb[24].mxu1 %v19129_v36 }
 0x12b   :  { %16473 = vmatprep.mubr.f32.mxu1 %v19135_v40 }
 0x12e   :  { %16474 = vmatmul.mubr.f32.gmra.mrb[26].mxu1 %v19150_v55 }
 0x12f   :  { %16476 = vmatprep.mubr.f32.mxu1 %v19156_v6 }
 0x132   :  { %16477 = vmatmul.mubr.f32.gmra.mrb[28].mxu1 %v19166_v1 }
 0x133   :  { %16479 = vmatprep.mubr.f32.mxu1 %v19175_v9 }
 0x136   :  { %16480 = vmatmul.mubr.f32.gmra.mrb[30].mxu1 %v19182_v26 }
 0x137   :  { %16486 = vmatprep.mubr.f32.mxu1 %v1406_v19 }
 0x13a   :  { %16487 = vmatmul.mubr.f32.vlgmr.msra.gmra.mrb[16].mxu1 %v1416_v29 }
 0x13b   :  { %16489 = vmatprep.mubr.f32.mxu1 %v1426_v51  ;;  %17677 = vmatpush3.bf16.msra.mxu1 %v18947_v3 }
 0x13c   :  { %17679 = vmatprep.subr.bf16.mxu1 %v18816_v15 }
 0x13e   :  { %16490 = vmatmul.mubr.f32.gmra.mrb[18].mxu1 %v1436_v61 }
 0x13f   :  { %16492 = vmatprep.mubr.f32.mxu1 %v1446_v13 }
 0x142   :  { %16493 = vmatmul.mubr.f32.gmra.mrb[20].mxu1 %v1456_v23 }
 0x143   :  { %16495 = vmatprep.mubr.f32.mxu1 %v1466_v62 }
 0x146   :  { %16496 = vmatmul.mubr.f32.gmra.mrb[22].mxu1 %v1476_v21 }
 0x147   :  { %16498 = vmatprep.mubr.f32.mxu1 %v1486_v27 }
 0x14a   :  { %16499 = vmatmul.mubr.f32.gmra.mrb[24].mxu1 %v1496_v52 }
 0x14b   :  { %16501 = vmatprep.mubr.f32.mxu1 %v1506_v2 }
 0x14e   :  { %16502 = vmatmul.mubr.f32.gmra.mrb[26].mxu1 %v1516_v11 }
 0x14f   :  { %16504 = vmatprep.mubr.f32.mxu1 %v1526_v37 }
 0x152   :  { %16505 = vmatmul.mubr.f32.gmra.mrb[28].mxu1 %v1536_v25 }
 0x153   :  { %16507 = vmatprep.mubr.f32.mxu1 %v1546_v4 }
 0x156   :  { %16508 = vmatmul.mubr.f32.gmra.mrb[30].mxu1 %v1556_v50 }
 0x157   :  { %16514 = vmatprep.mubr.f32.mxu1 %v19021_v18 }
 0x15a   :  { %16515 = vmatmul.mubr.f32.vlgmr.msra.gmra.mrb[16].mxu1 %v19027_v28 }
 0x15b   :  { %16517 = vmatprep.mubr.f32.mxu1 %v19034_v31  ;;  %17681 = vmatpush3.bf16.msra.mxu1 %v18816_v15  ;;  %v2441_v15 = vld [vmem:[#allocation8] sm:$0xff] }
 0x15c   :  { %17700 = vmatprep.subr.bf16.mxu1 %v18668_v12  ;;  %v2443_v3 = vsel %vm120_vm0, %v2441_v15, 0 }
 0x15d   :  { %v19297_v30 = vand.u32 4294901760, %v2443_v3 }
 0x15e   :  { %16518 = vmatmul.mubr.f32.gmra.mrb[18].mxu1 %v19043_v60 }
 0x15f   :  { %16520 = vmatprep.mubr.f32.mxu1 %v19053_v14 }
 0x162   :  { %16521 = vmatmul.mubr.f32.gmra.mrb[20].mxu1 %v19055_v44 }
 0x163   :  { %16523 = vmatprep.mubr.f32.mxu1 %v19057_v47 }
 0x166   :  { %16524 = vmatmul.mubr.f32.gmra.mrb[22].mxu1 %v19082_v56 }
 0x167   :  { %16526 = vmatprep.mubr.f32.mxu1 %v19090_v63 }
 0x16a   :  { %16527 = vmatmul.mubr.f32.gmra.mrb[24].mxu1 %v19111_v32 }
 0x16b   :  { %16529 = vmatprep.mubr.f32.mxu1 %v19116_v35 }
 0x16e   :  { %16530 = vmatmul.mubr.f32.gmra.mrb[26].mxu1 %v19131_v38 }
 0x16f   :  { %16532 = vmatprep.mubr.f32.mxu1 %v19137_v7 }
 0x172   :  { %16533 = vmatmul.mubr.f32.gmra.mrb[28].mxu1 %v19152_v59 }
 0x173   :  { %16535 = vmatprep.mubr.f32.mxu1 %v19158_v57 }
 0x176   :  { %16536 = vmatmul.mubr.f32.gmra.mrb[30].mxu1 %v19168_v33 }
 0x177   :  { %16542 = vmatprep.mubr.f32.mxu1 %v19021_v18  ;;  %v19302_v18 = vsub.f32 %v2443_v3, %v19297_v30 }
 0x179   :  { %v19307_v49 = vand.u32 4294901760, %v19302_v18 }
 0x17a   :  { %16543 = vmatmul.mubr.f32.vlgmr.msra.gmra.mrb[16].mxu1 %v19027_v28 }
 0x17b   :  { %16545 = vmatprep.mubr.f32.mxu1 %v19034_v31  ;;  %v2515_v45 = vsub.f32 %v19302_v18, %v19307_v49 }
 0x17e   :  { %16546 = vmatmul.mubr.f32.gmra.mrb[18].mxu1 %v19043_v60 }
 0x17f   :  { %16548 = vmatprep.mubr.f32.mxu1 %v19053_v14 }
 0x182   :  { %16549 = vmatmul.mubr.f32.gmra.mrb[20].mxu1 %v19055_v44 }
 0x183   :  { %16551 = vmatprep.mubr.f32.mxu1 %v19057_v47 }
 0x186   :  { %16552 = vmatmul.mubr.f32.gmra.mrb[22].mxu1 %v19082_v56 }
 0x187   :  { %16554 = vmatprep.mubr.f32.mxu1 %v19090_v63 }
 0x189   :  { %v16376_v28 = vpop.f32.mrb[0].mxu0 }
 0x18a   :  { %v1179_v31 = vpop.f32.mrb[1].mxu0  ;;  %16555 = vmatmul.mubr.f32.gmra.mrb[24].mxu1 %v19111_v32  ;;  %v19322_v32 = vand.u32 4294901760, %v2515_v45 }
 0x18b   :  { %16557 = vmatprep.mubr.f32.mxu1 %v19116_v35 }
 0x18d   :  { %v16292_v60 = vpop.f32.mrb[0].mxu1  ;;  %v16379_v19 = vpop.f32.mrb[2].mxu0 }
 0x18e   :  { %v17970_v41 = vadd.f32 %v16376_v28, %v16292_v60  ;;  %v639_v14 = vpop.f32.mrb[1].mxu1  ;;  %v1191_v44 = vpop.f32.mrb[3].mxu0  ;;  %16558 = vmatmul.mubr.f32.gmra.mrb[26].mxu1 %v19131_v38 }
 0x18f   :  { %v17971_v47 = vadd.f32 %v1179_v31, %v639_v14  ;;  %16560 = vmatprep.mubr.f32.mxu1 %v19137_v7 }
 0x190   :  { %v2449_v29 = vand.u32 4294901760, %v17970_v41 }
 0x191   :  { %v2446_v51 = vand.u32 4294901760, %v17971_v47  ;;  %v16295_v42 = vpop.f32.mrb[2].mxu1  ;;  %v16382_v53 = vpop.f32.mrb[4].mxu0 }
 0x192   :  { %v19313_v54 = vsub.f32 %v17970_v41, %v2449_v29  ;;  %v17972_v56 = vadd.f32 %v16379_v19, %v16295_v42  ;;  %v653_v61 = vpop.f32.mrb[3].mxu1  ;;  %v1203_v63 = vpop.f32.mrb[5].mxu0  ;;  %16561 = vmatmul.mubr.f32.gmra.mrb[28].mxu1 %v19152_v59 }
 0x193   :  { %v19316_v13 = vpack.c.bf16 %v2449_v29, %v2446_v51  ;;  %v19318_v23 = vsub.f32 %v17971_v47, %v2446_v51  ;;  %v17973_v62 = vadd.f32 %v1191_v44, %v653_v61  ;;  %16563 = vmatprep.mubr.f32.mxu1 %v19158_v57 }
 0x194   :  { %v2532_v10 = vand.u32 4294901760, %v19313_v54  ;;  %v2908_v24 = vand.u32 4294901760, %v17972_v56 }
 0x195   :  { %v2525_v35 = vand.u32 4294901760, %v19318_v23  ;;  %v17689_v21 = vpack.c.bf16 %v19313_v54, %v19318_v23  ;;  %v2905_v27 = vand.u32 4294901760, %v17973_v62  ;;  %v16298_v36 = vpop.f32.mrb[4].mxu1  ;;  %v16385_v38 = vpop.f32.mrb[6].mxu0  ;;  %17684 = vmatpush3.bf16.msra.mxu0 %v19316_v13 }
 0x196   :  { %v2533_v40 = vsub.f32 %v19313_v54, %v2532_v10  ;;  %v19329_v7 = vsub.f32 %v17972_v56, %v2908_v24  ;;  %v17974_v52 = vadd.f32 %v16382_v53, %v16298_v36  ;;  %v667_v55 = vpop.f32.mrb[5].mxu1  ;;  %v1215_v59 = vpop.f32.mrb[7].mxu0  ;;  %16564 = vmatmul.mubr.f32.gmra.mrb[30].mxu1 %v19168_v33  ;;  %17685 = vmatprep.subr.bf16.mxu0 %v18668_v12 }
 0x197   :  { %v2526_v2 = vsub.f32 %v19318_v23, %v2525_v35  ;;  %v19334_v6 = vpack.c.bf16 %v2908_v24, %v2905_v27  ;;  %v19336_v57 = vsub.f32 %v17973_v62, %v2905_v27  ;;  %v17975_v11 = vadd.f32 %v1203_v63, %v667_v55  ;;  %16612 = vmatprep.mubr.msk.f32.mxu1 %vm18669_vm1, %v18670_v22 }
 0x198   :  { %v2534_v1 = vand.u32 4294901760, %v2533_v40  ;;  %v2991_v37 = vand.u32 4294901760, %v19329_v7  ;;  %v3367_v9 = vand.u32 4294901760, %v17974_v52  ;;  %16571 = vmatmul.mubr.f32.vlgmr.msra.gmra.mrb[16].mxu0 %v19322_v32  ;;  %v19342_v16 = vpack.c.bf16 %v2532_v10, %v2525_v35 }
 0x199   :  { %v2527_v33 = vand.u32 4294901760, %v2526_v2  ;;  %v2984_v17 = vand.u32 4294901760, %v19336_v57  ;;  %v17707_v25 = vpack.c.bf16 %v19329_v7, %v19336_v57  ;;  %v3364_v26 = vand.u32 4294901760, %v17975_v11  ;;  %v16301_v39 = vpop.f32.mrb[6].mxu1  ;;  %v16388_v8 = vpop.f32.mrb[8].mxu0  ;;  %17702 = vmatpush3.bf16.msra.mxu1 %v19334_v6  ;;  %16577 = vmatprep.mubr.msk.f32.mxu0 %vm18669_vm1, %v18670_v22 }
 0x19a   :  { %v2992_v4 = vsub.f32 %v19329_v7, %v2991_v37  ;;  %v19351_v43 = vsub.f32 %v17974_v52, %v3367_v9  ;;  %v17976_v48 = vadd.f32 %v16385_v38, %v16301_v39  ;;  %v681_v50 = vpop.f32.mrb[7].mxu1  ;;  %v1227_v46 = vpop.f32.mrb[9].mxu0  ;;  %17703 = vmatprep.subr.bf16.mxu1 %v18668_v12 }
 0x19b   :  { %v2985_v58 = vsub.f32 %v19336_v57, %v2984_v17  ;;  %v19355_v5 = vpack.c.bf16 %v3367_v9, %v3364_v26  ;;  %v19357_v20 = vsub.f32 %v17975_v11, %v3364_v26  ;;  %v17977_v0 = vadd.f32 %v1215_v59, %v681_v50 }
 0x19c   :  { %v2993_v34 = vand.u32 4294901760, %v2992_v4  ;;  %v3450_v15 = vand.u32 4294901760, %v19351_v43  ;;  %v3826_v3 = vand.u32 4294901760, %v17976_v48  ;;  %16613 = vmatmul.mubr.f32.vlgmr.msra.gmra.mrb[32].mxu1 %v19322_v32  ;;  %v17686_v28 = vpack.c.bf16 %v2534_v1, %v2527_v33 }
 0x19d   :  { %v2986_v31 = vand.u32 4294901760, %v2985_v58  ;;  %v3443_v60 = vand.u32 4294901760, %v19357_v20  ;;  %v17725_v19 = vpack.c.bf16 %v19351_v43, %v19357_v20  ;;  %v3823_v41 = vand.u32 4294901760, %v17977_v0  ;;  %v16304_v14 = vpop.f32.mrb[8].mxu1  ;;  %v16391_v44 = vpop.f32.mrb[10].mxu0  ;;  %16619 = vmatprep.mubr.msk.f32.mxu1 %vm18669_vm1, %v18670_v22 }
 0x19e   :  { %v3451_v47 = vsub.f32 %v19351_v43, %v3450_v15  ;;  %v19369_v29 = vsub.f32 %v17976_v48, %v3826_v3  ;;  %v17978_v45 = vadd.f32 %v16388_v8, %v16304_v14  ;;  %17687 = vmatpush3.bf16.msra.mxu0 %v17686_v28  ;;  %v695_v51 = vpop.f32.mrb[9].mxu1  ;;  %v1239_v42 = vpop.f32.mrb[11].mxu0  ;;  %v19371_v53 = vpack.c.bf16 %v2991_v37, %v2984_v17 }
 0x19f   :  { %v3444_v56 = vsub.f32 %v19357_v20, %v3443_v60  ;;  %v19376_v61 = vpack.c.bf16 %v3826_v3, %v3823_v41  ;;  %v19378_v63 = vsub.f32 %v17977_v0, %v3823_v41  ;;  %v17979_v62 = vadd.f32 %v1227_v46, %v695_v51  ;;  %17688 = vmatprep.subr.bf16.mxu0 %v18668_v12 }
 0x1a0   :  { %v3452_v10 = vand.u32 4294901760, %v3451_v47  ;;  %v3909_v24 = vand.u32 4294901760, %v19369_v29  ;;  %v4285_v35 = vand.u32 4294901760, %v17978_v45  ;;  %v17704_v27 = vpack.c.bf16 %v2993_v34, %v2986_v31 }
 0x1a1   :  { %v3445_v36 = vand.u32 4294901760, %v3444_v56  ;;  %v3902_v38 = vand.u32 4294901760, %v19378_v63  ;;  %v17743_v40 = vpack.c.bf16 %v19369_v29, %v19378_v63  ;;  %v4282_v52 = vand.u32 4294901760, %v17979_v62  ;;  %16578 = vmatmul.mubr.f32.vlgmr.msra.gmra.mrb[16].mxu0 %v19297_v30  ;;  %v16307_v55 = vpop.f32.mrb[10].mxu1  ;;  %v16394_v59 = vpop.f32.mrb[12].mxu0 }
 0x1a2   :  { %v3910_v2 = vsub.f32 %v19369_v29, %v3909_v24  ;;  %v19389_v11 = vsub.f32 %v17978_v45, %v4285_v35  ;;  %v17980_v1 = vadd.f32 %v16391_v44, %v16307_v55  ;;  %17690 = vmatpush3.bf16.msra.mxu0 %v17689_v21  ;;  %17705 = vmatpush3.bf16.msra.mxu1 %v17704_v27  ;;  %v709_v37 = vpop.f32.mrb[11].mxu1  ;;  %v1251_v9 = vpop.f32.mrb[13].mxu0 }
 0x1a3   :  { %v3903_v33 = vsub.f32 %v19378_v63, %v3902_v38  ;;  %v19397_v17 = vpack.c.bf16 %v4285_v35, %v4282_v52  ;;  %v19399_v26 = vsub.f32 %v17979_v62, %v4282_v52  ;;  %v17981_v39 = vadd.f32 %v1239_v42, %v709_v37  ;;  %17706 = vmatprep.subr.bf16.mxu1 %v18668_v12 }
 0x1a4   :  { %v3911_v8 = vand.u32 4294901760, %v3910_v2  ;;  %v4368_v4 = vand.u32 4294901760, %v19389_v11  ;;  %v4744_v48 = vand.u32 4294901760, %v17980_v1  ;;  %16584 = vmatprep.mubr.msk.f32.mxu0 %vm18669_vm1, %v18670_v22  ;;  %17691 = vmatprep.subr.bf16.mxu0 %v18668_v12  ;;  %v19406_v54 = vpack.c.bf16 %v3452_v10, %v3445_v36 }
 0x1a5   :  { %v3904_v23 = vand.u32 4294901760, %v3903_v33  ;;  %v4361_v21 = vand.u32 4294901760, %v19399_v26  ;;  %v17761_v50 = vpack.c.bf16 %v19389_v11, %v19399_v26  ;;  %v4741_v46 = vand.u32 4294901760, %v17981_v39  ;;  %16620 = vmatmul.mubr.f32.vlgmr.msra.gmra.mrb[32].mxu1 %v19297_v30  ;;  %v16310_v58 = vpop.f32.mrb[12].mxu1  ;;  %v16397_v0 = vpop.f32.mrb[14].mxu0 }
 0x1a6   :  { %v4369_v34 = vsub.f32 %v19389_v11, %v4368_v4  ;;  %v19415_v3 = vsub.f32 %v17980_v1, %v4744_v48  ;;  %v17982_v28 = vadd.f32 %v16394_v59, %v16310_v58  ;;  %17708 = vmatpush3.bf16.msra.mxu1 %v17707_v25  ;;  %v723_v31 = vpop.f32.mrb[13].mxu1  ;;  %v1263_v41 = vpop.f32.mrb[15].mxu0  ;;  %16626 = vmatprep.mubr.msk.f32.mxu1 %vm18669_vm1, %v18670_v22 }
 0x1a7   :  { %v4362_v14 = vsub.f32 %v19399_v26, %v4361_v21  ;;  %v19423_v44 = vpack.c.bf16 %v4744_v48, %v4741_v46  ;;  %v19425_v47 = vsub.f32 %v17981_v39, %v4741_v46  ;;  %v17983_v45 = vadd.f32 %v1251_v9, %v723_v31  ;;  %17709 = vmatprep.subr.bf16.mxu1 %v18668_v12 }
 0x1a8   :  { %v4827_v51 = vand.u32 4294901760, %v19415_v3  ;;  %v5203_v42 = vand.u32 4294901760, %v17982_v28  ;;  %v19429_v56 = vpack.c.bf16 %v3911_v8, %v3904_v23  ;;  %v4370_v7 = vand.u32 4294901760, %v4369_v34 }
 0x1a9   :  { %v4820_v57 = vand.u32 4294901760, %v19425_v47  ;;  %v17779_v25 = vpack.c.bf16 %v19415_v3, %v19425_v47  ;;  %v5200_v62 = vand.u32 4294901760, %v17983_v45  ;;  %16585 = vmatmul.mubr.f32.vlgmr.msra.gmra.mrb[16].mxu0 %v19302_v18  ;;  %v16313_v10 = vpop.f32.mrb[14].mxu1  ;;  %v4363_v35 = vand.u32 4294901760, %v4362_v14 }
 0x1aa   :  { %v4828_v27 = vsub.f32 %v19415_v3, %v4827_v51  ;;  %v19436_v36 = vsub.f32 %v17982_v28, %v5203_v42  ;;  %17693 = vmatpush3.bf16.msra.mxu0 %v19316_v13  ;;  %v17984_v52 = vadd.f32 %v16397_v0, %v16313_v10  ;;  %v737_v55 = vpop.f32.mrb[15].mxu1  ;;  %16591 = vmatprep.mubr.msk.f32.mxu0 %vm18669_vm1, %v18670_v22 }
 0x1ab   :  { %v4821_v59 = vsub.f32 %v19425_v47, %v4820_v57  ;;  %v19442_v2 = vpack.c.bf16 %v5203_v42, %v5200_v62  ;;  %v19444_v1 = vsub.f32 %v17983_v45, %v5200_v62  ;;  %v17985_v37 = vadd.f32 %v1263_v41, %v737_v55  ;;  %17694 = vmatprep.subr.bf16.mxu0 %v18668_v12 }
 0x1ac   :  { %v4829_v9 = vand.u32 4294901760, %v4828_v27  ;;  %v5286_v33 = vand.u32 4294901760, %v19436_v36  ;;  %v5662_v39 = vand.u32 4294901760, %v17984_v52  ;;  %v19452_v8 = vpack.c.bf16 %v3450_v15, %v3443_v60 }
 0x1ad   :  { %v4822_v48 = vand.u32 4294901760, %v4821_v59  ;;  %v5279_v23 = vand.u32 4294901760, %v19444_v1  ;;  %v17797_v46 = vpack.c.bf16 %v19436_v36, %v19444_v1  ;;  %v5659_v58 = vand.u32 4294901760, %v17985_v37  ;;  %16627 = vmatmul.mubr.f32.vlgmr.msra.gmra.mrb[32].mxu1 %v19302_v18 }
 0x1ae   :  { %v5287_v0 = vsub.f32 %v19436_v36, %v5286_v33  ;;  %v19459_v34 = vsub.f32 %v17984_v52, %v5662_v39  ;;  %17711 = vmatpush3.bf16.msra.mxu1 %v19334_v6  ;;  %16633 = vmatprep.mubr.msk.f32.mxu1 %vm18669_vm1, %v18670_v22  ;;  %v19468_v15 = vpack.c.bf16 %v3909_v24, %v3902_v38 }
 0x1af   :  { %v5280_v60 = vsub.f32 %v19444_v1, %v5279_v23  ;;  %v19471_v28 = vpack.c.bf16 %v5662_v39, %v5659_v58  ;;  %v19473_v31 = vsub.f32 %v17985_v37, %v5659_v58  ;;  %17712 = vmatprep.subr.bf16.mxu1 %v18668_v12  ;;  %v19476_v41 = vpack.c.bf16 %v4370_v7, %v4363_v35 }
 0x1b0   :  { %v5288_v14 = vand.u32 4294901760, %v5287_v0  ;;  %v5745_v45 = vand.u32 4294901760, %v19459_v34  ;;  %v19479_v42 = vpack.c.bf16 %v4829_v9, %v4822_v48  ;;  %v19483_v62 = vpack.c.bf16 %v4368_v4, %v4361_v21 }
 0x1b1   :  { %v5281_v24 = vand.u32 4294901760, %v5280_v60  ;;  %v5738_v38 = vand.u32 4294901760, %v19473_v31  ;;  %v17815_v10 = vpack.c.bf16 %v19459_v34, %v19473_v31  ;;  %16592 = vmatmul.mubr.f32.vlgmr.msra.gmra.mrb[16].mxu0 %v19307_v49  ;;  %v19489_v27 = vpack.c.bf16 %v4827_v51, %v4820_v57 }
 0x1b2   :  { %v5746_v7 = vsub.f32 %v19459_v34, %v5745_v45  ;;  %17696 = vmatpush3.bf16.msra.mxu0 %v19342_v16  ;;  %16598 = vmatprep.mubr.msk.f32.mxu0 %vm18669_vm1, %v18670_v22  ;;  %v19495_v35 = vpack.c.bf16 %v5286_v33, %v5279_v23 }
 0x1b3   :  { %v5739_v4 = vsub.f32 %v19473_v31, %v5738_v38  ;;  %17697 = vmatprep.subr.bf16.mxu0 %v18668_v12  ;;  %v19499_v21 = vpack.c.bf16 %v5288_v14, %v5281_v24  ;;  %v19501_v52 = vpack.c.bf16 %v5745_v45, %v5738_v38 }
 0x1b4   :  { %v5747_v55 = vand.u32 4294901760, %v5746_v7 }
 0x1b5   :  { %v5740_v51 = vand.u32 4294901760, %v5739_v4  ;;  %16634 = vmatmul.mubr.f32.vlgmr.msra.gmra.mrb[32].mxu1 %v19307_v49 }
 0x1b6   :  { %17714 = vmatpush3.bf16.msra.mxu1 %v19371_v53  ;;  %16640 = vmatprep.mubr.msk.f32.mxu1 %vm18669_vm1, %v18670_v22 }
 0x1b7   :  { %17715 = vmatprep.subr.bf16.mxu1 %v18668_v12  ;;  %v19508_v16 = vpack.c.bf16 %v5747_v55, %v5740_v51 }
 0x1b9   :  { %16599 = vmatmul.mubr.f32.vlgmr.msra.gmra.mrb[16].mxu0 %v19297_v30 }
 0x1ba   :  { %17699 = vmatpush3.bf16.msra.mxu0 %v19316_v13  ;;  %16605 = vmatprep.mubr.msk.f32.mxu0 %vm18669_vm1, %v18670_v22 }
 0x1bb   :  { %17718 = vmatprep.subr.bf16.mxu0 %v18668_v12 }
 0x1bd   :  { %16641 = vmatmul.mubr.f32.vlgmr.msra.gmra.mrb[32].mxu1 %v19297_v30 }
 0x1be   :  { %17717 = vmatpush3.bf16.msra.mxu1 %v19334_v6  ;;  %16647 = vmatprep.mubr.msk.f32.mxu1 %vm18669_vm1, %v18670_v22 }
 0x1bf   :  { %17736 = vmatprep.subr.bf16.mxu1 %v18668_v12 }
 0x1c1   :  { %16606 = vmatmul.mubr.f32.vlgmr.msra.gmra.mrb[16].mxu0 %v19297_v30 }
 0x1c2   :  { %17720 = vmatpush3.bf16.msra.mxu0 %v19355_v5  ;;  %16654 = vmatprep.mubr.msk.f32.mxu0 %vm18669_vm1, %v18670_v22 }
 0x1c3   :  { %17721 = vmatprep.subr.bf16.mxu0 %v18668_v12 }
 0x1c5   :  { %16648 = vmatmul.mubr.f32.vlgmr.msra.gmra.mrb[32].mxu1 %v19297_v30  ;;  %16655 = vmatmul.mubr.f32.vlgmr.msra.gmra.mrb[18].mxu0 %v19322_v32 }
 0x1c6   :  { %17723 = vmatpush3.bf16.msra.mxu0 %v19406_v54  ;;  %17738 = vmatpush3.bf16.msra.mxu1 %v19376_v61 }
 0x1c7   :  { %16696 = vmatprep.mubr.msk.f32.mxu1 %vm18669_vm1, %v18670_v22  ;;  %17739 = vmatprep.subr.bf16.mxu1 %v18668_v12 }
 0x1c8   :  { %16661 = vmatprep.mubr.msk.f32.mxu0 %vm18669_vm1, %v18670_v22  ;;  %17724 = vmatprep.subr.bf16.mxu0 %v18668_v12 }
 0x1c9   :  { %16697 = vmatmul.mubr.f32.vlgmr.msra.gmra.mrb[34].mxu1 %v19322_v32 }
 0x1ca   :  { %17741 = vmatpush3.bf16.msra.mxu1 %v19429_v56  ;;  %16703 = vmatprep.mubr.msk.f32.mxu1 %vm18669_vm1, %v18670_v22 }
 0x1cb   :  { %17742 = vmatprep.subr.bf16.mxu1 %v18668_v12 }
 0x1cd   :  { %16662 = vmatmul.mubr.f32.vlgmr.msra.gmra.mrb[18].mxu0 %v19297_v30 }
 0x1ce   :  { %17726 = vmatpush3.bf16.msra.mxu0 %v17725_v19  ;;  %16668 = vmatprep.mubr.msk.f32.mxu0 %vm18669_vm1, %v18670_v22 }
 0x1cf   :  { %17727 = vmatprep.subr.bf16.mxu0 %v18668_v12 }
 0x1d1   :  { %16704 = vmatmul.mubr.f32.vlgmr.msra.gmra.mrb[34].mxu1 %v19297_v30 }
 0x1d2   :  { %17744 = vmatpush3.bf16.msra.mxu1 %v17743_v40  ;;  %16710 = vmatprep.mubr.msk.f32.mxu1 %vm18669_vm1, %v18670_v22 }
 0x1d3   :  { %17745 = vmatprep.subr.bf16.mxu1 %v18668_v12 }
 0x1d5   :  { %16669 = vmatmul.mubr.f32.vlgmr.msra.gmra.mrb[18].mxu0 %v19302_v18 }
 0x1d6   :  { %17729 = vmatpush3.bf16.msra.mxu0 %v19355_v5  ;;  %16675 = vmatprep.mubr.msk.f32.mxu0 %vm18669_vm1, %v18670_v22 }
 0x1d7   :  { %17730 = vmatprep.subr.bf16.mxu0 %v18668_v12 }
 0x1d9   :  { %16711 = vmatmul.mubr.f32.vlgmr.msra.gmra.mrb[34].mxu1 %v19302_v18 }
 0x1da   :  { %17747 = vmatpush3.bf16.msra.mxu1 %v19376_v61  ;;  %16717 = vmatprep.mubr.msk.f32.mxu1 %vm18669_vm1, %v18670_v22 }
 0x1db   :  { %17748 = vmatprep.subr.bf16.mxu1 %v18668_v12 }
 0x1dd   :  { %16676 = vmatmul.mubr.f32.vlgmr.msra.gmra.mrb[18].mxu0 %v19307_v49 }
 0x1de   :  { %17732 = vmatpush3.bf16.msra.mxu0 %v19452_v8  ;;  %16682 = vmatprep.mubr.msk.f32.mxu0 %vm18669_vm1, %v18670_v22 }
 0x1df   :  { %17733 = vmatprep.subr.bf16.mxu0 %v18668_v12 }
 0x1e1   :  { %16718 = vmatmul.mubr.f32.vlgmr.msra.gmra.mrb[34].mxu1 %v19307_v49 }
 0x1e2   :  { %17750 = vmatpush3.bf16.msra.mxu1 %v19468_v15  ;;  %16724 = vmatprep.mubr.msk.f32.mxu1 %vm18669_vm1, %v18670_v22 }
 0x1e3   :  { %17751 = vmatprep.subr.bf16.mxu1 %v18668_v12 }
 0x1e5   :  { %16683 = vmatmul.mubr.f32.vlgmr.msra.gmra.mrb[18].mxu0 %v19297_v30 }
 0x1e6   :  { %17735 = vmatpush3.bf16.msra.mxu0 %v19355_v5  ;;  %16689 = vmatprep.mubr.msk.f32.mxu0 %vm18669_vm1, %v18670_v22 }
 0x1e7   :  { %17754 = vmatprep.subr.bf16.mxu0 %v18668_v12 }
 0x1e9   :  { %16725 = vmatmul.mubr.f32.vlgmr.msra.gmra.mrb[34].mxu1 %v19297_v30 }
 0x1ea   :  { %17753 = vmatpush3.bf16.msra.mxu1 %v19376_v61  ;;  %16731 = vmatprep.mubr.msk.f32.mxu1 %vm18669_vm1, %v18670_v22 }
 0x1eb   :  { %17772 = vmatprep.subr.bf16.mxu1 %v18668_v12 }
 0x1ed   :  { %16690 = vmatmul.mubr.f32.vlgmr.msra.gmra.mrb[18].mxu0 %v19297_v30 }
 0x1ee   :  { %17756 = vmatpush3.bf16.msra.mxu0 %v19397_v17  ;;  %16738 = vmatprep.mubr.msk.f32.mxu0 %vm18669_vm1, %v18670_v22 }
 0x1ef   :  { %17757 = vmatprep.subr.bf16.mxu0 %v18668_v12 }
 0x1f1   :  { %16732 = vmatmul.mubr.f32.vlgmr.msra.gmra.mrb[34].mxu1 %v19297_v30  ;;  %16739 = vmatmul.mubr.f32.vlgmr.msra.gmra.mrb[20].mxu0 %v19322_v32 }
 0x1f2   :  { %17759 = vmatpush3.bf16.msra.mxu0 %v19476_v41  ;;  %17774 = vmatpush3.bf16.msra.mxu1 %v19423_v44 }
 0x1f3   :  { %16780 = vmatprep.mubr.msk.f32.mxu1 %vm18669_vm1, %v18670_v22  ;;  %17775 = vmatprep.subr.bf16.mxu1 %v18668_v12 }
 0x1f4   :  { %16745 = vmatprep.mubr.msk.f32.mxu0 %vm18669_vm1, %v18670_v22  ;;  %17760 = vmatprep.subr.bf16.mxu0 %v18668_v12 }
 0x1f5   :  { %16781 = vmatmul.mubr.f32.vlgmr.msra.gmra.mrb[36].mxu1 %v19322_v32 }
 0x1f6   :  { %17777 = vmatpush3.bf16.msra.mxu1 %v19479_v42  ;;  %16787 = vmatprep.mubr.msk.f32.mxu1 %vm18669_vm1, %v18670_v22 }
 0x1f7   :  { %17778 = vmatprep.subr.bf16.mxu1 %v18668_v12 }
 0x1f9   :  { %16746 = vmatmul.mubr.f32.vlgmr.msra.gmra.mrb[20].mxu0 %v19297_v30 }
 0x1fa   :  { %17762 = vmatpush3.bf16.msra.mxu0 %v17761_v50  ;;  %16752 = vmatprep.mubr.msk.f32.mxu0 %vm18669_vm1, %v18670_v22 }
 0x1fb   :  { %17763 = vmatprep.subr.bf16.mxu0 %v18668_v12 }
 0x1fd   :  { %16788 = vmatmul.mubr.f32.vlgmr.msra.gmra.mrb[36].mxu1 %v19297_v30 }
 0x1fe   :  { %17780 = vmatpush3.bf16.msra.mxu1 %v17779_v25  ;;  %16794 = vmatprep.mubr.msk.f32.mxu1 %vm18669_vm1, %v18670_v22 }
 0x1ff   :  { %17781 = vmatprep.subr.bf16.mxu1 %v18668_v12 }
 0x201   :  { %16753 = vmatmul.mubr.f32.vlgmr.msra.gmra.mrb[20].mxu0 %v19302_v18 }
 0x202   :  { %17765 = vmatpush3.bf16.msra.mxu0 %v19397_v17  ;;  %16759 = vmatprep.mubr.msk.f32.mxu0 %vm18669_vm1, %v18670_v22 }
 0x203   :  { %17766 = vmatprep.subr.bf16.mxu0 %v18668_v12 }
 0x205   :  { %16795 = vmatmul.mubr.f32.vlgmr.msra.gmra.mrb[36].mxu1 %v19302_v18 }
 0x206   :  { %17783 = vmatpush3.bf16.msra.mxu1 %v19423_v44  ;;  %16801 = vmatprep.mubr.msk.f32.mxu1 %vm18669_vm1, %v18670_v22 }
 0x207   :  { %17784 = vmatprep.subr.bf16.mxu1 %v18668_v12 }
 0x209   :  { %16760 = vmatmul.mubr.f32.vlgmr.msra.gmra.mrb[20].mxu0 %v19307_v49 }
 0x20a   :  { %17768 = vmatpush3.bf16.msra.mxu0 %v19483_v62  ;;  %16766 = vmatprep.mubr.msk.f32.mxu0 %vm18669_vm1, %v18670_v22 }
 0x20b   :  { %17769 = vmatprep.subr.bf16.mxu0 %v18668_v12 }
 0x20d   :  { %16802 = vmatmul.mubr.f32.vlgmr.msra.gmra.mrb[36].mxu1 %v19307_v49 }
 0x20e   :  { %17786 = vmatpush3.bf16.msra.mxu1 %v19489_v27  ;;  %16808 = vmatprep.mubr.msk.f32.mxu1 %vm18669_vm1, %v18670_v22 }
 0x20f   :  { %17787 = vmatprep.subr.bf16.mxu1 %v18668_v12 }
 0x211   :  { %16767 = vmatmul.mubr.f32.vlgmr.msra.gmra.mrb[20].mxu0 %v19297_v30 }
 0x212   :  { %17771 = vmatpush3.bf16.msra.mxu0 %v19397_v17  ;;  %16773 = vmatprep.mubr.msk.f32.mxu0 %vm18669_vm1, %v18670_v22 }
 0x213   :  { %17790 = vmatprep.subr.bf16.mxu0 %v18668_v12 }
 0x215   :  { %16809 = vmatmul.mubr.f32.vlgmr.msra.gmra.mrb[36].mxu1 %v19297_v30 }
 0x216   :  { %17789 = vmatpush3.bf16.msra.mxu1 %v19423_v44  ;;  %16815 = vmatprep.mubr.msk.f32.mxu1 %vm18669_vm1, %v18670_v22 }
 0x217   :  { %17808 = vmatprep.subr.bf16.mxu1 %v18668_v12 }
 0x219   :  { %16774 = vmatmul.mubr.f32.vlgmr.msra.gmra.mrb[20].mxu0 %v19297_v30 }
 0x21a   :  { %17792 = vmatpush3.bf16.msra.mxu0 %v19442_v2  ;;  %16822 = vmatprep.mubr.msk.f32.mxu0 %vm18669_vm1, %v18670_v22 }
 0x21b   :  { %17793 = vmatprep.subr.bf16.mxu0 %v18668_v12 }
 0x21d   :  { %16816 = vmatmul.mubr.f32.vlgmr.msra.gmra.mrb[36].mxu1 %v19297_v30  ;;  %16823 = vmatmul.mubr.f32.vlgmr.msra.gmra.mrb[22].mxu0 %v19322_v32 }
 0x21e   :  { %17795 = vmatpush3.bf16.msra.mxu0 %v19499_v21  ;;  %17810 = vmatpush3.bf16.msra.mxu1 %v19471_v28 }
 0x21f   :  { %16864 = vmatprep.mubr.msk.f32.mxu1 %vm18669_vm1, %v18670_v22  ;;  %17811 = vmatprep.subr.bf16.mxu1 %v18668_v12 }
 0x220   :  { %16829 = vmatprep.mubr.msk.f32.mxu0 %vm18669_vm1, %v18670_v22  ;;  %17796 = vmatprep.subr.bf16.mxu0 %v18668_v12 }
 0x221   :  { %16865 = vmatmul.mubr.f32.vlgmr.msra.gmra.mrb[38].mxu1 %v19322_v32 }
 0x222   :  { %17813 = vmatpush3.bf16.msra.mxu1 %v19508_v16  ;;  %16871 = vmatprep.mubr.msk.f32.mxu1 %vm18669_vm1, %v18670_v22 }
 0x223   :  { %17814 = vmatprep.subr.bf16.mxu1 %v18668_v12 }
 0x225   :  { %16830 = vmatmul.mubr.f32.vlgmr.msra.gmra.mrb[22].mxu0 %v19297_v30 }
 0x226   :  { %17798 = vmatpush3.bf16.msra.mxu0 %v17797_v46  ;;  %16836 = vmatprep.mubr.msk.f32.mxu0 %vm18669_vm1, %v18670_v22 }
 0x227   :  { %17799 = vmatprep.subr.bf16.mxu0 %v18668_v12 }
 0x229   :  { %16872 = vmatmul.mubr.f32.vlgmr.msra.gmra.mrb[38].mxu1 %v19297_v30 }
 0x22a   :  { %17816 = vmatpush3.bf16.msra.mxu1 %v17815_v10  ;;  %16878 = vmatprep.mubr.msk.f32.mxu1 %vm18669_vm1, %v18670_v22 }
 0x22b   :  { %17817 = vmatprep.subr.bf16.mxu1 %v18668_v12 }
 0x22d   :  { %16837 = vmatmul.mubr.f32.vlgmr.msra.gmra.mrb[22].mxu0 %v19302_v18 }
 0x22e   :  { %17801 = vmatpush3.bf16.msra.mxu0 %v19442_v2  ;;  %16843 = vmatprep.mubr.msk.f32.mxu0 %vm18669_vm1, %v18670_v22 }
 0x22f   :  { %17802 = vmatprep.subr.bf16.mxu0 %v18668_v12 }
 0x231   :  { %16879 = vmatmul.mubr.f32.vlgmr.msra.gmra.mrb[38].mxu1 %v19302_v18 }
 0x232   :  { %17819 = vmatpush3.bf16.msra.mxu1 %v19471_v28  ;;  %16885 = vmatprep.mubr.msk.f32.mxu1 %vm18669_vm1, %v18670_v22 }
 0x233   :  { %17820 = vmatprep.subr.bf16.mxu1 %v18668_v12 }
 0x235   :  { %16844 = vmatmul.mubr.f32.vlgmr.msra.gmra.mrb[22].mxu0 %v19307_v49 }
 0x236   :  { %17804 = vmatpush3.bf16.msra.mxu0 %v19495_v35  ;;  %16850 = vmatprep.mubr.msk.f32.mxu0 %vm18669_vm1, %v18670_v22 }
 0x237   :  { %17805 = vmatprep.subr.bf16.mxu0 %v18668_v12 }
 0x239   :  { %16886 = vmatmul.mubr.f32.vlgmr.msra.gmra.mrb[38].mxu1 %v19307_v49 }
 0x23a   :  { %17822 = vmatpush3.bf16.msra.mxu1 %v19501_v52  ;;  %16892 = vmatprep.mubr.msk.f32.mxu1 %vm18669_vm1, %v18670_v22 }
 0x23b   :  { %17823 = vmatprep.subr.bf16.mxu1 %v18668_v12 }
 0x23d   :  { %16851 = vmatmul.mubr.f32.vlgmr.msra.gmra.mrb[22].mxu0 %v19297_v30 }
 0x23e   :  { %17807 = vmatpush3.bf16.msra.mxu0 %v19442_v2  ;;  %16857 = vmatprep.mubr.msk.f32.mxu0 %vm18669_vm1, %v18670_v22 }
 0x23f   :  { %17826 = vmatprep.subr.bf16.mxu0 %v18668_v12 }
 0x241   :  { %16893 = vmatmul.mubr.f32.vlgmr.msra.gmra.mrb[38].mxu1 %v19297_v30 }
 0x242   :  { %17825 = vmatpush3.bf16.msra.mxu1 %v19471_v28  ;;  %16899 = vmatprep.mubr.msk.f32.mxu1 %vm18669_vm1, %v18670_v22 }
 0x243   :  { %17844 = vmatprep.subr.bf16.mxu1 %v18668_v12 }
 0x245   :  { %16858 = vmatmul.mubr.f32.vlgmr.msra.gmra.mrb[22].mxu0 %v19297_v30 }
 0x246   :  { %16906 = vmatprep.mubr.msk.f32.mxu0 %vm18669_vm1, %v18670_v22 }
 0x249   :  { %16900 = vmatmul.mubr.f32.vlgmr.msra.gmra.mrb[38].mxu1 %v19297_v30 }
 0x24a   :  { %16948 = vmatprep.mubr.msk.f32.mxu1 %vm18669_vm1, %v18670_v22 }
 0x24d   :  { %v16544_v13 = vpop.f32.mrb[16].mxu1 }
 0x24e   :  { %v6121_v6 = vand.u32 4294901760, %v16544_v13  ;;  %v2347_v43 = vpop.f32.mrb[17].mxu1 }
 0x24f   :  { %v6118_v5 = vand.u32 4294901760, %v2347_v43 }
 0x250   :  { %v19718_v20 = vsub.f32 %v16544_v13, %v6121_v6 }
 0x251   :  { %v19720_v19 = vpack.c.bf16 %v6121_v6, %v6118_v5  ;;  %v19722_v29 = vsub.f32 %v2347_v43, %v6118_v5  ;;  %v16547_v53 = vpop.f32.mrb[18].mxu1 }
 0x252   :  { %v6204_v61 = vand.u32 4294901760, %v19718_v20  ;;  %v6580_v63 = vand.u32 4294901760, %v16547_v53  ;;  %v2359_v40 = vpop.f32.mrb[19].mxu1 }
 0x253   :  { %v6197_v11 = vand.u32 4294901760, %v19722_v29  ;;  %v17833_v17 = vpack.c.bf16 %v19718_v20, %v19722_v29  ;;  %v6577_v26 = vand.u32 4294901760, %v2359_v40  ;;  %17828 = vmatpush3.bf16.msra.mxu0 %v19720_v19 }
 0x254   :  { %v6205_v54 = vsub.f32 %v19718_v20, %v6204_v61  ;;  %v19730_v50 = vsub.f32 %v16547_v53, %v6580_v63  ;;  %17829 = vmatprep.subr.bf16.mxu0 %v18668_v12 }
 0x255   :  { %v6198_v3 = vsub.f32 %v19722_v29, %v6197_v11  ;;  %v19734_v44 = vpack.c.bf16 %v6580_v63, %v6577_v26  ;;  %v19736_v47 = vsub.f32 %v2359_v40, %v6577_v26  ;;  %v16550_v56 = vpop.f32.mrb[20].mxu1  ;;  %v19738_v57 = vpack.c.bf16 %v6204_v61, %v6197_v11 }
 0x256   :  { %v6206_v25 = vand.u32 4294901760, %v6205_v54  ;;  %v6663_v36 = vand.u32 4294901760, %v19730_v50  ;;  %v7039_v59 = vand.u32 4294901760, %v16550_v56  ;;  %v2371_v2 = vpop.f32.mrb[21].mxu1  ;;  %16907 = vmatmul.mubr.f32.vlgmr.msra.gmra.mrb[24].mxu0 %v19322_v32 }
 0x257   :  { %v6199_v1 = vand.u32 4294901760, %v6198_v3  ;;  %v6656_v37 = vand.u32 4294901760, %v19736_v47  ;;  %v17851_v9 = vpack.c.bf16 %v19730_v50, %v19736_v47  ;;  %v7036_v33 = vand.u32 4294901760, %v2371_v2  ;;  %17846 = vmatpush3.bf16.msra.mxu1 %v19734_v44  ;;  %16913 = vmatprep.mubr.msk.f32.mxu0 %vm18669_vm1, %v18670_v22 }
 0x258   :  { %v6664_v39 = vsub.f32 %v19730_v50, %v6663_v36  ;;  %v19749_v8 = vsub.f32 %v16550_v56, %v7039_v59  ;;  %17847 = vmatprep.subr.bf16.mxu1 %v18668_v12 }
 0x259   :  { %v6657_v48 = vsub.f32 %v19736_v47, %v6656_v37  ;;  %v19753_v23 = vpack.c.bf16 %v7039_v59, %v7036_v33  ;;  %v19755_v46 = vsub.f32 %v2371_v2, %v7036_v33  ;;  %v16553_v58 = vpop.f32.mrb[22].mxu1  ;;  %v17830_v0 = vpack.c.bf16 %v6206_v25, %v6199_v1 }
 0x25a   :  { %v6665_v34 = vand.u32 4294901760, %v6664_v39  ;;  %v7122_v15 = vand.u32 4294901760, %v19749_v8  ;;  %v7498_v60 = vand.u32 4294901760, %v16553_v58  ;;  %v2383_v28 = vpop.f32.mrb[23].mxu1  ;;  %16949 = vmatmul.mubr.f32.vlgmr.msra.gmra.mrb[40].mxu1 %v19322_v32  ;;  %v19759_v31 = vpack.c.bf16 %v6663_v36, %v6656_v37 }
 0x25b   :  { %v6658_v41 = vand.u32 4294901760, %v6657_v48  ;;  %v7115_v14 = vand.u32 4294901760, %v19755_v46  ;;  %v17869_v45 = vpack.c.bf16 %v19749_v8, %v19755_v46  ;;  %v7495_v42 = vand.u32 4294901760, %v2383_v28  ;;  %17831 = vmatpush3.bf16.msra.mxu0 %v17830_v0  ;;  %16955 = vmatprep.mubr.msk.f32.mxu1 %vm18669_vm1, %v18670_v22 }
 0x25c   :  { %v7123_v62 = vsub.f32 %v19749_v8, %v7122_v15  ;;  %v19767_v24 = vsub.f32 %v16553_v58, %v7498_v60  ;;  %17832 = vmatprep.subr.bf16.mxu0 %v18668_v12 }
 0x25d   :  { %v7116_v38 = vsub.f32 %v19755_v46, %v7115_v14  ;;  %v19771_v10 = vpack.c.bf16 %v7498_v60, %v7495_v42  ;;  %v19773_v27 = vsub.f32 %v2383_v28, %v7495_v42  ;;  %v16556_v7 = vpop.f32.mrb[24].mxu1  ;;  %v17848_v35 = vpack.c.bf16 %v6665_v34, %v6658_v41 }
 0x25e   :  { %v7124_v4 = vand.u32 4294901760, %v7123_v62  ;;  %v7581_v21 = vand.u32 4294901760, %v19767_v24  ;;  %v7957_v52 = vand.u32 4294901760, %v16556_v7  ;;  %v2395_v55 = vpop.f32.mrb[25].mxu1  ;;  %16914 = vmatmul.mubr.f32.vlgmr.msra.gmra.mrb[24].mxu0 %v19297_v30  ;;  %v19777_v51 = vpack.c.bf16 %v7122_v15, %v7115_v14 }
 0x25f   :  { %v7117_v16 = vand.u32 4294901760, %v7116_v38  ;;  %v7574_v13 = vand.u32 4294901760, %v19773_v27  ;;  %v17887_v6 = vpack.c.bf16 %v19767_v24, %v19773_v27  ;;  %v7954_v43 = vand.u32 4294901760, %v2395_v55  ;;  %17834 = vmatpush3.bf16.msra.mxu0 %v17833_v17  ;;  %17849 = vmatpush3.bf16.msra.mxu1 %v17848_v35 }
 0x260   :  { %v7582_v5 = vsub.f32 %v19767_v24, %v7581_v21  ;;  %v19783_v20 = vsub.f32 %v16556_v7, %v7957_v52  ;;  %17850 = vmatprep.subr.bf16.mxu1 %v18668_v12  ;;  %16920 = vmatprep.mubr.msk.f32.mxu0 %vm18669_vm1, %v18670_v22 }
 0x261   :  { %v7575_v29 = vsub.f32 %v19773_v27, %v7574_v13  ;;  %v19789_v53 = vpack.c.bf16 %v7957_v52, %v7954_v43  ;;  %v19791_v61 = vsub.f32 %v2395_v55, %v7954_v43  ;;  %v16559_v63 = vpop.f32.mrb[26].mxu1  ;;  %17835 = vmatprep.subr.bf16.mxu0 %v18668_v12  ;;  %v19794_v40 = vpack.c.bf16 %v7124_v4, %v7117_v16 }
 0x262   :  { %v7583_v11 = vand.u32 4294901760, %v7582_v5  ;;  %v8040_v17 = vand.u32 4294901760, %v19783_v20  ;;  %v8416_v26 = vand.u32 4294901760, %v16559_v63  ;;  %v2407_v54 = vpop.f32.mrb[27].mxu1  ;;  %16956 = vmatmul.mubr.f32.vlgmr.msra.gmra.mrb[40].mxu1 %v19297_v30  ;;  %v19798_v3 = vpack.c.bf16 %v7581_v21, %v7574_v13 }
 0x263   :  { %v7576_v56 = vand.u32 4294901760, %v7575_v29  ;;  %v8033_v25 = vand.u32 4294901760, %v19791_v61  ;;  %v17905_v36 = vpack.c.bf16 %v19783_v20, %v19791_v61  ;;  %v8413_v59 = vand.u32 4294901760, %v2407_v54  ;;  %17852 = vmatpush3.bf16.msra.mxu1 %v17851_v9  ;;  %16962 = vmatprep.mubr.msk.f32.mxu1 %vm18669_vm1, %v18670_v22 }
 0x264   :  { %v8041_v2 = vsub.f32 %v19783_v20, %v8040_v17  ;;  %v19809_v1 = vsub.f32 %v16559_v63, %v8416_v26  ;;  %17853 = vmatprep.subr.bf16.mxu1 %v18668_v12 }
 0x265   :  { %v8034_v37 = vsub.f32 %v19791_v61, %v8033_v25  ;;  %v19813_v33 = vpack.c.bf16 %v8416_v26, %v8413_v59  ;;  %v19815_v39 = vsub.f32 %v2407_v54, %v8413_v59  ;;  %v16562_v48 = vpop.f32.mrb[28].mxu1  ;;  %v19817_v58 = vpack.c.bf16 %v7583_v11, %v7576_v56 }
 0x266   :  { %v8042_v50 = vand.u32 4294901760, %v8041_v2  ;;  %v8499_v47 = vand.u32 4294901760, %v19809_v1  ;;  %v8875_v9 = vand.u32 4294901760, %v16562_v48  ;;  %v2419_v0 = vpop.f32.mrb[29].mxu1  ;;  %16921 = vmatmul.mubr.f32.vlgmr.msra.gmra.mrb[24].mxu0 %v19302_v18  ;;  %v19821_v34 = vpack.c.bf16 %v8040_v17, %v8033_v25 }
 0x267   :  { %v8035_v15 = vand.u32 4294901760, %v8034_v37  ;;  %v8492_v60 = vand.u32 4294901760, %v19815_v39  ;;  %v17923_v28 = vpack.c.bf16 %v19809_v1, %v19815_v39  ;;  %v8872_v41 = vand.u32 4294901760, %v2419_v0  ;;  %17837 = vmatpush3.bf16.msra.mxu0 %v19720_v19  ;;  %16927 = vmatprep.mubr.msk.f32.mxu0 %vm18669_vm1, %v18670_v22 }
 0x268   :  { %v8500_v14 = vsub.f32 %v19809_v1, %v8499_v47  ;;  %v19830_v42 = vsub.f32 %v16562_v48, %v8875_v9  ;;  %17838 = vmatprep.subr.bf16.mxu0 %v18668_v12 }
 0x269   :  { %v8493_v62 = vsub.f32 %v19815_v39, %v8492_v60  ;;  %v19834_v38 = vpack.c.bf16 %v8875_v9, %v8872_v41  ;;  %v19836_v7 = vsub.f32 %v2419_v0, %v8872_v41  ;;  %v16565_v35 = vpop.f32.mrb[30].mxu1  ;;  %v19838_v4 = vpack.c.bf16 %v8042_v50, %v8035_v15 }
 0x26a   :  { %v8501_v21 = vand.u32 4294901760, %v8500_v14  ;;  %v8958_v52 = vand.u32 4294901760, %v19830_v42  ;;  %v9334_v55 = vand.u32 4294901760, %v16565_v35  ;;  %v2431_v16 = vpop.f32.mrb[31].mxu1  ;;  %16963 = vmatmul.mubr.f32.vlgmr.msra.gmra.mrb[40].mxu1 %v19302_v18  ;;  %v19842_v13 = vpack.c.bf16 %v8499_v47, %v8492_v60 }
 0x26b   :  { %v8494_v43 = vand.u32 4294901760, %v8493_v62  ;;  %v8951_v5 = vand.u32 4294901760, %v19836_v7  ;;  %v17941_v29 = vpack.c.bf16 %v19830_v42, %v19836_v7  ;;  %v9331_v63 = vand.u32 4294901760, %v2431_v16  ;;  %17855 = vmatpush3.bf16.msra.mxu1 %v19734_v44  ;;  %16969 = vmatprep.mubr.msk.f32.mxu1 %vm18669_vm1, %v18670_v22 }
 0x26c   :  { %v8959_v11 = vsub.f32 %v19830_v42, %v8958_v52  ;;  %v19851_v17 = vsub.f32 %v16565_v35, %v9334_v55  ;;  %17856 = vmatprep.subr.bf16.mxu1 %v18668_v12 }
 0x26d   :  { %v8952_v26 = vsub.f32 %v19836_v7, %v8951_v5  ;;  %v19855_v54 = vpack.c.bf16 %v9334_v55, %v9331_v63  ;;  %v19857_v56 = vsub.f32 %v2431_v16, %v9331_v63  ;;  %v19859_v25 = vpack.c.bf16 %v8501_v21, %v8494_v43 }
 0x26e   :  { %v8960_v59 = vand.u32 4294901760, %v8959_v11  ;;  %v9417_v2 = vand.u32 4294901760, %v19851_v17  ;;  %16928 = vmatmul.mubr.f32.vlgmr.msra.gmra.mrb[24].mxu0 %v19307_v49  ;;  %v19863_v37 = vpack.c.bf16 %v8958_v52, %v8951_v5 }
 0x26f   :  { %v8953_v48 = vand.u32 4294901760, %v8952_v26  ;;  %v9410_v50 = vand.u32 4294901760, %v19857_v56  ;;  %v17959_v47 = vpack.c.bf16 %v19851_v17, %v19857_v56  ;;  %17840 = vmatpush3.bf16.msra.mxu0 %v19738_v57  ;;  %16934 = vmatprep.mubr.msk.f32.mxu0 %vm18669_vm1, %v18670_v22 }
 0x270   :  { %v9418_v9 = vsub.f32 %v19851_v17, %v9417_v2  ;;  %17841 = vmatprep.subr.bf16.mxu0 %v18668_v12 }
 0x271   :  { %v9411_v0 = vsub.f32 %v19857_v56, %v9410_v50  ;;  %v19874_v15 = vpack.c.bf16 %v8960_v59, %v8953_v48  ;;  %v19876_v60 = vpack.c.bf16 %v9417_v2, %v9410_v50 }
 0x272   :  { %v9419_v41 = vand.u32 4294901760, %v9418_v9  ;;  %16970 = vmatmul.mubr.f32.vlgmr.msra.gmra.mrb[40].mxu1 %v19307_v49 }
 0x273   :  { %v9412_v14 = vand.u32 4294901760, %v9411_v0  ;;  %17858 = vmatpush3.bf16.msra.mxu1 %v19759_v31  ;;  %16976 = vmatprep.mubr.msk.f32.mxu1 %vm18669_vm1, %v18670_v22 }
 0x274   :  { %17859 = vmatprep.subr.bf16.mxu1 %v18668_v12 }
 0x275   :  { %v19883_v57 = vpack.c.bf16 %v9419_v41, %v9412_v14 }
 0x276   :  { %16935 = vmatmul.mubr.f32.vlgmr.msra.gmra.mrb[24].mxu0 %v19297_v30 }
 0x277   :  { %17843 = vmatpush3.bf16.msra.mxu0 %v19720_v19  ;;  %16941 = vmatprep.mubr.msk.f32.mxu0 %vm18669_vm1, %v18670_v22 }
 0x278   :  { %17862 = vmatprep.subr.bf16.mxu0 %v18668_v12 }
 0x27a   :  { %16977 = vmatmul.mubr.f32.vlgmr.msra.gmra.mrb[40].mxu1 %v19297_v30 }
 0x27b   :  { %17861 = vmatpush3.bf16.msra.mxu1 %v19734_v44  ;;  %16983 = vmatprep.mubr.msk.f32.mxu1 %vm18669_vm1, %v18670_v22 }
 0x27c   :  { %17880 = vmatprep.subr.bf16.mxu1 %v18668_v12 }
 0x27e   :  { %16942 = vmatmul.mubr.f32.vlgmr.msra.gmra.mrb[24].mxu0 %v19297_v30 }
 0x27f   :  { %17864 = vmatpush3.bf16.msra.mxu0 %v19753_v23  ;;  %16990 = vmatprep.mubr.msk.f32.mxu0 %vm18669_vm1, %v18670_v22 }
 0x280   :  { %17865 = vmatprep.subr.bf16.mxu0 %v18668_v12 }
 0x282   :  { %16984 = vmatmul.mubr.f32.vlgmr.msra.gmra.mrb[40].mxu1 %v19297_v30  ;;  %16991 = vmatmul.mubr.f32.vlgmr.msra.gmra.mrb[26].mxu0 %v19322_v32 }
 0x283   :  { %17867 = vmatpush3.bf16.msra.mxu0 %v19794_v40  ;;  %17882 = vmatpush3.bf16.msra.mxu1 %v19771_v10 }
 0x284   :  { %17032 = vmatprep.mubr.msk.f32.mxu1 %vm18669_vm1, %v18670_v22  ;;  %17883 = vmatprep.subr.bf16.mxu1 %v18668_v12 }
 0x285   :  { %16997 = vmatprep.mubr.msk.f32.mxu0 %vm18669_vm1, %v18670_v22  ;;  %17868 = vmatprep.subr.bf16.mxu0 %v18668_v12 }
 0x286   :  { %17033 = vmatmul.mubr.f32.vlgmr.msra.gmra.mrb[42].mxu1 %v19322_v32 }
 0x287   :  { %17885 = vmatpush3.bf16.msra.mxu1 %v19817_v58  ;;  %17039 = vmatprep.mubr.msk.f32.mxu1 %vm18669_vm1, %v18670_v22 }
 0x288   :  { %17886 = vmatprep.subr.bf16.mxu1 %v18668_v12 }
 0x28a   :  { %16998 = vmatmul.mubr.f32.vlgmr.msra.gmra.mrb[26].mxu0 %v19297_v30 }
 0x28b   :  { %17870 = vmatpush3.bf16.msra.mxu0 %v17869_v45  ;;  %17004 = vmatprep.mubr.msk.f32.mxu0 %vm18669_vm1, %v18670_v22 }
 0x28c   :  { %17871 = vmatprep.subr.bf16.mxu0 %v18668_v12 }
 0x28e   :  { %17040 = vmatmul.mubr.f32.vlgmr.msra.gmra.mrb[42].mxu1 %v19297_v30 }
 0x28f   :  { %17888 = vmatpush3.bf16.msra.mxu1 %v17887_v6  ;;  %17046 = vmatprep.mubr.msk.f32.mxu1 %vm18669_vm1, %v18670_v22 }
 0x290   :  { %17889 = vmatprep.subr.bf16.mxu1 %v18668_v12 }
 0x292   :  { %17005 = vmatmul.mubr.f32.vlgmr.msra.gmra.mrb[26].mxu0 %v19302_v18 }
 0x293   :  { %17873 = vmatpush3.bf16.msra.mxu0 %v19753_v23  ;;  %17011 = vmatprep.mubr.msk.f32.mxu0 %vm18669_vm1, %v18670_v22 }
 0x294   :  { %v19933_v19 = vpop.f32.mrb[16].mxu0  ;;  %17874 = vmatprep.subr.bf16.mxu0 %v18668_v12 }
 0x295   :  { %v16607_v44 = vpop.f32.mrb[17].mxu0 }
 0x296   :  { %17047 = vmatmul.mubr.f32.vlgmr.msra.gmra.mrb[42].mxu1 %v19302_v18 }
 0x297   :  { %17891 = vmatpush3.bf16.msra.mxu1 %v19771_v10  ;;  %17053 = vmatprep.mubr.msk.f32.mxu1 %vm18669_vm1, %v18670_v22 }
 0x298   :  { %v19940_v8 = vpop.f32.mrb[32].mxu1  ;;  %17892 = vmatprep.subr.bf16.mxu1 %v18668_v12 }
 0x299   :  { %v16649_v46 = vpop.f32.mrb[33].mxu1 }
 0x29a   :  { %17012 = vmatmul.mubr.f32.vlgmr.msra.gmra.mrb[26].mxu0 %v19307_v49 }
 0x29b   :  { %17876 = vmatpush3.bf16.msra.mxu0 %v19777_v51  ;;  %17018 = vmatprep.mubr.msk.f32.mxu0 %vm18669_vm1, %v18670_v22 }
 0x29c   :  { %17877 = vmatprep.subr.bf16.mxu0 %v18668_v12 }
 0x29e   :  { %17054 = vmatmul.mubr.f32.vlgmr.msra.gmra.mrb[42].mxu1 %v19307_v49 }
 0x29f   :  { %17894 = vmatpush3.bf16.msra.mxu1 %v19798_v3  ;;  %17060 = vmatprep.mubr.msk.f32.mxu1 %vm18669_vm1, %v18670_v22 }
 0x2a0   :  { %17895 = vmatprep.subr.bf16.mxu1 %v18668_v12 }
 0x2a2   :  { %17019 = vmatmul.mubr.f32.vlgmr.msra.gmra.mrb[26].mxu0 %v19297_v30 }
 0x2a3   :  { %17879 = vmatpush3.bf16.msra.mxu0 %v19753_v23  ;;  %17025 = vmatprep.mubr.msk.f32.mxu0 %vm18669_vm1, %v18670_v22 }
 0x2a4   :  { %17898 = vmatprep.subr.bf16.mxu0 %v18668_v12 }
 0x2a6   :  { %17061 = vmatmul.mubr.f32.vlgmr.msra.gmra.mrb[42].mxu1 %v19297_v30 }
 0x2a7   :  { %17897 = vmatpush3.bf16.msra.mxu1 %v19771_v10  ;;  %17067 = vmatprep.mubr.msk.f32.mxu1 %vm18669_vm1, %v18670_v22 }
 0x2a8   :  { %17916 = vmatprep.subr.bf16.mxu1 %v18668_v12 }
 0x2aa   :  { %17026 = vmatmul.mubr.f32.vlgmr.msra.gmra.mrb[26].mxu0 %v19297_v30 }
 0x2ab   :  { %17900 = vmatpush3.bf16.msra.mxu0 %v19789_v53  ;;  %17074 = vmatprep.mubr.msk.f32.mxu0 %vm18669_vm1, %v18670_v22 }
 0x2ac   :  { %17901 = vmatprep.subr.bf16.mxu0 %v18668_v12 }
 0x2ae   :  { %17068 = vmatmul.mubr.f32.vlgmr.msra.gmra.mrb[42].mxu1 %v19297_v30  ;;  %17075 = vmatmul.mubr.f32.vlgmr.msra.gmra.mrb[28].mxu0 %v19322_v32 }
 0x2af   :  { %17903 = vmatpush3.bf16.msra.mxu0 %v19838_v4  ;;  %17918 = vmatpush3.bf16.msra.mxu1 %v19813_v33 }
 0x2b0   :  { %17116 = vmatprep.mubr.msk.f32.mxu1 %vm18669_vm1, %v18670_v22  ;;  %17919 = vmatprep.subr.bf16.mxu1 %v18668_v12 }
 0x2b1   :  { %17081 = vmatprep.mubr.msk.f32.mxu0 %vm18669_vm1, %v18670_v22  ;;  %17904 = vmatprep.subr.bf16.mxu0 %v18668_v12 }
 0x2b2   :  { %17117 = vmatmul.mubr.f32.vlgmr.msra.gmra.mrb[44].mxu1 %v19322_v32 }
 0x2b3   :  { %17921 = vmatpush3.bf16.msra.mxu1 %v19859_v25  ;;  %17123 = vmatprep.mubr.msk.f32.mxu1 %vm18669_vm1, %v18670_v22 }
 0x2b4   :  { %17922 = vmatprep.subr.bf16.mxu1 %v18668_v12 }
 0x2b6   :  { %17082 = vmatmul.mubr.f32.vlgmr.msra.gmra.mrb[28].mxu0 %v19297_v30 }
 0x2b7   :  { %17906 = vmatpush3.bf16.msra.mxu0 %v17905_v36  ;;  %17088 = vmatprep.mubr.msk.f32.mxu0 %vm18669_vm1, %v18670_v22  ;;  %v9798_v36 = vrot.slane %v19940_v8, 4 }
 0x2b8   :  { %17907 = vmatprep.subr.bf16.mxu0 %v18668_v12 }
 0x2ba   :  { %17124 = vmatmul.mubr.f32.vlgmr.msra.gmra.mrb[44].mxu1 %v19297_v30 }
 0x2bb   :  { %17924 = vmatpush3.bf16.msra.mxu1 %v17923_v28  ;;  %17130 = vmatprep.mubr.msk.f32.mxu1 %vm18669_vm1, %v18670_v22 }
 0x2bc   :  { %17925 = vmatprep.subr.bf16.mxu1 %v18668_v12 }
 0x2be   :  { %17089 = vmatmul.mubr.f32.vlgmr.msra.gmra.mrb[28].mxu0 %v19302_v18 }
 0x2bf   :  { %17909 = vmatpush3.bf16.msra.mxu0 %v19789_v53  ;;  %17095 = vmatprep.mubr.msk.f32.mxu0 %vm18669_vm1, %v18670_v22 }
 0x2c0   :  { %v20001_v23 = vpop.f32.mrb[18].mxu0  ;;  %17910 = vmatprep.subr.bf16.mxu0 %v18668_v12 }
 0x2c1   :  { %v16691_v31 = vpop.f32.mrb[19].mxu0  ;;  %v9799_v1 = vrot.slane %v20001_v23, 4 }
 0x2c2   :  { %17131 = vmatmul.mubr.f32.vlgmr.msra.gmra.mrb[44].mxu1 %v19302_v18 }
 0x2c3   :  { %17927 = vmatpush3.bf16.msra.mxu1 %v19813_v33  ;;  %17137 = vmatprep.mubr.msk.f32.mxu1 %vm18669_vm1, %v18670_v22 }
 0x2c4   :  { %v20008_v45 = vpop.f32.mrb[34].mxu1  ;;  %17928 = vmatprep.subr.bf16.mxu1 %v18668_v12 }
 0x2c5   :  { %v16733_v24 = vpop.f32.mrb[35].mxu1 }
 0x2c6   :  { %17096 = vmatmul.mubr.f32.vlgmr.msra.gmra.mrb[28].mxu0 %v19307_v49 }
 0x2c7   :  { %17912 = vmatpush3.bf16.msra.mxu0 %v19821_v34  ;;  %17102 = vmatprep.mubr.msk.f32.mxu0 %vm18669_vm1, %v18670_v22 }
 0x2c8   :  { %17913 = vmatprep.subr.bf16.mxu0 %v18668_v12 }
 0x2ca   :  { %17138 = vmatmul.mubr.f32.vlgmr.msra.gmra.mrb[44].mxu1 %v19307_v49 }
 0x2cb   :  { %17930 = vmatpush3.bf16.msra.mxu1 %v19842_v13  ;;  %17144 = vmatprep.mubr.msk.f32.mxu1 %vm18669_vm1, %v18670_v22 }
 0x2cc   :  { %17931 = vmatprep.subr.bf16.mxu1 %v18668_v12 }
 0x2ce   :  { %17103 = vmatmul.mubr.f32.vlgmr.msra.gmra.mrb[28].mxu0 %v19297_v30 }
 0x2cf   :  { %17915 = vmatpush3.bf16.msra.mxu0 %v19789_v53  ;;  %17109 = vmatprep.mubr.msk.f32.mxu0 %vm18669_vm1, %v18670_v22 }
 0x2d0   :  { %17934 = vmatprep.subr.bf16.mxu0 %v18668_v12 }
 0x2d2   :  { %17145 = vmatmul.mubr.f32.vlgmr.msra.gmra.mrb[44].mxu1 %v19297_v30 }
 0x2d3   :  { %17933 = vmatpush3.bf16.msra.mxu1 %v19813_v33  ;;  %17151 = vmatprep.mubr.msk.f32.mxu1 %vm18669_vm1, %v18670_v22  ;;  %v9800_v33 = vrot.slane %v20008_v45, 4 }
 0x2d4   :  { %17952 = vmatprep.subr.bf16.mxu1 %v18668_v12 }
 0x2d6   :  { %17110 = vmatmul.mubr.f32.vlgmr.msra.gmra.mrb[28].mxu0 %v19297_v30 }
 0x2d7   :  { %17936 = vmatpush3.bf16.msra.mxu0 %v19834_v38  ;;  %17158 = vmatprep.mubr.msk.f32.mxu0 %vm18669_vm1, %v18670_v22 }
 0x2d8   :  { %17937 = vmatprep.subr.bf16.mxu0 %v18668_v12 }
 0x2da   :  { %17152 = vmatmul.mubr.f32.vlgmr.msra.gmra.mrb[44].mxu1 %v19297_v30  ;;  %17159 = vmatmul.mubr.f32.vlgmr.msra.gmra.mrb[30].mxu0 %v19322_v32 }
 0x2db   :  { %17939 = vmatpush3.bf16.msra.mxu0 %v19874_v15  ;;  %17954 = vmatpush3.bf16.msra.mxu1 %v19855_v54 }
 0x2dc   :  { %17200 = vmatprep.mubr.msk.f32.mxu1 %vm18669_vm1, %v18670_v22  ;;  %17955 = vmatprep.subr.bf16.mxu1 %v18668_v12 }
 0x2dd   :  { %17165 = vmatprep.mubr.msk.f32.mxu0 %vm18669_vm1, %v18670_v22  ;;  %17940 = vmatprep.subr.bf16.mxu0 %v18668_v12 }
 0x2de   :  { %17201 = vmatmul.mubr.f32.vlgmr.msra.gmra.mrb[46].mxu1 %v19322_v32 }
 0x2df   :  { %17957 = vmatpush3.bf16.msra.mxu1 %v19883_v57  ;;  %17207 = vmatprep.mubr.msk.f32.mxu1 %vm18669_vm1, %v18670_v22 }
 0x2e0   :  { %17958 = vmatprep.subr.bf16.mxu1 %v18668_v12 }
 0x2e2   :  { %17166 = vmatmul.mubr.f32.vlgmr.msra.gmra.mrb[30].mxu0 %v19297_v30 }
 0x2e3   :  { %17942 = vmatpush3.bf16.msra.mxu0 %v17941_v29  ;;  %17172 = vmatprep.mubr.msk.f32.mxu0 %vm18669_vm1, %v18670_v22 }
 0x2e4   :  { %17943 = vmatprep.subr.bf16.mxu0 %v18668_v12 }
 0x2e6   :  { %17208 = vmatmul.mubr.f32.vlgmr.msra.gmra.mrb[46].mxu1 %v19297_v30 }
 0x2e7   :  { %17960 = vmatpush3.bf16.msra.mxu1 %v17959_v47  ;;  %17214 = vmatprep.mubr.msk.f32.mxu1 %vm18669_vm1, %v18670_v22 }
 0x2e8   :  { %17961 = vmatprep.subr.bf16.mxu1 %v18668_v12 }
 0x2ea   :  { %17173 = vmatmul.mubr.f32.vlgmr.msra.gmra.mrb[30].mxu0 %v19302_v18 }
 0x2eb   :  { %17945 = vmatpush3.bf16.msra.mxu0 %v19834_v38  ;;  %17179 = vmatprep.mubr.msk.f32.mxu0 %vm18669_vm1, %v18670_v22 }
 0x2ec   :  { %v20069_v32 = vpop.f32.mrb[20].mxu0  ;;  %17946 = vmatprep.subr.bf16.mxu0 %v18668_v12 }
 0x2ed   :  { %v16775_v10 = vpop.f32.mrb[21].mxu0  ;;  %v9801_v59 = vrot.slane %v20069_v32, 4 }
 0x2ee   :  { %17215 = vmatmul.mubr.f32.vlgmr.msra.gmra.mrb[46].mxu1 %v19302_v18 }
 0x2ef   :  { %17963 = vmatpush3.bf16.msra.mxu1 %v19855_v54  ;;  %17221 = vmatprep.mubr.msk.f32.mxu1 %vm18669_vm1, %v18670_v22 }
 0x2f0   :  { %v20076_v27 = vpop.f32.mrb[36].mxu1  ;;  %17964 = vmatprep.subr.bf16.mxu1 %v18668_v12 }
 0x2f1   :  { %v16817_v51 = vpop.f32.mrb[37].mxu1  ;;  %v9802_v50 = vrot.slane %v20076_v27, 4 }
 0x2f2   :  { %17180 = vmatmul.mubr.f32.vlgmr.msra.gmra.mrb[30].mxu0 %v19307_v49 }
 0x2f3   :  { %17948 = vmatpush3.bf16.msra.mxu0 %v19863_v37  ;;  %17186 = vmatprep.mubr.msk.f32.mxu0 %vm18669_vm1, %v18670_v22 }
 0x2f4   :  { %17949 = vmatprep.subr.bf16.mxu0 %v18668_v12 }
 0x2f6   :  { %17222 = vmatmul.mubr.f32.vlgmr.msra.gmra.mrb[46].mxu1 %v19307_v49 }
 0x2f7   :  { %17966 = vmatpush3.bf16.msra.mxu1 %v19876_v60  ;;  %17228 = vmatprep.mubr.msk.f32.mxu1 %vm18669_vm1, %v18670_v22 }
 0x2f8   :  { %17967 = vmatprep.subr.bf16.mxu1 %v18668_v12 }
 0x2fa   :  { %17187 = vmatmul.mubr.f32.vlgmr.msra.gmra.mrb[30].mxu0 %v19297_v30 }
 0x2fb   :  { %17951 = vmatpush3.bf16.msra.mxu0 %v19834_v38  ;;  %17193 = vmatprep.mubr.msk.f32.mxu0 %vm18669_vm1, %v18670_v22 }
 0x2fe   :  { %17229 = vmatmul.mubr.f32.vlgmr.msra.gmra.mrb[46].mxu1 %v19297_v30 }
 0x2ff   :  { %17969 = vmatpush3.bf16.msra.mxu1 %v19855_v54  ;;  %17235 = vmatprep.mubr.msk.f32.mxu1 %vm18669_vm1, %v18670_v22  ;;  %v9797_v22 = vrot.slane %v19933_v19, 4  ;;  %vm10334_vm1 = vcmask 1043456  }
 0x302   :  { %17194 = vmatmul.mubr.f32.vlgmr.msra.gmra.mrb[30].mxu0 %v19297_v30 }
 0x306   :  { %17236 = vmatmul.mubr.f32.vlgmr.msra.gmra.mrb[46].mxu1 %v19297_v30 }
 0x318   :  { %v20099_v18 = vpop.f32.mrb[22].mxu0 }
 0x319   :  { %v16859_v12 = vpop.f32.mrb[23].mxu0  ;;  %v9803_v51 = vrot.slane %v20099_v18, 4 }
 0x31c   :  { %v20101_v49 = vpop.f32.mrb[38].mxu1 }
 0x31d   :  { %v16901_v6 = vpop.f32.mrb[39].mxu1 }
 0x31e   :  { %v9804_v6 = vrot.slane %v20101_v49, 4 }
 0x351   :  { %v20103_v20 = vpop.f32.mrb[24].mxu0 }
 0x352   :  { %v16943_v53 = vpop.f32.mrb[25].mxu0  ;;  %v9877_v61 = vrot.slane %v20103_v20, 4 }
 0x354   :  { %9917 = vrot.lane.b32.xlu0 %v9877_v61, %s18671_s5 }
 0x355   :  { %v20107_v40 = vpop.f32.mrb[40].mxu1 }
 0x356   :  { %v16985_v3 = vpop.f32.mrb[41].mxu1  ;;  %v9878_v30 = vrot.slane %v20107_v40, 4 }
 0x358   :  { %9837 = vrot.lane.b32.xlu0 %v9797_v22, %s18671_s5  ;;  %9919 = vrot.lane.b32.xlu1 %v9878_v30, %s18671_s5 }
 0x35c   :  { %9839 = vrot.lane.b32.xlu1 %v9798_v36, %s18671_s5 }
 0x360   :  { %9841 = vrot.lane.b32.xlu1 %v9799_v1, %s18671_s5 }
 0x364   :  { %9843 = vrot.lane.b32.xlu1 %v9800_v33, %s18671_s5 }
 0x368   :  { %9805 = vrot.lane.b32.xlu1 %v9797_v22, %s18672_s20 }
 0x37d   :  { %v20120_v39 = vpop.f32.mrb[26].mxu0 }
 0x37e   :  { %v9879_v58 = vrot.slane %v20120_v39, 4  ;;  %v17027_v34 = vpop.f32.mrb[27].mxu0 }
 0x380   :  { %9921 = vrot.lane.b32.xlu0 %v9879_v58, %s18671_s5 }
 0x381   :  { %v20124_v28 = vpop.f32.mrb[42].mxu1 }
 0x382   :  { %v9880_v42 = vrot.slane %v20124_v28, 4  ;;  %v17069_v62 = vpop.f32.mrb[43].mxu1 }
 0x384   :  { %9923 = vrot.lane.b32.xlu0 %v9880_v42, %s18671_s5 }
 0x388   :  { %9885 = vrot.lane.b32.xlu0 %v9877_v61, %s18672_s20 }
 0x38c   :  { %9887 = vrot.lane.b32.xlu0 %v9878_v30, %s18672_s20 }
 0x390   :  { %9807 = vrot.lane.b32.xlu0 %v9798_v36, %s18672_s20 }
 0x3a9   :  { %v20131_v38 = vpop.f32.mrb[28].mxu0 }
 0x3aa   :  { %v17111_v7 = vpop.f32.mrb[29].mxu0  ;;  %v9881_v54 = vrot.slane %v20131_v38, 4 }
 0x3ad   :  { %v20133_v35 = vpop.f32.mrb[44].mxu1 }
 0x3ae   :  { %v17153_v4 = vpop.f32.mrb[45].mxu1  ;;  %v9882_v2 = vrot.slane %v20133_v35, 4 }
 0x3c6   :  { %v9918_v21 = vpop.permute.xlu0 %9917 }
 0x3c7   :  { %v9941_v52 = vadd.f32 %v9918_v21, %v20103_v20 }
 0x3c9   :  { %v10013_v55 = vmul.f32 %v9941_v52, %v9941_v52 }
 0x3ca   :  { %v9838_v16 = vpop.permute.xlu0 %9837  ;;  %v9920_v13 = vpop.permute.xlu1 %9919 }
 0x3cb   :  { %v9861_v43 = vadd.f32 %v9838_v16, %v19933_v19  ;;  %v9942_v5 = vadd.f32 %v9920_v13, %v20107_v40  ;;  %10029 = vrot.lane.b32.xlu1 %v10013_v55, %s18672_s20 }
 0x3cd   :  { %v9957_v29 = vmul.f32 %v9861_v43, %v9861_v43  ;;  %v10014_v63 = vmul.f32 %v9942_v5, %v9942_v5 }
 0x3ce   :  { %v9840_v11 = vpop.permute.xlu1 %9839 }
 0x3cf   :  { %v9862_v17 = vadd.f32 %v9840_v11, %v19940_v8  ;;  %9973 = vrot.lane.b32.xlu1 %v9957_v29, %s18672_s20  ;;  %10031 = vrot.lane.b32.xlu0 %v10014_v63, %s18672_s20 }
 0x3d1   :  { %v9958_v26 = vmul.f32 %v9862_v17, %v9862_v17 }
 0x3d2   :  { %v9842_v47 = vpop.permute.xlu1 %9841 }
 0x3d3   :  { %9975 = vrot.lane.b32.xlu1 %v9958_v26, %s18672_s20  ;;  %10181 = vrot.lane.b32.xlu0 %v9861_v43, %s18672_s20  ;;  %v9863_v15 = vadd.f32 %v9842_v47, %v20001_v23 }
 0x3d5   :  { %v20145_v56 = vpop.f32.mrb[30].mxu0  ;;  %v9959_v44 = vmul.f32 %v9863_v15, %v9863_v15 }
 0x3d6   :  { %v17195_v25 = vpop.f32.mrb[31].mxu0  ;;  %v9844_v41 = vpop.permute.xlu1 %9843  ;;  %v9883_v10 = vrot.slane %v20145_v56, 4 }
 0x3d7   :  { %9925 = vrot.lane.b32.xlu1 %v9881_v54, %s18671_s5  ;;  %10183 = vrot.lane.b32.xlu0 %v9862_v17, %s18672_s20  ;;  %v9864_v46 = vadd.f32 %v9844_v41, %v20008_v45 }
 0x3d9   :  { %v20151_v37 = vpop.f32.mrb[46].mxu1  ;;  %v9960_v24 = vmul.f32 %v9864_v46, %v9864_v46 }
 0x3da   :  { %v17237_v48 = vpop.f32.mrb[47].mxu1  ;;  %v9884_v12 = vrot.slane %v20151_v37, 4  ;;  %v9806_v3 = vpop.permute.xlu1 %9805 }
 0x3db   :  { %9845 = vrot.lane.b32.xlu1 %v9801_v59, %s18671_s5  ;;  %9927 = vrot.lane.b32.xlu0 %v9882_v2, %s18671_s5  ;;  %v9829_v30 = vsub.f32 %v19933_v19, %v9806_v3 }
 0x3dd   :  { %v9949_v7 = vmul.f32 %v9829_v30, %v9829_v30 }
 0x3df   :  { %9847 = vrot.lane.b32.xlu1 %v9802_v50, %s18671_s5  ;;  %9889 = vrot.lane.b32.xlu0 %v9879_v58, %s18672_s20 }
 0x3e3   :  { %9809 = vrot.lane.b32.xlu1 %v9799_v1, %s18672_s20  ;;  %9891 = vrot.lane.b32.xlu0 %v9880_v42, %s18672_s20 }
 0x3e7   :  { %9811 = vrot.lane.b32.xlu0 %v9800_v33, %s18672_s20 }
 0x3f2   :  { %v9922_v9 = vpop.permute.xlu0 %9921 }
 0x3f3   :  { %v9943_v0 = vadd.f32 %v9922_v9, %v20120_v39 }
 0x3f5   :  { %v10015_v60 = vmul.f32 %v9943_v0, %v9943_v0 }
 0x3f6   :  { %v9924_v14 = vpop.permute.xlu0 %9923 }
 0x3f7   :  { %v9944_v57 = vadd.f32 %v9924_v14, %v20124_v28  ;;  %10033 = vrot.lane.b32.xlu1 %v10015_v60, %s18672_s20 }
 0x3f9   :  { %v10016_v31 = vmul.f32 %v9944_v57, %v9944_v57 }
 0x3fa   :  { %v9886_v53 = vpop.permute.xlu0 %9885 }
 0x3fb   :  { %9977 = vrot.lane.b32.xlu1 %v9959_v44, %s18672_s20  ;;  %10035 = vrot.lane.b32.xlu0 %v10016_v31, %s18672_s20  ;;  %v9909_v22 = vsub.f32 %v20103_v20, %v9886_v53 }
 0x3fd   :  { %v10005_v36 = vmul.f32 %v9909_v22, %v9909_v22 }
 0x3fe   :  { %v9888_v61 = vpop.permute.xlu0 %9887 }
 0x3ff   :  { %9979 = vrot.lane.b32.xlu1 %v9960_v24, %s18672_s20  ;;  %10185 = vrot.lane.b32.xlu0 %v9863_v15, %s18672_s20  ;;  %v9910_v1 = vsub.f32 %v20107_v40, %v9888_v61 }
 0x401   :  { %v10006_v42 = vmul.f32 %v9910_v1, %v9910_v1 }
 0x402   :  { %v9808_v33 = vpop.permute.xlu0 %9807 }
 0x403   :  { %9929 = vrot.lane.b32.xlu1 %v9883_v10, %s18671_s5  ;;  %10187 = vrot.lane.b32.xlu0 %v9864_v46, %s18672_s20  ;;  %v9830_v62 = vsub.f32 %v19940_v8, %v9808_v33  ;;  %v10343_v46 = vld [vmem:[#allocation10] sm:$0xff] }
 0x404   :  { %v10347_v22 = vsel %vm10345_vm8, %v10343_v46, 0 }
 0x405   :  { %v9950_v20 = vmul.f32 %v9830_v62, %v9830_v62  ;;  %v20209_v1 = vand.u32 4294901760, %v10347_v22 }
 0x407   :  { %9849 = vrot.lane.b32.xlu1 %v9803_v51, %s18671_s5  ;;  %9931 = vrot.lane.b32.xlu0 %v9884_v12, %s18671_s5 }
 0x40b   :  { %9851 = vrot.lane.b32.xlu1 %v9804_v6, %s18671_s5  ;;  %9813 = vrot.lane.b32.xlu0 %v9801_v59, %s18672_s20 }
 0x40f   :  { %9893 = vrot.lane.b32.xlu1 %v9881_v54, %s18672_s20 }
 0x413   :  { %9895 = vrot.lane.b32.xlu1 %v9882_v2, %s18672_s20 }
 0x43d   :  { %v10030_v58 = vpop.permute.xlu1 %10029 }
 0x43e   :  { %v10053_v34 = vadd.f32 %v10030_v58, %v10005_v36 }
 0x440   :  { %18464 = vrsqrt.f32 %v10053_v34  ;;  %vm10063_vm2 = vcmp.eq.f32.partialorder %v10053_v34, inf  ;;  %v10066_v8 = vand.u32 2147483648, %v10053_v34  ;;  %vm10065_vm3 = vcmp.eq.f32.partialorder %v10053_v34, 0.0 }
 0x441   :  { %v9974_v4 = vpop.permute.xlu1 %9973  ;;  %v10032_v21 = vpop.permute.xlu0 %10031 }
 0x442   :  { %v9997_v52 = vadd.f32 %v9974_v4, %v9949_v7  ;;  %v10054_v55 = vadd.f32 %v10032_v21, %v10006_v42 }
 0x444   :  { %18466 = vrsqrt.f32 %v9997_v52  ;;  %vm10117_vm4 = vcmp.gt.f32.partialorder %v9997_v52, 0.0  ;;  %vm10070_vm5 = vcmp.eq.f32.partialorder %v10054_v55, inf  ;;  %v10073_v48 = vand.u32 2147483648, %v10054_v55 }
 0x445   :  { %18468 = vrsqrt.f32 %v10054_v55  ;;  %v9976_v16 = vpop.permute.xlu1 %9975  ;;  %v10182_v29 = vpop.permute.xlu0 %10181  ;;  %vm10072_vm7 = vcmp.eq.f32.partialorder %v10054_v55, 0.0 }
 0x446   :  { %v9998_v19 = vadd.f32 %v9976_v16, %v9950_v20 }
 0x448   :  { %18470 = vrsqrt.f32 %v9998_v19  ;;  %vm10118_vm6 = vcmp.gt.f32.partialorder %v9998_v19, 0.0 }
 0x449   :  { %v9926_v13 = vpop.permute.xlu1 %9925  ;;  %v10184_v47 = vpop.permute.xlu0 %10183 }
 0x44a   :  { %v18465_v40 = vpop.eup %18464  ;;  %v9945_v43 = vadd.f32 %v9926_v13, %v20131_v38 }
 0x44b   :  { %v10062_v5 = vmul.f32 %v18465_v40, %v10053_v34 }
 0x44c   :  { %v10017_v63 = vmul.f32 %v9945_v43, %v9945_v43 }
 0x44d   :  { %v10064_v11 = vsel %vm10063_vm2, %v10053_v34, %v10062_v5  ;;  %v9928_v53 = vpop.permute.xlu0 %9927  ;;  %v20222_v34 = vsub.f32 %v10347_v22, %v20209_v1 }
 0x44e   :  { %v18467_v17 = vpop.eup %18466  ;;  %v10067_v26 = vsel %vm10065_vm3, %v10066_v8, %v10064_v11  ;;  %10037 = vrot.lane.b32.xlu0 %v10017_v63, %s18672_s20 }
 0x44f   :  { %v18469_v54 = vpop.eup %18468  ;;  %v10133_v25 = vsel %vm10117_vm4, %v18467_v17, 0.0  ;;  %v20227_v4 = vand.u32 4294901760, %v20222_v34 }
 0x450   :  { %v10141_v59 = vmul.f32 %v10133_v25, %v10067_v26  ;;  %v10069_v2 = vmul.f32 %v18469_v54, %v10054_v55 }
 0x451   :  { %v9890_v7 = vpop.permute.xlu0 %9889  ;;  %v10421_v52 = vsub.f32 %v20222_v34, %v20227_v4 }
 0x452   :  { %v18471_v9 = vpop.eup %18470  ;;  %v15472_v0 = vadd.f32 -1.0, %v10141_v59  ;;  %v10071_v15 = vsel %vm10070_vm5, %v10054_v55, %v10069_v2  ;;  %v9911_v40 = vsub.f32 %v20120_v39, %v9890_v7 }
 0x453   :  { %v10074_v60 = vsel %vm10072_vm7, %v10073_v48, %v10071_v15  ;;  %v10134_v41 = vsel %vm10118_vm6, %v18471_v9, 0.0  ;;  %v20237_v19 = vand.u32 4294901760, %v10421_v52 }
 0x454   :  { %v10157_v14 = vmul.f32 %v15472_v0, %v9829_v30  ;;  %v10205_v57 = vmul.f32 %v15472_v0, %v10182_v29  ;;  %v10142_v44 = vmul.f32 %v10134_v41, %v10074_v60  ;;  %v9846_v30 = vpop.permute.xlu1 %9845  ;;  %v10007_v5 = vmul.f32 %v9911_v40, %v9911_v40 }
 0x455   :  { %v9865_v42 = vadd.f32 %v9846_v30, %v20069_v32  ;;  %v9892_v13 = vpop.permute.xlu0 %9891  ;;  %17240 = vmatprep.mubr.f32.mxu0 %v20237_v19  ;;  %17270 = vmatprep.mubr.f32.mxu1 %v20237_v19 }
 0x456   :  { %v15473_v31 = vadd.f32 -1.0, %v10142_v44  ;;  %v20201_v24 = vsel %vm10117_vm4, %v10157_v14, %v10067_v26  ;;  %v20206_v61 = vsel %vm10117_vm4, %v10205_v57, 0.0  ;;  %v9912_v8 = vsub.f32 %v20124_v28, %v9892_v13 }
 0x457   :  { %10278 = vrot.lane.b32.xlu0 %v20201_v24, %s18671_s5  ;;  %v9961_v55 = vmul.f32 %v9865_v42, %v9865_v42 }
 0x458   :  { %v10158_v3 = vmul.f32 %v15473_v31, %v9830_v62  ;;  %v10206_v36 = vmul.f32 %v15473_v31, %v10184_v47  ;;  %v9946_v62 = vadd.f32 %v9928_v53, %v20133_v35  ;;  %v9848_v21 = vpop.permute.xlu1 %9847  ;;  %v10008_v39 = vmul.f32 %v9912_v8, %v9912_v8 }
 0x459   :  { %v9866_v16 = vadd.f32 %v9848_v21, %v20076_v27  ;;  %v9812_v63 = vpop.permute.xlu0 %9811 }
 0x45a   :  { %v20212_v33 = vsel %vm10118_vm6, %v10158_v3, %v10074_v60  ;;  %v20215_v58 = vsel %vm10118_vm6, %v10206_v36, 0.0  ;;  %v10018_v20 = vmul.f32 %v9946_v62, %v9946_v62  ;;  %v9832_v26 = vsub.f32 %v20008_v45, %v9812_v63 }
 0x45b   :  { %10280 = vrot.lane.b32.xlu1 %v20212_v33, %s18671_s5  ;;  %10229 = vrot.lane.b32.xlu0 %v20206_v61, %s18671_s5 }
 0x45c   :  { %v9810_v43 = vpop.permute.xlu1 %9809  ;;  %v9952_v28 = vmul.f32 %v9832_v26, %v9832_v26 }
 0x45d   :  { %v9831_v29 = vsub.f32 %v20001_v23, %v9810_v43 }
 0x45f   :  { %10231 = vrot.lane.b32.xlu1 %v20215_v58, %s18671_s5  ;;  %9815 = vrot.lane.b32.xlu0 %v9802_v50, %s18672_s20  ;;  %v9962_v50 = vmul.f32 %v9866_v16, %v9866_v16  ;;  %v9951_v54 = vmul.f32 %v9831_v29, %v9831_v29 }
 0x463   :  { %9981 = vrot.lane.b32.xlu1 %v9961_v55, %s18672_s20  ;;  %10039 = vrot.lane.b32.xlu0 %v10018_v20, %s18672_s20 }
 0x467   :  { %9983 = vrot.lane.b32.xlu1 %v9962_v50, %s18672_s20  ;;  %10189 = vrot.lane.b32.xlu0 %v9865_v42, %s18672_s20 }
 0x469   :  { %v10034_v11 = vpop.permute.xlu1 %10033 }
 0x46a   :  { %v10055_v17 = vadd.f32 %v10034_v11, %v10007_v5 }
 0x46b   :  { %10191 = vrot.lane.b32.xlu1 %v9866_v16, %s18672_s20  ;;  %9817 = vrot.lane.b32.xlu0 %v9803_v51, %s18672_s20 }
 0x46c   :  { %18472 = vrsqrt.f32 %v10055_v17  ;;  %vm10077_vm9 = vcmp.eq.f32.partialorder %v10055_v17, inf  ;;  %v10080_v15 = vand.u32 2147483648, %v10055_v17  ;;  %vm10079_vm10 = vcmp.eq.f32.partialorder %v10055_v17, 0.0 }
 0x46d   :  { %v9978_v25 = vpop.permute.xlu1 %9977  ;;  %v10036_v59 = vpop.permute.xlu0 %10035 }
 0x46e   :  { %v9999_v2 = vadd.f32 %v9978_v25, %v9951_v54  ;;  %v10056_v23 = vadd.f32 %v10036_v59, %v10008_v39  ;;  %v10344_v25 = vld [vmem:[#allocation10 + $0x8] sm:$0xff] }
 0x46f   :  { %9897 = vrot.lane.b32.xlu1 %v9883_v10, %s18672_s20  ;;  %v10350_v59 = vsel %vm10345_vm8, %v10344_v25, 0 }
 0x470   :  { %18474 = vrsqrt.f32 %v9999_v2  ;;  %vm10119_vm11 = vcmp.gt.f32.partialorder %v9999_v2, 0.0  ;;  %vm10084_vm12 = vcmp.eq.f32.partialorder %v10056_v23, inf  ;;  %v10087_v53 = vand.u32 2147483648, %v10056_v23 }
 0x471   :  { %18476 = vrsqrt.f32 %v10056_v23  ;;  %v9980_v48 = vpop.permute.xlu1 %9979  ;;  %v10186_v57 = vpop.permute.xlu0 %10185  ;;  %vm10086_vm14 = vcmp.eq.f32.partialorder %v10056_v23, 0.0  ;;  %v20295_v2 = vand.u32 4294901760, %v10350_v59 }
 0x472   :  { %v10000_v47 = vadd.f32 %v9980_v48, %v9952_v28 }
 0x473   :  { %9899 = vrot.lane.b32.xlu1 %v9884_v12, %s18672_s20  ;;  %v20298_v28 = vsub.f32 %v10350_v59, %v20295_v2 }
 0x474   :  { %18478 = vrsqrt.f32 %v10000_v47  ;;  %vm10120_vm13 = vcmp.gt.f32.partialorder %v10000_v47, 0.0 }
 0x475   :  { %v9930_v45 = vpop.permute.xlu1 %9929  ;;  %v10188_v52 = vpop.permute.xlu0 %10187 }
 0x476   :  { %v18473_v51 = vpop.eup %18472  ;;  %v9947_v9 = vadd.f32 %v9930_v45, %v20145_v56  ;;  %v10262_v45 = vsub.f32 0.0, %v20206_v61 }
 0x477   :  { %v10076_v0 = vmul.f32 %v18473_v51, %v10055_v17  ;;  %v20303_v51 = vand.u32 4294901760, %v20298_v28 }
 0x478   :  { %v10019_v60 = vmul.f32 %v9947_v9, %v9947_v9 }
 0x479   :  { %v10078_v41 = vsel %vm10077_vm9, %v10055_v17, %v10076_v0  ;;  %v9850_v50 = vpop.permute.xlu1 %9849  ;;  %v9932_v43 = vpop.permute.xlu0 %9931 }
 0x47a   :  { %v18475_v10 = vpop.eup %18474  ;;  %v10081_v14 = vsel %vm10079_vm10, %v10080_v15, %v10078_v41  ;;  %10041 = vrot.lane.b32.xlu0 %v10019_v60, %s18672_s20  ;;  %v9867_v8 = vadd.f32 %v9850_v50, %v20099_v18  ;;  %v9948_v63 = vadd.f32 %v9932_v43, %v20151_v37 }
 0x47b   :  { %v18477_v44 = vpop.eup %18476  ;;  %v10135_v12 = vsel %vm10119_vm11, %v18475_v10, 0.0  ;;  %v10263_v10 = vsub.f32 0.0, %v20215_v58 }
 0x47c   :  { %v10143_v46 = vmul.f32 %v10135_v12, %v10081_v14  ;;  %v10083_v31 = vmul.f32 %v18477_v44, %v10056_v23  ;;  %v9963_v17 = vmul.f32 %v9867_v8, %v9867_v8  ;;  %v10020_v39 = vmul.f32 %v9948_v63, %v9948_v63 }
 0x47d   :  { %v9852_v11 = vpop.permute.xlu1 %9851 }
 0x47e   :  { %v18479_v22 = vpop.eup %18478  ;;  %v15474_v3 = vadd.f32 -1.0, %v10143_v46  ;;  %v10085_v36 = vsel %vm10084_vm12, %v10056_v23, %v10083_v31 }
 0x47f   :  { %v10088_v30 = vsel %vm10086_vm14, %v10087_v53, %v10085_v36  ;;  %v10136_v42 = vsel %vm10120_vm13, %v18479_v22, 0.0 }
 0x480   :  { %v10159_v62 = vmul.f32 %v15474_v3, %v9831_v29  ;;  %v10207_v7 = vmul.f32 %v15474_v3, %v10186_v57  ;;  %v10144_v21 = vmul.f32 %v10136_v42, %v10088_v30 }
 0x481   :  { %v9894_v23 = vpop.permute.xlu1 %9893 }
 0x482   :  { %v15475_v55 = vadd.f32 -1.0, %v10144_v21  ;;  %v20264_v20 = vsel %vm10119_vm11, %v10159_v62, %v10081_v14  ;;  %v20267_v16 = vsel %vm10119_vm11, %v10207_v7, 0.0  ;;  %v9913_v48 = vsub.f32 %v20131_v38, %v9894_v23 }
 0x483   :  { %10282 = vrot.lane.b32.xlu0 %v20264_v20, %s18671_s5  ;;  %v10431_v38 = vsub.f32 %v20298_v28, %v20303_v51 }
 0x484   :  { %v10160_v13 = vmul.f32 %v15475_v55, %v9832_v26  ;;  %v10208_v40 = vmul.f32 %v15475_v55, %v10188_v52  ;;  %v9868_v26 = vadd.f32 %v9852_v11, %v20101_v49  ;;  %v10009_v9 = vmul.f32 %v9913_v48, %v9913_v48 }
 0x485   :  { %v9896_v0 = vpop.permute.xlu1 %9895  ;;  %v20322_v22 = vand.u32 4294901760, %v10431_v38 }
 0x486   :  { %v20272_v5 = vsel %vm10120_vm13, %v10160_v13, %v10088_v30  ;;  %v20275_v29 = vsel %vm10120_vm13, %v10208_v40, 0.0  ;;  %v9964_v54 = vmul.f32 %v9868_v26, %v9868_v26  ;;  %v9914_v58 = vsub.f32 %v20133_v35, %v9896_v0 }
 0x487   :  { %10284 = vrot.lane.b32.xlu1 %v20272_v5, %s18671_s5  ;;  %10233 = vrot.lane.b32.xlu0 %v20267_v16, %s18671_s5 }
 0x488   :  { %v10010_v62 = vmul.f32 %v9914_v58, %v9914_v58 }
 0x48b   :  { %10235 = vrot.lane.b32.xlu1 %v20275_v29, %s18671_s5  ;;  %9819 = vrot.lane.b32.xlu0 %v9804_v6, %s18672_s20  ;;  %v9814_v6 = vpop.permute.xlu0 %9813 }
 0x48c   :  { %v20315_v46 = vsub.f32 %v20069_v32, %v9814_v6 }
 0x48e   :  { %v9953_v35 = vmul.f32 %v20315_v46, %v20315_v46 }
 0x48f   :  { %9985 = vrot.lane.b32.xlu1 %v9963_v17, %s18672_s20  ;;  %10043 = vrot.lane.b32.xlu0 %v10020_v39, %s18672_s20 }
 0x493   :  { %9987 = vrot.lane.b32.xlu1 %v9964_v54, %s18672_s20  ;;  %10193 = vrot.lane.b32.xlu0 %v9867_v8, %s18672_s20 }
 0x497   :  { %10195 = vrot.lane.b32.xlu1 %v9868_v26, %s18672_s20 }
 0x4c0   :  { %v10038_v47 = vpop.permute.xlu0 %10037 }
 0x4c1   :  { %v20306_v41 = vadd.f32 %v10038_v47, %v10009_v9 }
 0x4c3   :  { %18480 = vrsqrt.f32 %v20306_v41  ;;  %vm10091_vm2 = vcmp.eq.f32.partialorder %v20306_v41, inf  ;;  %v10094_v6 = vand.u32 2147483648, %v20306_v41  ;;  %vm10093_vm4 = vcmp.eq.f32.partialorder %v20306_v41, 0.0 }
 0x4c9   :  { %v10279_v15 = vpop.permute.xlu0 %10278 }
 0x4ca   :  { %v10302_v60 = vsel %vm10253_vm15, %v10262_v45, %v10279_v15 }
 0x4cb   :  { %v10318_v14 = vrot.slane %v10302_v60, 4 }
 0x4cd   :  { %v10281_v57 = vpop.permute.xlu1 %10280  ;;  %v10230_v44 = vpop.permute.xlu0 %10229 }
 0x4ce   :  { %v10303_v61 = vsel %vm10253_vm15, %v10263_v10, %v10281_v57  ;;  %v10254_v12 = vsel %vm10253_vm15, %v20201_v24, %v10230_v44  ;;  %v18481_v63 = vpop.eup %18480 }
 0x4cf   :  { %v10335_v31 = vsel %vm10334_vm1, %v10254_v12, %v10318_v14  ;;  %v10319_v3 = vrot.slane %v10303_v61, 4  ;;  %v10090_v54 = vmul.f32 %v18481_v63, %v20306_v41 }
 0x4d0   :  { %v20320_v53 = vand.u32 4294901760, %v10335_v31 }
 0x4d1   :  { %v10232_v36 = vpop.permute.xlu1 %10231  ;;  %v9816_v30 = vpop.permute.xlu0 %9815  ;;  %v10092_v59 = vsel %vm10091_vm2, %v20306_v41, %v10090_v54 }
 0x4d2   :  { %v10440_v42 = vsub.f32 %v10335_v31, %v20320_v53  ;;  %v10255_v24 = vsel %vm10253_vm15, %v20212_v33, %v10232_v36  ;;  %17238 = vmatprep.subr.mxu0 %v20320_v53  ;;  %v20335_v21 = vsub.f32 %v20076_v27, %v9816_v30  ;;  %v10095_v47 = vsel %vm10093_vm4, %v10094_v6, %v10092_v59 }
 0x4d3   :  { %v10336_v32 = vsel %vm10334_vm1, %v10255_v24, %v10319_v3  ;;  %17239 = vmatpush3.msra.mxu0 %v20320_v53 }
 0x4d4   :  { %v20332_v7 = vand.u32 4294901760, %v10336_v32  ;;  %17241 = vmatmul.mubr.f32.vlgmr.msra.gmra.mrb[32].mxu0 %v20322_v22  ;;  %v20338_v52 = vand.u32 4294901760, %v10440_v42  ;;  %v9954_v27 = vmul.f32 %v20335_v21, %v20335_v21 }
 0x4d5   :  { %v9982_v33 = vpop.permute.xlu1 %9981  ;;  %v10040_v55 = vpop.permute.xlu0 %10039  ;;  %17245 = vmatprep.mubr.f32.mxu0 %v20209_v1 }
 0x4d6   :  { %v10929_v13 = vsub.f32 %v10336_v32, %v20332_v7  ;;  %v20342_v40 = vadd.f32 %v9982_v33, %v9953_v35  ;;  %v10058_v50 = vadd.f32 %v10040_v55, %v10010_v62  ;;  %17268 = vmatprep.subr.mxu1 %v20332_v7  ;;  %v10442_v43 = vsub.f32 %v10440_v42, %v20338_v52 }
 0x4d7   :  { %17269 = vmatpush3.msra.mxu1 %v20332_v7 }
 0x4d8   :  { %18482 = vrsqrt.f32 %v20342_v40  ;;  %17271 = vmatmul.mubr.f32.vlgmr.msra.gmra.mrb[48].mxu1 %v20322_v22  ;;  %v10443_v8 = vand.u32 4294901760, %v10442_v43  ;;  %v20351_v17 = vand.u32 4294901760, %v10929_v13  ;;  %vm10121_vm3 = vcmp.gt.f32.partialorder %v20342_v40, 0.0 }
 0x4d9   :  { %18484 = vrsqrt.f32 %v10058_v50  ;;  %v9984_v11 = vpop.permute.xlu1 %9983  ;;  %17275 = vmatprep.mubr.f32.mxu1 %v20209_v1  ;;  %vm10098_vm5 = vcmp.eq.f32.partialorder %v10058_v50, inf  ;;  %v10101_v15 = vand.u32 2147483648, %v10058_v50  ;;  %vm10100_vm7 = vcmp.eq.f32.partialorder %v10058_v50, 0.0  ;;  %v10190_v38 = vpop.permute.xlu0 %10189 }
 0x4da   :  { %v20354_v39 = vadd.f32 %v9984_v11, %v9954_v27  ;;  %17243 = vmatprep.subr.mxu0 %v10443_v8  ;;  %v10931_v26 = vsub.f32 %v10929_v13, %v20351_v17 }
 0x4db   :  { %17244 = vmatpush3.msra.mxu0 %v10443_v8 }
 0x4dc   :  { %18486 = vrsqrt.f32 %v20354_v39  ;;  %17246 = vmatmul.mubr.f32.vlgmr.msra.gmra.mrb[32].mxu0 %v20295_v2  ;;  %17248 = vmatprep.subr.mxu0 %v10440_v42  ;;  %v10932_v25 = vand.u32 4294901760, %v10931_v26  ;;  %vm10122_vm6 = vcmp.gt.f32.partialorder %v20354_v39, 0.0 }
 0x4dd   :  { %17249 = vmatpush3.msra.mxu0 %v10440_v42  ;;  %17250 = vmatprep.mubr.f32.mxu0 %v20222_v34  ;;  %v10192_v12 = vpop.permute.xlu1 %10191  ;;  %v9818_v42 = vpop.permute.xlu0 %9817 }
 0x4de   :  { %17253 = vmatprep.subr.mxu0 %v20320_v53  ;;  %17273 = vmatprep.subr.mxu1 %v10932_v25  ;;  %v20433_v63 = vsub.f32 %v20099_v18, %v9818_v42 }
 0x4df   :  { %17274 = vmatpush3.msra.mxu1 %v10932_v25 }
 0x4e0   :  { %17276 = vmatmul.mubr.f32.vlgmr.msra.gmra.mrb[48].mxu1 %v20295_v2  ;;  %17278 = vmatprep.subr.mxu1 %v10929_v13 }
 0x4e1   :  { %17279 = vmatpush3.msra.mxu1 %v10929_v13  ;;  %17280 = vmatprep.mubr.f32.mxu1 %v20222_v34  ;;  %v9898_v24 = vpop.permute.xlu1 %9897 }
 0x4e2   :  { %v18483_v23 = vpop.eup %18482  ;;  %17283 = vmatprep.subr.mxu1 %v20332_v7  ;;  %v9915_v62 = vsub.f32 %v20145_v56, %v9898_v24 }
 0x4e3   :  { %v18485_v48 = vpop.eup %18484  ;;  %v10137_v45 = vsel %vm10121_vm3, %v18483_v23, 0.0 }
 0x4e4   :  { %v10145_v9 = vmul.f32 %v10137_v45, %v10095_v47  ;;  %v10097_v0 = vmul.f32 %v18485_v48, %v10058_v50  ;;  %17251 = vmatmul.mubr.f32.vlgmr.msra.gmra.mrb[32].mxu0 %v20298_v28  ;;  %v10011_v33 = vmul.f32 %v9915_v62, %v9915_v62 }
 0x4e5   :  { %17254 = vmatpush3.msra.mxu0 %v20320_v53  ;;  %17255 = vmatprep.mubr.f32.mxu0 %v20227_v4  ;;  %v9900_v55 = vpop.permute.xlu1 %9899 }
 0x4e6   :  { %v18487_v60 = vpop.eup %18486  ;;  %v15476_v41 = vadd.f32 -1.0, %v10145_v9  ;;  %v10099_v10 = vsel %vm10098_vm5, %v10058_v50, %v10097_v0  ;;  %17258 = vmatprep.subr.mxu0 %v20338_v52  ;;  %v10265_v50 = vsub.f32 0.0, %v20275_v29  ;;  %v9916_v11 = vsub.f32 %v20151_v37, %v9900_v55 }
 0x4e7   :  { %v10102_v14 = vsel %vm10100_vm7, %v10101_v15, %v10099_v10  ;;  %v10138_v57 = vsel %vm10122_vm6, %v18487_v60, 0.0  ;;  %v9955_v37 = vmul.f32 %v20433_v63, %v20433_v63 }
 0x4e8   :  { %v10161_v44 = vmul.f32 %v15476_v41, %v20315_v46  ;;  %v10209_v61 = vmul.f32 %v15476_v41, %v10190_v38  ;;  %v10146_v31 = vmul.f32 %v10138_v57, %v10102_v14  ;;  %17281 = vmatmul.mubr.f32.vlgmr.msra.gmra.mrb[48].mxu1 %v20298_v28  ;;  %v10012_v25 = vmul.f32 %v9916_v11, %v9916_v11 }
 0x4e9   :  { %17284 = vmatpush3.msra.mxu1 %v20332_v7  ;;  %17285 = vmatprep.mubr.f32.mxu1 %v20227_v4 }
 0x4ea   :  { %v15477_v58 = vadd.f32 -1.0, %v10146_v31  ;;  %v20384_v3 = vsel %vm10121_vm3, %v10161_v44, %v10095_v47  ;;  %v20388_v36 = vsel %vm10121_vm3, %v10209_v61, 0.0  ;;  %17288 = vmatprep.subr.mxu1 %v20351_v17 }
 0x4eb   :  { %10286 = vrot.lane.b32.xlu0 %v20384_v3, %s18671_s5  ;;  %10237 = vrot.lane.b32.xlu1 %v20388_v36, %s18671_s5 }
 0x4ec   :  { %v10162_v46 = vmul.f32 %v15477_v58, %v20335_v21  ;;  %v10210_v30 = vmul.f32 %v15477_v58, %v10192_v12  ;;  %17256 = vmatmul.mubr.f32.vlgmr.msra.gmra.mrb[32].mxu0 %v20303_v51  ;;  %v10042_v21 = vpop.permute.xlu0 %10041 }
 0x4ed   :  { %17259 = vmatpush3.msra.mxu0 %v20338_v52  ;;  %17260 = vmatprep.mubr.f32.mxu0 %v20209_v1  ;;  %v10264_v52 = vsub.f32 0.0, %v20267_v16  ;;  %v20423_v40 = vadd.f32 %v10042_v21, %v10011_v33 }
 0x4ee   :  { %17263 = vmatprep.subr.mxu0 %v20320_v53  ;;  %v20403_v32 = vsel %vm10122_vm6, %v10162_v46, %v10102_v14  ;;  %v20407_v35 = vsel %vm10122_vm6, %v10210_v30, 0.0 }
 0x4ef   :  { %10288 = vrot.lane.b32.xlu0 %v20403_v32, %s18671_s5  ;;  %10239 = vrot.lane.b32.xlu1 %v20407_v35, %s18671_s5  ;;  %18488 = vrsqrt.f32 %v20423_v40  ;;  %vm10105_vm9 = vcmp.eq.f32.partialorder %v20423_v40, inf  ;;  %v10108_v12 = vand.u32 2147483648, %v20423_v40  ;;  %vm10107_vm11 = vcmp.eq.f32.partialorder %v20423_v40, 0.0 }
 0x4f0   :  { %17286 = vmatmul.mubr.f32.vlgmr.msra.gmra.mrb[48].mxu1 %v20303_v51 }
 0x4f1   :  { %17289 = vmatpush3.msra.mxu1 %v20351_v17  ;;  %17290 = vmatprep.mubr.f32.mxu1 %v20209_v1 }
 0x4f2   :  { %17293 = vmatprep.subr.mxu1 %v20332_v7 }
 0x4f4   :  { %17261 = vmatmul.mubr.f32.vlgmr.msra.gmra.mrb[32].mxu0 %v20295_v2 }
 0x4f5   :  { %17264 = vmatpush3.msra.mxu0 %v20320_v53  ;;  %v10283_v13 = vpop.permute.xlu0 %10282  ;;  %17265 = vmatprep.mubr.f32.mxu0 %v20209_v1 }
 0x4f6   :  { %v10304_v56 = vsel %vm10253_vm15, %v10264_v52, %v10283_v13 }
 0x4f7   :  { %v10320_v43 = vrot.slane %v10304_v56, 4 }
 0x4f8   :  { %17291 = vmatmul.mubr.f32.vlgmr.msra.gmra.mrb[48].mxu1 %v20295_v2 }
 0x4f9   :  { %v10285_v27 = vpop.permute.xlu1 %10284  ;;  %v10234_v16 = vpop.permute.xlu0 %10233  ;;  %17294 = vmatpush3.msra.mxu1 %v20332_v7  ;;  %17295 = vmatprep.mubr.f32.mxu1 %v20209_v1 }
 0x4fa   :  { %v10305_v8 = vsel %vm10253_vm15, %v10265_v50, %v10285_v27  ;;  %v10256_v53 = vsel %vm10253_vm15, %v20264_v20, %v10234_v16  ;;  %v18489_v15 = vpop.eup %18488 }
 0x4fb   :  { %v10337_v29 = vsel %vm10334_vm1, %v10256_v53, %v10320_v43  ;;  %v10321_v7 = vrot.slane %v10305_v8, 4  ;;  %v10104_v57 = vmul.f32 %v18489_v15, %v20423_v40 }
 0x4fc   :  { %v20438_v17 = vand.u32 4294901760, %v10337_v29  ;;  %17266 = vmatmul.mubr.f32.vlgmr.msra.gmra.mrb[32].mxu0 %v20295_v2 }
 0x4fd   :  { %v10236_v39 = vpop.permute.xlu1 %10235  ;;  %v9820_v26 = vpop.permute.xlu0 %9819  ;;  %17300 = vmatprep.mubr.f32.mxu0 %v20237_v19  ;;  %v10106_v61 = vsel %vm10105_vm9, %v20423_v40, %v10104_v57 }
 0x4fe   :  { %v11418_v20 = vsub.f32 %v10337_v29, %v20438_v17  ;;  %v10257_v18 = vsel %vm10253_vm15, %v20272_v5, %v10236_v39  ;;  %17298 = vmatprep.subr.mxu0 %v20438_v17  ;;  %v20453_v6 = vsub.f32 %v20101_v49, %v9820_v26  ;;  %v10109_v46 = vsel %vm10107_vm11, %v10108_v12, %v10106_v61 }
 0x4ff   :  { %v10338_v54 = vsel %vm10334_vm1, %v10257_v18, %v10321_v7  ;;  %17299 = vmatpush3.msra.mxu0 %v20438_v17  ;;  %v10266_v39 = vsub.f32 0.0, %v20388_v36 }
 0x500   :  { %v20450_v59 = vand.u32 4294901760, %v10338_v54  ;;  %17301 = vmatmul.mubr.f32.vlgmr.msra.gmra.mrb[34].mxu0 %v20322_v22  ;;  %v20456_v23 = vand.u32 4294901760, %v11418_v20  ;;  %17296 = vmatmul.mubr.f32.vlgmr.msra.gmra.mrb[48].mxu1 %v20295_v2  ;;  %v9956_v0 = vmul.f32 %v20453_v6, %v20453_v6 }
 0x501   :  { %v9986_v5 = vpop.permute.xlu1 %9985  ;;  %v10044_v48 = vpop.permute.xlu0 %10043  ;;  %17305 = vmatprep.mubr.f32.mxu0 %v20209_v1  ;;  %17330 = vmatprep.mubr.f32.mxu1 %v20237_v19 }
 0x502   :  { %v11907_v47 = vsub.f32 %v10338_v54, %v20450_v59  ;;  %v20461_v45 = vadd.f32 %v9986_v5, %v9955_v37  ;;  %v10060_v9 = vadd.f32 %v10044_v48, %v10012_v25  ;;  %17328 = vmatprep.subr.mxu1 %v20450_v59  ;;  %v11420_v49 = vsub.f32 %v11418_v20, %v20456_v23 }
 0x503   :  { %17329 = vmatpush3.msra.mxu1 %v20450_v59  ;;  %v10267_v54 = vsub.f32 0.0, %v20407_v35 }
 0x504   :  { %18490 = vrsqrt.f32 %v20461_v45  ;;  %17331 = vmatmul.mubr.f32.vlgmr.msra.gmra.mrb[50].mxu1 %v20322_v22  ;;  %v11421_v41 = vand.u32 4294901760, %v11420_v49  ;;  %v20471_v10 = vand.u32 4294901760, %v11907_v47  ;;  %vm10123_vm10 = vcmp.gt.f32.partialorder %v20461_v45, 0.0 }
 0x505   :  { %18492 = vrsqrt.f32 %v10060_v9  ;;  %v9988_v60 = vpop.permute.xlu1 %9987  ;;  %17335 = vmatprep.mubr.f32.mxu1 %v20209_v1  ;;  %vm10112_vm12 = vcmp.eq.f32.partialorder %v10060_v9, inf  ;;  %v10115_v62 = vand.u32 2147483648, %v10060_v9  ;;  %vm10114_vm14 = vcmp.eq.f32.partialorder %v10060_v9, 0.0  ;;  %v10194_v55 = vpop.permute.xlu0 %10193 }
 0x506   :  { %v20473_v38 = vadd.f32 %v9988_v60, %v9956_v0  ;;  %17303 = vmatprep.subr.mxu0 %v11421_v41  ;;  %v11909_v14 = vsub.f32 %v11907_v47, %v20471_v10 }
 0x507   :  { %17304 = vmatpush3.msra.mxu0 %v11421_v41 }
 0x508   :  { %18494 = vrsqrt.f32 %v20473_v38  ;;  %17306 = vmatmul.mubr.f32.vlgmr.msra.gmra.mrb[34].mxu0 %v20295_v2  ;;  %17308 = vmatprep.subr.mxu0 %v11418_v20  ;;  %v11910_v44 = vand.u32 4294901760, %v11909_v14  ;;  %vm10124_vm13 = vcmp.gt.f32.partialorder %v20473_v38, 0.0 }
 0x509   :  { %17309 = vmatpush3.msra.mxu0 %v11418_v20  ;;  %17310 = vmatprep.mubr.f32.mxu0 %v20222_v34  ;;  %v10196_v53 = vpop.permute.xlu1 %10195 }
 0x50a   :  { %17313 = vmatprep.subr.mxu0 %v20438_v17  ;;  %17333 = vmatprep.subr.mxu1 %v11910_v44 }
 0x50b   :  { %17334 = vmatpush3.msra.mxu1 %v11910_v44 }
 0x50c   :  { %17336 = vmatmul.mubr.f32.vlgmr.msra.gmra.mrb[50].mxu1 %v20295_v2  ;;  %17338 = vmatprep.subr.mxu1 %v11907_v47 }
 0x50d   :  { %17339 = vmatpush3.msra.mxu1 %v11907_v47  ;;  %17340 = vmatprep.mubr.f32.mxu1 %v20222_v34 }
 0x50e   :  { %v18491_v31 = vpop.eup %18490  ;;  %17343 = vmatprep.subr.mxu1 %v20450_v59 }
 0x50f   :  { %v18493_v58 = vpop.eup %18492  ;;  %v10139_v30 = vsel %vm10123_vm10, %v18491_v31, 0.0 }
 0x510   :  { %v10147_v42 = vmul.f32 %v10139_v30, %v10109_v46  ;;  %v10111_v24 = vmul.f32 %v18493_v58, %v10060_v9  ;;  %17311 = vmatmul.mubr.f32.vlgmr.msra.gmra.mrb[34].mxu0 %v20298_v28 }
 0x511   :  { %17314 = vmatpush3.msra.mxu0 %v20438_v17  ;;  %17315 = vmatprep.mubr.f32.mxu0 %v20227_v4 }
 0x512   :  { %v18495_v21 = vpop.eup %18494  ;;  %v15478_v52 = vadd.f32 -1.0, %v10147_v42  ;;  %v10113_v33 = vsel %vm10112_vm12, %v10060_v9, %v10111_v24  ;;  %17318 = vmatprep.subr.mxu0 %v20456_v23 }
 0x513   :  { %v10116_v13 = vsel %vm10114_vm14, %v10115_v62, %v10113_v33  ;;  %v10140_v56 = vsel %vm10124_vm13, %v18495_v21, 0.0 }
 0x514   :  { %v10163_v40 = vmul.f32 %v15478_v52, %v20433_v63  ;;  %v10211_v50 = vmul.f32 %v15478_v52, %v10194_v55  ;;  %v10148_v43 = vmul.f32 %v10140_v56, %v10116_v13  ;;  %17341 = vmatmul.mubr.f32.vlgmr.msra.gmra.mrb[50].mxu1 %v20298_v28 }
 0x515   :  { %17344 = vmatpush3.msra.mxu1 %v20450_v59  ;;  %17345 = vmatprep.mubr.f32.mxu1 %v20227_v4 }
 0x516   :  { %v15479_v27 = vadd.f32 -1.0, %v10148_v43  ;;  %v20504_v16 = vsel %vm10123_vm10, %v10163_v40, %v10109_v46  ;;  %v20508_v8 = vsel %vm10123_vm10, %v10211_v50, 0.0  ;;  %17348 = vmatprep.subr.mxu1 %v20471_v10 }
 0x517   :  { %10290 = vrot.lane.b32.xlu0 %v20504_v16, %s18671_s5  ;;  %10241 = vrot.lane.b32.xlu1 %v20508_v8, %s18671_s5  ;;  %v10268_v41 = vsub.f32 0.0, %v20508_v8 }
 0x518   :  { %v10164_v63 = vmul.f32 %v15479_v27, %v20453_v6  ;;  %v10212_v29 = vmul.f32 %v15479_v27, %v10196_v53  ;;  %17316 = vmatmul.mubr.f32.vlgmr.msra.gmra.mrb[34].mxu0 %v20303_v51 }
 0x519   :  { %17319 = vmatpush3.msra.mxu0 %v20456_v23  ;;  %17320 = vmatprep.mubr.f32.mxu0 %v20209_v1 }
 0x51a   :  { %v20521_v11 = vsel %vm10124_vm13, %v10164_v63, %v10116_v13  ;;  %v20525_v7 = vsel %vm10124_vm13, %v10212_v29, 0.0  ;;  %17323 = vmatprep.subr.mxu0 %v20438_v17 }
 0x51b   :  { %10292 = vrot.lane.b32.xlu0 %v20521_v11, %s18671_s5  ;;  %10243 = vrot.lane.b32.xlu1 %v20525_v7, %s18671_s5  ;;  %v10269_v44 = vsub.f32 0.0, %v20525_v7 }
 0x51c   :  { %17346 = vmatmul.mubr.f32.vlgmr.msra.gmra.mrb[50].mxu1 %v20303_v51 }
 0x51d   :  { %17349 = vmatpush3.msra.mxu1 %v20471_v10  ;;  %17350 = vmatprep.mubr.f32.mxu1 %v20209_v1 }
 0x51e   :  { %17353 = vmatprep.subr.mxu1 %v20450_v59 }
 0x520   :  { %17321 = vmatmul.mubr.f32.vlgmr.msra.gmra.mrb[34].mxu0 %v20295_v2 }
 0x521   :  { %17324 = vmatpush3.msra.mxu0 %v20438_v17  ;;  %17325 = vmatprep.mubr.f32.mxu0 %v20209_v1 }
 0x524   :  { %17351 = vmatmul.mubr.f32.vlgmr.msra.gmra.mrb[50].mxu1 %v20295_v2 }
 0x525   :  { %17354 = vmatpush3.msra.mxu1 %v20450_v59  ;;  %17355 = vmatprep.mubr.f32.mxu1 %v20209_v1 }
 0x528   :  { %17326 = vmatmul.mubr.f32.vlgmr.msra.gmra.mrb[34].mxu0 %v20295_v2 }
 0x529   :  { %17360 = vmatprep.mubr.f32.mxu0 %v20237_v19 }
 0x52c   :  { %17356 = vmatmul.mubr.f32.vlgmr.msra.gmra.mrb[50].mxu1 %v20295_v2 }
 0x52d   :  { %17390 = vmatprep.mubr.f32.mxu1 %v20237_v19 }
 0x55d   :  { %v10287_v26 = vpop.permute.xlu0 %10286  ;;  %v10238_v17 = vpop.permute.xlu1 %10237 }
 0x55e   :  { %v10306_v20 = vsel %vm10253_vm15, %v10266_v39, %v10287_v26  ;;  %v10258_v37 = vsel %vm10253_vm15, %v20384_v3, %v10238_v17 }
 0x55f   :  { %v10322_v18 = vrot.slane %v10306_v20, 4 }
 0x561   :  { %v10339_v25 = vsel %vm10334_vm1, %v10258_v37, %v10322_v18  ;;  %v10289_v59 = vpop.permute.xlu0 %10288  ;;  %v10240_v23 = vpop.permute.xlu1 %10239 }
 0x562   :  { %v12309_v6 = vand.u32 4294901760, %v10339_v25  ;;  %v10307_v5 = vsel %vm10253_vm15, %v10267_v54, %v10289_v59  ;;  %v10259_v36 = vsel %vm10253_vm15, %v20403_v32, %v10240_v23 }
 0x563   :  { %v10323_v48 = vrot.slane %v10307_v5, 4 }
 0x564   :  { %v12396_v47 = vsub.f32 %v10339_v25, %v12309_v6  ;;  %17358 = vmatprep.subr.mxu0 %v12309_v6 }
 0x565   :  { %v10340_v45 = vsel %vm10334_vm1, %v10259_v36, %v10323_v48  ;;  %17359 = vmatpush3.msra.mxu0 %v12309_v6 }
 0x566   :  { %v12798_v35 = vand.u32 4294901760, %v10340_v45  ;;  %17361 = vmatmul.mubr.f32.vlgmr.msra.gmra.mrb[36].mxu0 %v20322_v22  ;;  %v12397_v3 = vand.u32 4294901760, %v12396_v47 }
 0x567   :  { %17365 = vmatprep.mubr.f32.mxu0 %v20209_v1 }
 0x568   :  { %v12885_v9 = vsub.f32 %v10340_v45, %v12798_v35  ;;  %17388 = vmatprep.subr.mxu1 %v12798_v35  ;;  %v12398_v49 = vsub.f32 %v12396_v47, %v12397_v3 }
 0x569   :  { %17389 = vmatpush3.msra.mxu1 %v12798_v35 }
 0x56a   :  { %17391 = vmatmul.mubr.f32.vlgmr.msra.gmra.mrb[52].mxu1 %v20322_v22  ;;  %v12399_v0 = vand.u32 4294901760, %v12398_v49  ;;  %v12886_v15 = vand.u32 4294901760, %v12885_v9 }
 0x56b   :  { %17395 = vmatprep.mubr.f32.mxu1 %v20209_v1 }
 0x56c   :  { %17363 = vmatprep.subr.mxu0 %v12399_v0  ;;  %v12887_v32 = vsub.f32 %v12885_v9, %v12886_v15 }
 0x56d   :  { %17364 = vmatpush3.msra.mxu0 %v12399_v0 }
 0x56e   :  { %17366 = vmatmul.mubr.f32.vlgmr.msra.gmra.mrb[36].mxu0 %v20295_v2  ;;  %17368 = vmatprep.subr.mxu0 %v12396_v47  ;;  %v12888_v60 = vand.u32 4294901760, %v12887_v32 }
 0x56f   :  { %17369 = vmatpush3.msra.mxu0 %v12396_v47  ;;  %17370 = vmatprep.mubr.f32.mxu0 %v20222_v34 }
 0x570   :  { %17373 = vmatprep.subr.mxu0 %v12309_v6  ;;  %17393 = vmatprep.subr.mxu1 %v12888_v60 }
 0x571   :  { %17394 = vmatpush3.msra.mxu1 %v12888_v60 }
 0x572   :  { %17396 = vmatmul.mubr.f32.vlgmr.msra.gmra.mrb[52].mxu1 %v20295_v2  ;;  %17398 = vmatprep.subr.mxu1 %v12885_v9 }
 0x573   :  { %17399 = vmatpush3.msra.mxu1 %v12885_v9  ;;  %17400 = vmatprep.mubr.f32.mxu1 %v20222_v34 }
 0x574   :  { %17403 = vmatprep.subr.mxu1 %v12798_v35 }
 0x576   :  { %17371 = vmatmul.mubr.f32.vlgmr.msra.gmra.mrb[36].mxu0 %v20298_v28 }
 0x577   :  { %17374 = vmatpush3.msra.mxu0 %v12309_v6  ;;  %17375 = vmatprep.mubr.f32.mxu0 %v20227_v4 }
 0x578   :  { %17378 = vmatprep.subr.mxu0 %v12397_v3 }
 0x57a   :  { %17401 = vmatmul.mubr.f32.vlgmr.msra.gmra.mrb[52].mxu1 %v20298_v28 }
 0x57b   :  { %17404 = vmatpush3.msra.mxu1 %v12798_v35  ;;  %17405 = vmatprep.mubr.f32.mxu1 %v20227_v4 }
 0x57c   :  { %17408 = vmatprep.subr.mxu1 %v12886_v15 }
 0x57e   :  { %17376 = vmatmul.mubr.f32.vlgmr.msra.gmra.mrb[36].mxu0 %v20303_v51 }
 0x57f   :  { %17379 = vmatpush3.msra.mxu0 %v12397_v3  ;;  %17380 = vmatprep.mubr.f32.mxu0 %v20209_v1 }
 0x580   :  { %17383 = vmatprep.subr.mxu0 %v12309_v6 }
 0x582   :  { %17406 = vmatmul.mubr.f32.vlgmr.msra.gmra.mrb[52].mxu1 %v20303_v51 }
 0x583   :  { %17409 = vmatpush3.msra.mxu1 %v12886_v15  ;;  %17410 = vmatprep.mubr.f32.mxu1 %v20209_v1 }
 0x584   :  { %17413 = vmatprep.subr.mxu1 %v12798_v35 }
 0x586   :  { %17381 = vmatmul.mubr.f32.vlgmr.msra.gmra.mrb[36].mxu0 %v20295_v2 }
 0x587   :  { %17384 = vmatpush3.msra.mxu0 %v12309_v6  ;;  %17385 = vmatprep.mubr.f32.mxu0 %v20209_v1 }
 0x589   :  { %v10291_v10 = vpop.permute.xlu0 %10290  ;;  %v10242_v38 = vpop.permute.xlu1 %10241 }
 0x58a   :  { %v10308_v14 = vsel %vm10253_vm15, %v10268_v41, %v10291_v10  ;;  %17411 = vmatmul.mubr.f32.vlgmr.msra.gmra.mrb[52].mxu1 %v20295_v2  ;;  %v10260_v61 = vsel %vm10253_vm15, %v20504_v16, %v10242_v38 }
 0x58b   :  { %v10324_v57 = vrot.slane %v10308_v14, 4  ;;  %17414 = vmatpush3.msra.mxu1 %v12798_v35  ;;  %17415 = vmatprep.mubr.f32.mxu1 %v20209_v1 }
 0x58d   :  { %v10341_v12 = vsel %vm10334_vm1, %v10260_v61, %v10324_v57  ;;  %v10293_v31 = vpop.permute.xlu0 %10292  ;;  %v10244_v46 = vpop.permute.xlu1 %10243 }
 0x58e   :  { %v13287_v58 = vand.u32 4294901760, %v10341_v12  ;;  %v10309_v30 = vsel %vm10253_vm15, %v10269_v44, %v10293_v31  ;;  %17386 = vmatmul.mubr.f32.vlgmr.msra.gmra.mrb[36].mxu0 %v20295_v2  ;;  %v10261_v62 = vsel %vm10253_vm15, %v20521_v11, %v10244_v46 }
 0x58f   :  { %v10325_v42 = vrot.slane %v10309_v30, 4  ;;  %17420 = vmatprep.mubr.f32.mxu0 %v20237_v19 }
 0x590   :  { %v13374_v24 = vsub.f32 %v10341_v12, %v13287_v58  ;;  %17418 = vmatprep.subr.mxu0 %v13287_v58 }
 0x591   :  { %v10342_v21 = vsel %vm10334_vm1, %v10261_v62, %v10325_v42  ;;  %17419 = vmatpush3.msra.mxu0 %v13287_v58 }
 0x592   :  { %v13776_v52 = vand.u32 4294901760, %v10342_v21  ;;  %17416 = vmatmul.mubr.f32.vlgmr.msra.gmra.mrb[52].mxu1 %v20295_v2  ;;  %17421 = vmatmul.mubr.f32.vlgmr.msra.gmra.mrb[38].mxu0 %v20322_v22  ;;  %v13375_v33 = vand.u32 4294901760, %v13374_v24 }
 0x593   :  { %17450 = vmatprep.mubr.f32.mxu1 %v20237_v19  ;;  %17425 = vmatprep.mubr.f32.mxu0 %v20209_v1 }
 0x594   :  { %v13863_v55 = vsub.f32 %v10342_v21, %v13776_v52  ;;  %17448 = vmatprep.subr.mxu1 %v13776_v52  ;;  %v13376_v13 = vsub.f32 %v13374_v24, %v13375_v33 }
 0x595   :  { %17449 = vmatpush3.msra.mxu1 %v13776_v52 }
 0x596   :  { %17451 = vmatmul.mubr.f32.vlgmr.msra.gmra.mrb[54].mxu1 %v20322_v22  ;;  %v13377_v56 = vand.u32 4294901760, %v13376_v13  ;;  %v13864_v40 = vand.u32 4294901760, %v13863_v55 }
 0x597   :  { %17455 = vmatprep.mubr.f32.mxu1 %v20209_v1 }
 0x598   :  { %17423 = vmatprep.subr.mxu0 %v13377_v56  ;;  %v13865_v50 = vsub.f32 %v13863_v55, %v13864_v40 }
 0x599   :  { %17424 = vmatpush3.msra.mxu0 %v13377_v56 }
 0x59a   :  { %17426 = vmatmul.mubr.f32.vlgmr.msra.gmra.mrb[38].mxu0 %v20295_v2  ;;  %17428 = vmatprep.subr.mxu0 %v13374_v24  ;;  %v13866_v43 = vand.u32 4294901760, %v13865_v50 }
 0x59b   :  { %17429 = vmatpush3.msra.mxu0 %v13374_v24  ;;  %17430 = vmatprep.mubr.f32.mxu0 %v20222_v34 }
 0x59c   :  { %17433 = vmatprep.subr.mxu0 %v13287_v58  ;;  %17453 = vmatprep.subr.mxu1 %v13866_v43 }
 0x59d   :  { %17454 = vmatpush3.msra.mxu1 %v13866_v43 }
 0x59e   :  { %17456 = vmatmul.mubr.f32.vlgmr.msra.gmra.mrb[54].mxu1 %v20295_v2  ;;  %17458 = vmatprep.subr.mxu1 %v13863_v55 }
 0x59f   :  { %17459 = vmatpush3.msra.mxu1 %v13863_v55  ;;  %17460 = vmatprep.mubr.f32.mxu1 %v20222_v34  ;;  %v20605_v34 = vld [vmem:[#allocation11] sm:$0xff] }
 0x5a0   :  { %17463 = vmatprep.subr.mxu1 %v13776_v52  ;;  %v20610_v19 = vand.u32 4294901760, %v20605_v34 }
 0x5a2   :  { %17431 = vmatmul.mubr.f32.vlgmr.msra.gmra.mrb[38].mxu0 %v20298_v28  ;;  %v20702_v55 = vsub.f32 %v20605_v34, %v20610_v19 }
 0x5a3   :  { %17434 = vmatpush3.msra.mxu0 %v13287_v58  ;;  %17435 = vmatprep.mubr.f32.mxu0 %v20227_v4 }
 0x5a4   :  { %17438 = vmatprep.subr.mxu0 %v13375_v33  ;;  %v20705_v13 = vand.u32 4294901760, %v20702_v55 }
 0x5a6   :  { %17461 = vmatmul.mubr.f32.vlgmr.msra.gmra.mrb[54].mxu1 %v20298_v28  ;;  %v14543_v56 = vsub.f32 %v20702_v55, %v20705_v13 }
 0x5a7   :  { %17464 = vmatpush3.msra.mxu1 %v13776_v52  ;;  %17465 = vmatprep.mubr.f32.mxu1 %v20227_v4 }
 0x5a8   :  { %17468 = vmatprep.subr.mxu1 %v13864_v40 }
 0x5aa   :  { %17436 = vmatmul.mubr.f32.vlgmr.msra.gmra.mrb[38].mxu0 %v20303_v51 }
 0x5ab   :  { %17439 = vmatpush3.msra.mxu0 %v13375_v33  ;;  %17440 = vmatprep.mubr.f32.mxu0 %v20209_v1 }
 0x5ac   :  { %17443 = vmatprep.subr.mxu0 %v13287_v58 }
 0x5ae   :  { %17466 = vmatmul.mubr.f32.vlgmr.msra.gmra.mrb[54].mxu1 %v20303_v51 }
 0x5af   :  { %17469 = vmatpush3.msra.mxu1 %v13864_v40  ;;  %17470 = vmatprep.mubr.f32.mxu1 %v20209_v1  ;;  %v14544_v40 = vand.u32 4294901760, %v14543_v56 }
 0x5b0   :  { %17473 = vmatprep.subr.mxu1 %v13776_v52 }
 0x5b2   :  { %17441 = vmatmul.mubr.f32.vlgmr.msra.gmra.mrb[38].mxu0 %v20295_v2 }
 0x5b3   :  { %17444 = vmatpush3.msra.mxu0 %v13287_v58  ;;  %17445 = vmatprep.mubr.f32.mxu0 %v20209_v1 }
 0x5b4   :  { %17478 = vmatprep.subr.mxu0 %v20610_v19 }
 0x5b6   :  { %17471 = vmatmul.mubr.f32.vlgmr.msra.gmra.mrb[54].mxu1 %v20295_v2 }
 0x5b7   :  { %17474 = vmatpush3.msra.mxu1 %v13776_v52  ;;  %17475 = vmatprep.mubr.f32.mxu1 %v20209_v1 }
 0x5ba   :  { %17446 = vmatmul.mubr.f32.vlgmr.msra.gmra.mrb[38].mxu0 %v20295_v2 }
 0x5bb   :  { %17479 = vmatpush3.msra.mxu0 %v20610_v19 }
 0x5bc   :  { %17504 = vmatprep.subr.mxu0 %v14544_v40 }
 0x5be   :  { %17476 = vmatmul.mubr.f32.vlgmr.msra.gmra.mrb[54].mxu1 %v20295_v2 }
 0x5cf   :  { %v17267_v4 = vpop.f32.mrb[32].mxu0 }
 0x5d0   :  { %v14269_v28 = vsel %vm10345_vm8, %v17267_v4, 0  ;;  %v10831_v51 = vpop.f32.mrb[33].mxu0 }
 0x5d1   :  { %v20621_v22 = vand.u32 4294901760, %v14269_v28  ;;  %v14266_v27 = vsel %vm10345_vm8, %v10831_v51, 0 }
 0x5d2   :  { %v20624_v16 = vand.u32 4294901760, %v14266_v27 }
 0x5d3   :  { %v20627_v8 = vsub.f32 %v14269_v28, %v20621_v22  ;;  %v17297_v53 = vpop.f32.mrb[48].mxu1 }
 0x5d4   :  { %v20630_v1 = vsub.f32 %v14266_v27, %v20624_v16  ;;  %v14275_v2 = vsel %vm10345_vm8, %v17297_v53, 0  ;;  %v11320_v29 = vpop.f32.mrb[49].mxu1 }
 0x5d5   :  { %v14391_v63 = vand.u32 4294901760, %v20627_v8  ;;  %v20635_v7 = vand.u32 4294901760, %v14275_v2  ;;  %v14272_v39 = vsel %vm10345_vm8, %v11320_v29, 0 }
 0x5d6   :  { %v14381_v11 = vand.u32 4294901760, %v20630_v1  ;;  %v20641_v17 = vand.u32 4294901760, %v14272_v39 }
 0x5d7   :  { %v14392_v26 = vsub.f32 %v20627_v8, %v14391_v63  ;;  %v20644_v20 = vsub.f32 %v14275_v2, %v20635_v7 }
 0x5d8   :  { %v14382_v18 = vsub.f32 %v20630_v1, %v14381_v11  ;;  %v20650_v37 = vsub.f32 %v14272_v39, %v20641_v17 }
 0x5d9   :  { %v14393_v54 = vand.u32 4294901760, %v14392_v26  ;;  %v14411_v25 = vand.u32 4294901760, %v20644_v20 }
 0x5da   :  { %v14383_v59 = vand.u32 4294901760, %v14382_v18  ;;  %v14401_v6 = vand.u32 4294901760, %v20650_v37 }
 0x5db   :  { %v14412_v23 = vsub.f32 %v20644_v20, %v14411_v25 }
 0x5dc   :  { %17480 = vmatprep.mubr.f32.mxu0 %v14383_v59  ;;  %v14402_v5 = vsub.f32 %v20650_v37, %v14401_v6 }
 0x5dd   :  { %17481 = vmatmul.mubr.f32.vlgmr.msra.gmra.mrb[40].mxu0 %v14393_v54  ;;  %v14413_v48 = vand.u32 4294901760, %v14412_v23 }
 0x5de   :  { %v14403_v47 = vand.u32 4294901760, %v14402_v5  ;;  %17505 = vmatpush3.msra.mxu0 %v14544_v40 }
 0x5df   :  { %17530 = vmatprep.subr.mxu0 %v20702_v55 }
 0x5e0   :  { %17483 = vmatprep.mubr.f32.mxu0 %v14403_v47 }
 0x5e1   :  { %17484 = vmatmul.mubr.f32.gmra.mrb[42].mxu0 %v14413_v48 }
 0x5fb   :  { %v17327_v36 = vpop.f32.mrb[34].mxu0 }
 0x5fc   :  { %v14281_v45 = vsel %vm10345_vm8, %v17327_v36, 0  ;;  %v11809_v35 = vpop.f32.mrb[35].mxu0 }
 0x5fd   :  { %v20661_v3 = vand.u32 4294901760, %v14281_v45  ;;  %v14278_v9 = vsel %vm10345_vm8, %v11809_v35, 0 }
 0x5fe   :  { %v20664_v49 = vand.u32 4294901760, %v14278_v9 }
 0x5ff   :  { %v20667_v0 = vsub.f32 %v14281_v45, %v20661_v3  ;;  %v17357_v15 = vpop.f32.mrb[50].mxu1 }
 0x600   :  { %v20670_v32 = vsub.f32 %v14278_v9, %v20664_v49  ;;  %v14287_v60 = vsel %vm10345_vm8, %v17357_v15, 0  ;;  %v12298_v41 = vpop.f32.mrb[51].mxu1 }
 0x601   :  { %v14431_v10 = vand.u32 4294901760, %v20667_v0  ;;  %v20674_v38 = vand.u32 4294901760, %v14287_v60  ;;  %v14284_v14 = vsel %vm10345_vm8, %v12298_v41, 0 }
 0x602   :  { %v14421_v57 = vand.u32 4294901760, %v20670_v32  ;;  %v20678_v44 = vand.u32 4294901760, %v14284_v14 }
 0x603   :  { %v20681_v61 = vsub.f32 %v14287_v60, %v20674_v38  ;;  %v14432_v12 = vsub.f32 %v20667_v0, %v14431_v10 }
 0x604   :  { %v20687_v31 = vsub.f32 %v14284_v14, %v20678_v44  ;;  %v14422_v58 = vsub.f32 %v20670_v32, %v14421_v57 }
 0x605   :  { %v14451_v46 = vand.u32 4294901760, %v20681_v61  ;;  %v14433_v30 = vand.u32 4294901760, %v14432_v12 }
 0x606   :  { %v14441_v42 = vand.u32 4294901760, %v20687_v31  ;;  %v14423_v24 = vand.u32 4294901760, %v14422_v58 }
 0x607   :  { %v14452_v62 = vsub.f32 %v20681_v61, %v14451_v46 }
 0x608   :  { %17486 = vmatprep.mubr.f32.mxu0 %v14423_v24  ;;  %v14442_v21 = vsub.f32 %v20687_v31, %v14441_v42 }
 0x609   :  { %17487 = vmatmul.mubr.f32.gmra.mrb[44].mxu0 %v14433_v30  ;;  %v14453_v52 = vand.u32 4294901760, %v14452_v62 }
 0x60a   :  { %v14443_v33 = vand.u32 4294901760, %v14442_v21 }
 0x60c   :  { %17489 = vmatprep.mubr.f32.mxu0 %v14443_v33 }
 0x60d   :  { %17490 = vmatmul.mubr.f32.gmra.mrb[46].mxu0 %v14453_v52 }
 0x661   :  { %v17387_v50 = vpop.f32.mrb[36].mxu0 }
 0x662   :  { %v14293_v43 = vsel %vm10345_vm8, %v17387_v50, 0  ;;  %v12787_v4 = vpop.f32.mrb[37].mxu0 }
 0x663   :  { %v20711_v28 = vand.u32 4294901760, %v14293_v43  ;;  %v14290_v34 = vsel %vm10345_vm8, %v12787_v4, 0 }
 0x664   :  { %v20714_v51 = vand.u32 4294901760, %v14290_v34 }
 0x665   :  { %v20717_v27 = vsub.f32 %v14293_v43, %v20711_v28  ;;  %v17417_v53 = vpop.f32.mrb[52].mxu1 }
 0x666   :  { %v20720_v2 = vsub.f32 %v14290_v34, %v20714_v51  ;;  %v14299_v29 = vsel %vm10345_vm8, %v17417_v53, 0  ;;  %v13276_v39 = vpop.f32.mrb[53].mxu1 }
 0x667   :  { %v14471_v26 = vand.u32 4294901760, %v20717_v27  ;;  %v20724_v18 = vand.u32 4294901760, %v14299_v29  ;;  %v14296_v54 = vsel %vm10345_vm8, %v13276_v39, 0 }
 0x668   :  { %v14461_v59 = vand.u32 4294901760, %v20720_v2  ;;  %v20728_v23 = vand.u32 4294901760, %v14296_v54 }
 0x669   :  { %v20731_v5 = vsub.f32 %v14299_v29, %v20724_v18  ;;  %v14472_v48 = vsub.f32 %v20717_v27, %v14471_v26 }
 0x66a   :  { %v20737_v47 = vsub.f32 %v14296_v54, %v20728_v23  ;;  %v14462_v36 = vsub.f32 %v20720_v2, %v14461_v59 }
 0x66b   :  { %v14491_v45 = vand.u32 4294901760, %v20731_v5  ;;  %v14473_v15 = vand.u32 4294901760, %v14472_v48 }
 0x66c   :  { %v14481_v35 = vand.u32 4294901760, %v20737_v47  ;;  %v14463_v9 = vand.u32 4294901760, %v14462_v36 }
 0x66d   :  { %v14492_v60 = vsub.f32 %v20731_v5, %v14491_v45 }
 0x66e   :  { %17492 = vmatprep.mubr.f32.mxu0 %v14463_v9  ;;  %v14482_v41 = vsub.f32 %v20737_v47, %v14481_v35 }
 0x66f   :  { %17493 = vmatmul.mubr.f32.gmra.mrb[48].mxu0 %v14473_v15  ;;  %v14493_v12 = vand.u32 4294901760, %v14492_v60 }
 0x670   :  { %v14483_v14 = vand.u32 4294901760, %v14482_v41 }
 0x672   :  { %17495 = vmatprep.mubr.f32.mxu0 %v14483_v14 }
 0x673   :  { %17496 = vmatmul.mubr.f32.gmra.mrb[50].mxu0 %v14493_v12 }
 0x68d   :  { %v17447_v58 = vpop.f32.mrb[38].mxu0 }
 0x68e   :  { %v14305_v30 = vsel %vm10345_vm8, %v17447_v58, 0  ;;  %v13765_v24 = vpop.f32.mrb[39].mxu0 }
 0x68f   :  { %v20751_v62 = vand.u32 4294901760, %v14305_v30  ;;  %v14302_v21 = vsel %vm10345_vm8, %v13765_v24, 0 }
 0x690   :  { %v20754_v52 = vand.u32 4294901760, %v14302_v21 }
 0x691   :  { %v20757_v33 = vsub.f32 %v14305_v30, %v20751_v62  ;;  %v17477_v56 = vpop.f32.mrb[54].mxu1 }
 0x692   :  { %v20760_v40 = vsub.f32 %v14302_v21, %v20754_v52  ;;  %v14311_v50 = vsel %vm10345_vm8, %v17477_v56, 0  ;;  %v14254_v43 = vpop.f32.mrb[55].mxu1  ;;  %v15418_v56 = vld [vmem:[#allocation2 + $0x70] sm:$0xff] }
 0x693   :  { %v14511_v4 = vand.u32 4294901760, %v20757_v33  ;;  %v20764_v34 = vand.u32 4294901760, %v14311_v50  ;;  %v14308_v53 = vsel %vm10345_vm8, %v14254_v43, 0 }
 0x694   :  { %v14501_v29 = vand.u32 4294901760, %v20760_v40  ;;  %v20768_v39 = vand.u32 4294901760, %v14308_v53 }
 0x695   :  { %v20771_v54 = vsub.f32 %v14311_v50, %v20764_v34  ;;  %v14512_v48 = vsub.f32 %v20757_v33, %v14511_v4 }
 0x696   :  { %v20777_v36 = vsub.f32 %v14308_v53, %v20768_v39  ;;  %v14502_v9 = vsub.f32 %v20760_v40, %v14501_v29 }
 0x697   :  { %v14531_v15 = vand.u32 4294901760, %v20771_v54  ;;  %v14513_v14 = vand.u32 4294901760, %v14512_v48 }
 0x698   :  { %v14521_v60 = vand.u32 4294901760, %v20777_v36  ;;  %v14503_v41 = vand.u32 4294901760, %v14502_v9 }
 0x699   :  { %v14532_v12 = vsub.f32 %v20771_v54, %v14531_v15 }
 0x69a   :  { %17498 = vmatprep.mubr.f32.mxu0 %v14503_v41  ;;  %v14522_v58 = vsub.f32 %v20777_v36, %v14521_v60 }
 0x69b   :  { %17499 = vmatmul.mubr.f32.gmra.mrb[52].mxu0 %v14513_v14  ;;  %v14533_v24 = vand.u32 4294901760, %v14532_v12 }
 0x69c   :  { %v14523_v30 = vand.u32 4294901760, %v14522_v58 }
 0x69e   :  { %17501 = vmatprep.mubr.f32.mxu0 %v14523_v30 }
 0x69f   :  { %17502 = vmatmul.mubr.f32.gmra.mrb[54].mxu0 %v14533_v24 }
 0x6a0   :  { %17506 = vmatprep.mubr.f32.mxu0 %v20624_v16 }
 0x6a3   :  { %17507 = vmatmul.mubr.f32.vlgmr.msra.gmra.mrb[40].mxu0 %v20621_v22 }
 0x6a4   :  { %17509 = vmatprep.mubr.f32.mxu0 %v20641_v17  ;;  %17531 = vmatpush3.msra.mxu0 %v20702_v55  ;;  %v15412_v55 = vld [vmem:[#allocation2 + $0x40] sm:$0xff] }
 0x6a5   :  { %17556 = vmatprep.subr.mxu0 %v20610_v19 }
 0x6a7   :  { %17510 = vmatmul.mubr.f32.gmra.mrb[42].mxu0 %v20635_v7 }
 0x6a8   :  { %17512 = vmatprep.mubr.f32.mxu0 %v20664_v49 }
 0x6ab   :  { %17513 = vmatmul.mubr.f32.gmra.mrb[44].mxu0 %v20661_v3 }
 0x6ac   :  { %17515 = vmatprep.mubr.f32.mxu0 %v20678_v44 }
 0x6af   :  { %17516 = vmatmul.mubr.f32.gmra.mrb[46].mxu0 %v20674_v38 }
 0x6b0   :  { %17518 = vmatprep.mubr.f32.mxu0 %v20714_v51 }
 0x6b3   :  { %17519 = vmatmul.mubr.f32.gmra.mrb[48].mxu0 %v20711_v28 }
 0x6b4   :  { %17521 = vmatprep.mubr.f32.mxu0 %v20728_v23 }
 0x6b7   :  { %17522 = vmatmul.mubr.f32.gmra.mrb[50].mxu0 %v20724_v18 }
 0x6b8   :  { %17524 = vmatprep.mubr.f32.mxu0 %v20754_v52 }
 0x6bb   :  { %17525 = vmatmul.mubr.f32.gmra.mrb[52].mxu0 %v20751_v62 }
 0x6bc   :  { %17527 = vmatprep.mubr.f32.mxu0 %v20768_v39 }
 0x6bf   :  { %17528 = vmatmul.mubr.f32.gmra.mrb[54].mxu0 %v20764_v34 }
 0x6c0   :  { %17532 = vmatprep.mubr.f32.mxu0 %v20630_v1 }
 0x6c3   :  { %17533 = vmatmul.mubr.f32.vlgmr.msra.gmra.mrb[40].mxu0 %v20627_v8 }
 0x6c4   :  { %17535 = vmatprep.mubr.f32.mxu0 %v20650_v37  ;;  %17557 = vmatpush3.msra.mxu0 %v20610_v19 }
 0x6c5   :  { %17582 = vmatprep.subr.mxu0 %v20705_v13 }
 0x6c7   :  { %17536 = vmatmul.mubr.f32.gmra.mrb[42].mxu0 %v20644_v20 }
 0x6c8   :  { %17538 = vmatprep.mubr.f32.mxu0 %v20670_v32 }
 0x6cb   :  { %17539 = vmatmul.mubr.f32.gmra.mrb[44].mxu0 %v20667_v0 }
 0x6cc   :  { %17541 = vmatprep.mubr.f32.mxu0 %v20687_v31 }
 0x6cf   :  { %17542 = vmatmul.mubr.f32.gmra.mrb[46].mxu0 %v20681_v61 }
 0x6d0   :  { %17544 = vmatprep.mubr.f32.mxu0 %v20720_v2  ;;  %v15415_v2 = vld [vmem:[#allocation2 + $0x58] sm:$0xff] }
 0x6d3   :  { %17545 = vmatmul.mubr.f32.gmra.mrb[48].mxu0 %v20717_v27 }
 0x6d4   :  { %17547 = vmatprep.mubr.f32.mxu0 %v20737_v47  ;;  %v15417_v47 = vld [vmem:[#allocation2 + $0x68] sm:$0xff] }
 0x6d7   :  { %17548 = vmatmul.mubr.f32.gmra.mrb[50].mxu0 %v20731_v5 }
 0x6d8   :  { %17550 = vmatprep.mubr.f32.mxu0 %v20760_v40 }
 0x6db   :  { %17551 = vmatmul.mubr.f32.gmra.mrb[52].mxu0 %v20757_v33  ;;  %v15419_v33 = vld [vmem:[#allocation2 + $0x78] sm:$0xff] }
 0x6dc   :  { %17553 = vmatprep.mubr.f32.mxu0 %v20777_v36 }
 0x6df   :  { %17554 = vmatmul.mubr.f32.gmra.mrb[54].mxu0 %v20771_v54 }
 0x6e0   :  { %17558 = vmatprep.mubr.f32.mxu0 %v14381_v11  ;;  %v15407_v11 = vld [vmem:[#allocation2 + $0x18] sm:$0xff] }
 0x6e3   :  { %17559 = vmatmul.mubr.f32.vlgmr.msra.gmra.mrb[40].mxu0 %v14391_v63 }
 0x6e4   :  { %17561 = vmatprep.mubr.f32.mxu0 %v14401_v6  ;;  %17583 = vmatpush3.msra.mxu0 %v20705_v13  ;;  %v15409_v6 = vld [vmem:[#allocation2 + $0x28] sm:$0xff] }
 0x6e5   :  { %17608 = vmatprep.subr.mxu0 %v20610_v19 }
 0x6e7   :  { %17562 = vmatmul.mubr.f32.gmra.mrb[42].mxu0 %v14411_v25 }
 0x6e8   :  { %17564 = vmatprep.mubr.f32.mxu0 %v14421_v57  ;;  %v15410_v57 = vld [vmem:[#allocation2 + $0x30] sm:$0xff] }
 0x6eb   :  { %17565 = vmatmul.mubr.f32.gmra.mrb[44].mxu0 %v14431_v10 }
 0x6ec   :  { %17567 = vmatprep.mubr.f32.mxu0 %v14441_v42  ;;  %v15413_v42 = vld [vmem:[#allocation2 + $0x48] sm:$0xff] }
 0x6ef   :  { %17568 = vmatmul.mubr.f32.gmra.mrb[46].mxu0 %v14451_v46 }
 0x6f0   :  { %17570 = vmatprep.mubr.f32.mxu0 %v14461_v59 }
 0x6f3   :  { %17571 = vmatmul.mubr.f32.gmra.mrb[48].mxu0 %v14471_v26  ;;  %v15414_v26 = vld [vmem:[#allocation2 + $0x50] sm:$0xff] }
 0x6f4   :  { %17573 = vmatprep.mubr.f32.mxu0 %v14481_v35 }
 0x6f7   :  { %17574 = vmatmul.mubr.f32.gmra.mrb[50].mxu0 %v14491_v45  ;;  %v15416_v45 = vld [vmem:[#allocation2 + $0x60] sm:$0xff] }
 0x6f8   :  { %17576 = vmatprep.mubr.f32.mxu0 %v14501_v29 }
 0x6fb   :  { %17577 = vmatmul.mubr.f32.gmra.mrb[52].mxu0 %v14511_v4 }
 0x6fc   :  { %17579 = vmatprep.mubr.f32.mxu0 %v14521_v60 }
 0x6ff   :  { %17580 = vmatmul.mubr.f32.gmra.mrb[54].mxu0 %v14531_v15 }
 0x700   :  { %17584 = vmatprep.mubr.f32.mxu0 %v20624_v16 }
 0x703   :  { %17585 = vmatmul.mubr.f32.vlgmr.msra.gmra.mrb[40].mxu0 %v20621_v22 }
 0x704   :  { %17587 = vmatprep.mubr.f32.mxu0 %v20641_v17  ;;  %17609 = vmatpush3.msra.mxu0 %v20610_v19  ;;  %v15405_v19 = vld [vmem:[#allocation2 + $0x8] sm:$0xff] }
 0x707   :  { %17588 = vmatmul.mubr.f32.gmra.mrb[42].mxu0 %v20635_v7 }
 0x708   :  { %17590 = vmatprep.mubr.f32.mxu0 %v20664_v49 }
 0x70b   :  { %17591 = vmatmul.mubr.f32.gmra.mrb[44].mxu0 %v20661_v3 }
 0x70c   :  { %17593 = vmatprep.mubr.f32.mxu0 %v20678_v44 }
 0x70f   :  { %17594 = vmatmul.mubr.f32.gmra.mrb[46].mxu0 %v20674_v38 }
 0x710   :  { %17596 = vmatprep.mubr.f32.mxu0 %v20714_v51 }
 0x713   :  { %17597 = vmatmul.mubr.f32.gmra.mrb[48].mxu0 %v20711_v28 }
 0x714   :  { %17599 = vmatprep.mubr.f32.mxu0 %v20728_v23 }
 0x717   :  { %17600 = vmatmul.mubr.f32.gmra.mrb[50].mxu0 %v20724_v18 }
 0x718   :  { %17602 = vmatprep.mubr.f32.mxu0 %v20754_v52 }
 0x71b   :  { %17603 = vmatmul.mubr.f32.gmra.mrb[52].mxu0 %v20751_v62 }
 0x71c   :  { %17605 = vmatprep.mubr.f32.mxu0 %v20768_v39 }
 0x71f   :  { %17606 = vmatmul.mubr.f32.gmra.mrb[54].mxu0 %v20764_v34 }
 0x720   :  { %17610 = vmatprep.mubr.f32.mxu0 %v20624_v16 }
 0x723   :  { %17611 = vmatmul.mubr.f32.vlgmr.msra.gmra.mrb[40].mxu0 %v20621_v22  ;;  %v15404_v22 = vld [vmem:[#allocation2] sm:$0xff] }
 0x724   :  { %17613 = vmatprep.mubr.f32.mxu0 %v20641_v17 }
 0x727   :  { %17614 = vmatmul.mubr.f32.gmra.mrb[42].mxu0 %v20635_v7  ;;  %v15406_v7 = vld [vmem:[#allocation2 + $0x10] sm:$0xff] }
 0x728   :  { %17616 = vmatprep.mubr.f32.mxu0 %v20664_v49 }
 0x72b   :  { %17617 = vmatmul.mubr.f32.gmra.mrb[44].mxu0 %v20661_v3  ;;  %v15408_v3 = vld [vmem:[#allocation2 + $0x20] sm:$0xff] }
 0x72c   :  { %17619 = vmatprep.mubr.f32.mxu0 %v20678_v44 }
 0x72f   :  { %17620 = vmatmul.mubr.f32.gmra.mrb[46].mxu0 %v20674_v38  ;;  %v15411_v38 = vld [vmem:[#allocation2 + $0x38] sm:$0xff] }
 0x730   :  { %17622 = vmatprep.mubr.f32.mxu0 %v20714_v51 }
 0x733   :  { %17623 = vmatmul.mubr.f32.gmra.mrb[48].mxu0 %v20711_v28 }
 0x734   :  { %17625 = vmatprep.mubr.f32.mxu0 %v20728_v23 }
 0x737   :  { %17626 = vmatmul.mubr.f32.gmra.mrb[50].mxu0 %v20724_v18 }
 0x738   :  { %17628 = vmatprep.mubr.f32.mxu0 %v20754_v52 }
 0x73b   :  { %17629 = vmatmul.mubr.f32.gmra.mrb[52].mxu0 %v20751_v62 }
 0x73c   :  { %17631 = vmatprep.mubr.f32.mxu0 %v20768_v39 }
 0x73f   :  { %17632 = vmatmul.mubr.f32.gmra.mrb[54].mxu0 %v20764_v34 }
 0x7f6   :  { %v17612_v16 = vpop.f32.mrb[40].mxu0 }
 0x7f7   :  { %v15421_v8 = vadd.f32 %v17612_v16, %v15405_v19  ;;  %v15310_v1 = vpop.f32.mrb[41].mxu0 }
 0x7f8   :  { %v15420_v63 = vadd.f32 %v15404_v22, %v15310_v1 }
 0x7f9   :  { %15437 = vst.msk [vmem:[#allocation13 + $0x8] sm:$0xff] %vm120_vm0, %v15421_v8 }
 0x7fa   :  { %15436 = vst.msk [vmem:[#allocation13] sm:$0xff] %vm120_vm0, %v15420_v63  ;;  %v17615_v17 = vpop.f32.mrb[42].mxu0 }
 0x7fb   :  { %v15423_v20 = vadd.f32 %v17615_v17, %v15407_v11  ;;  %v15322_v37 = vpop.f32.mrb[43].mxu0 }
 0x7fc   :  { %v15422_v25 = vadd.f32 %v15406_v7, %v15322_v37 }
 0x7fd   :  { %15439 = vst.msk [vmem:[#allocation13 + $0x18] sm:$0xff] %vm120_vm0, %v15423_v20 }
 0x7fe   :  { %15438 = vst.msk [vmem:[#allocation13 + $0x10] sm:$0xff] %vm120_vm0, %v15422_v25  ;;  %v17618_v49 = vpop.f32.mrb[44].mxu0 }
 0x7ff   :  { %v15425_v0 = vadd.f32 %v17618_v49, %v15409_v6  ;;  %v15334_v32 = vpop.f32.mrb[45].mxu0 }
 0x800   :  { %v15424_v10 = vadd.f32 %v15408_v3, %v15334_v32 }
 0x801   :  { %15441 = vst.msk [vmem:[#allocation13 + $0x28] sm:$0xff] %vm120_vm0, %v15425_v0 }
 0x802   :  { %15440 = vst.msk [vmem:[#allocation13 + $0x20] sm:$0xff] %vm120_vm0, %v15424_v10  ;;  %v17621_v44 = vpop.f32.mrb[46].mxu0 }
 0x803   :  { %v15427_v61 = vadd.f32 %v17621_v44, %v15411_v38  ;;  %v15346_v31 = vpop.f32.mrb[47].mxu0 }
 0x804   :  { %v15426_v46 = vadd.f32 %v15410_v57, %v15346_v31 }
 0x805   :  { %15443 = vst.msk [vmem:[#allocation13 + $0x38] sm:$0xff] %vm120_vm0, %v15427_v61 }
 0x806   :  { %15442 = vst.msk [vmem:[#allocation13 + $0x30] sm:$0xff] %vm120_vm0, %v15426_v46  ;;  %v17624_v13 = vpop.f32.mrb[48].mxu0 }
 0x807   :  { %v15429_v28 = vadd.f32 %v17624_v13, %v15413_v42  ;;  %v15358_v51 = vpop.f32.mrb[49].mxu0 }
 0x808   :  { %v15428_v27 = vadd.f32 %v15412_v55, %v15358_v51 }
 0x809   :  { %15445 = vst.msk [vmem:[#allocation13 + $0x48] sm:$0xff] %vm120_vm0, %v15429_v28 }
 0x80a   :  { %15444 = vst.msk [vmem:[#allocation13 + $0x40] sm:$0xff] %vm120_vm0, %v15428_v27  ;;  %v17627_v18 = vpop.f32.mrb[50].mxu0 }
 0x80b   :  { %v15431_v59 = vadd.f32 %v17627_v18, %v15415_v2  ;;  %v15370_v23 = vpop.f32.mrb[51].mxu0 }
 0x80c   :  { %v15430_v5 = vadd.f32 %v15414_v26, %v15370_v23 }
 0x80d   :  { %15447 = vst.msk [vmem:[#allocation13 + $0x58] sm:$0xff] %vm120_vm0, %v15431_v59 }
 0x80e   :  { %15446 = vst.msk [vmem:[#allocation13 + $0x50] sm:$0xff] %vm120_vm0, %v15430_v5  ;;  %v17630_v35 = vpop.f32.mrb[52].mxu0 }
 0x80f   :  { %v15433_v62 = vadd.f32 %v17630_v35, %v15417_v47  ;;  %v15382_v21 = vpop.f32.mrb[53].mxu0 }
 0x810   :  { %v15432_v52 = vadd.f32 %v15416_v45, %v15382_v21 }
 0x811   :  { %15449 = vst.msk [vmem:[#allocation13 + $0x68] sm:$0xff] %vm120_vm0, %v15433_v62 }
 0x812   :  { %15448 = vst.msk [vmem:[#allocation13 + $0x60] sm:$0xff] %vm120_vm0, %v15432_v52  ;;  %v17633_v40 = vpop.f32.mrb[54].mxu0 }
 0x813   :  { %v15435_v50 = vadd.f32 %v17633_v40, %v15419_v33  ;;  %v15394_v43 = vpop.f32.mrb[55].mxu0 }
 0x814   :  { %v15434_v4 = vadd.f32 %v15418_v56, %v15394_v43 }
 0x815   :  { %15451 = vst.msk [vmem:[#allocation13 + $0x78] sm:$0xff] %vm120_vm0, %v15435_v50 }
 0x816   :  { %15450 = vst.msk [vmem:[#allocation13 + $0x70] sm:$0xff] %vm120_vm0, %v15434_v4 }
 0x817   :  { %18639 = shalt.err (!%p18636_p10)
}
 0x818   :  { %s18640_s25 = scalar_lea.hbm %s20926_s6, 2048 }
 0x819   :  { %p18641_p11 = scmp.ne.s32.totalorder %s20926_s6, %s18640_s25  ;;  %p18644_p12 = scmp.lt.u32.totalorder %s18640_s25, %s20926_s6 }
 0x81b   :  { %p18646_p13 = pnand %p18644_p12, %p18641_p11 }
 0x81d   :  { %18649 = shalt.err (!%p18646_p13)
}
 0x81e   :  { %15463 = dma.vmem_to_hbm [thread:$0]  %s15458_s1, 2048, %s20926_s6, [#allocation4], %s18662_s9, %s18662_s9, %s18663_s10  }
 0x81f   :  { %18658 = dma.done.wait [#allocation4], 2048  }
 0x820   :  { %18659 = vsyncadd [#allocation4], 4294965248 }
 0x821   :  { %15467 = vsyncpa [#allocation3], 1 }
 0x822   :  { %15468 = vsyncpa [#allocation6], 1 }
 0x823   :  { %15469 = vsyncpa [#allocation9], 1 }
 0x824   :  { %15470 = vsyncpa [#allocation12], 1 }
 0x825   :  { %15471 = vsyncpa [#allocation4], 1 }

</bundles_post_ra>
